<compile_context>
chip_gen: v7x
topology: tpu7x:2x2x1
jax: 0.10.0
libtpu: 0.0.40
codegen_flags: <defaults>
</compile_context>

<pallas_src>
import functools

import jax
import jax.numpy as jnp
from jax.experimental import pallas as pl
from jax.experimental.pallas import tpu as pltpu


_BLOCK_KEYS = ("in_w", "in_b", "Wfg", "bfg", "Wsk", "bsk", "Wgc", "bgc",
               "bn_s", "bn_b", "Mres", "bres", "Msk", "bskm", "out_w", "out_b")


# --------------------------------------------------------------------------
# Fused encoder + fc bottleneck + decoder kernel (one pallas_call, grid=(B,))
# --------------------------------------------------------------------------
def _stae_kernel(*refs, C, N, L, od, dil, t_enc_in, n_fc):
    f32 = jnp.float32
    dot = functools.partial(jnp.dot, preferred_element_type=f32)

    x_ref, adjKe_ref, adjKd_ref = refs[0], refs[1], refs[2]
    n_blk = len(_BLOCK_KEYS)
    pe = refs[3:3 + n_blk]
    fc = refs[3 + n_blk:3 + n_blk + 2 * n_fc]
    pd = refs[3 + n_blk + 2 * n_fc:3 + 2 * n_blk + 2 * n_fc]
    o_ref = refs[-1]

    def run_block(x_in, adjk_ref, prm, decode, t_start):
        """One ST-CNN stack.  Activations are (C, T*N) slabs, lane = t*N + n."""
        (inw, inb, Wfg, bfg, Wsk, bsk, Wgc, bgc,
         bns, bnb, Mres, bres, Msk, bskm, outw, outb) = prm

        if decode:                                   # end_conv_trans (1x1)
            X = dot(inw[...], x_in) + inb[...]       # (C, od) @ (od, T*N)
        else:                                        # start_conv (1x1, 1 chan)
            X = inw[...] * x_in + inb[...]           # (C,1)*(1,T*N)

        skip = None
        t = t_start
        order = range(L - 1, -1, -1) if decode else range(L)
        for i in order:
            d = dil[i]
            j = L - 1 - i                            # time-map index (torch)
            t_in = t
            t_out = t_in + d if decode else t_in - d
            resid = X

            # ---- gated dilated (1,2) conv, filter|gate packed on sublanes ----
            if decode:                               # ConvTranspose: T -> T + d
                y0 = dot(Wfg[2 * i], X)              # tap 0 -> out times 0..T-1
                y1 = dot(Wfg[2 * i + 1], X)          # tap 1 -> out times d..
                z = jnp.zeros((2 * C, d * N), f32)
                y = (jnp.concatenate([y0, z], axis=1)
                     + jnp.concatenate([z, y1], axis=1) + bfg[i])
            else:                                    # Conv: T -> T - d
                xp = jnp.concatenate(
                    [X[:, :t_out * N], X[:, d * N:(t_out + d) * N]], axis=0)
                y = dot(Wfg[i], xp) + bfg[i]         # (2C,2C)@(2C,T_out*N)
            g = jnp.tanh(y[:C, :]) * jax.nn.sigmoid(y[C:, :])

            # ---- skip 1x1 conv + skip_map (time Linear) on running skip ----
            s = dot(Wsk[i], g) + bsk[i]
            if skip is None:                         # torch try/except on int 0
                skip = s
            else:
                skip = (s + dot(skip, Msk[j, :t_in * N, :t_out * N])
                        + bskm[j, :, :t_out * N])

            # ---- GCN (support_len=1, order=2), block-diagonal adjacency ----
            a = adjk_ref[:t_out * N, :t_out * N]     # kron(I_T, adj)
            x1 = dot(g, a)
            x2 = dot(x1, a)
            h = jnp.concatenate([g, x1, x2], axis=0)  # (3C, T_out*N)
            gc = dot(Wgc[i], h) + bgc[i]

            # ---- res_map (time Linear) on residual + eval BatchNorm affine ----
            X = (gc + dot(resid, Mres[j, :t_in * N, :t_out * N])
                 + bres[j, :, :t_out * N])
            X = X * bns[i] + bnb[i]
            t = t_out

        # output 1x1 projection is applied to the skip path
        return dot(outw[...], skip) + outb[...], t

    # ---------------- encoder ----------------
    hidden, t_h = run_block(x_ref[...], adjKe_ref, pe, False, t_enc_in)

    # ---------------- fc bottleneck (map_func='fc', requires t_h == 1) -------
    # torch flatten order of (od, N, 1) is c*N + n -> lane concat of rows.
    hflat = jnp.concatenate([hidden[c:c + 1, :] for c in range(od)], axis=1)
    v = hflat
    for k in range(n_fc):
        v = dot(v, fc[2 * k][...]) + fc[2 * k + 1][...]
    v = v + hflat                                     # predict + history hidden
    predict = jnp.concatenate(
        [v[:, c * N:(c + 1) * N] for c in range(od)], axis=0)   # (od, N)

    # ---------------- decoder ----------------
    out, _ = run_block(predict, adjKd_ref, pd, True, t_h)
    o_ref[...] = out                                  # (1, t_dec*N) lane-dense


def _stae_call(x, pk, cfg):
    """x: (B, 1, T_in*N) with lane index t*N + n  ->  (B, 1, T_dec*N)."""
    B, _, TinN = x.shape
    C, N, od = cfg["channels"], cfg["num_nodes"], cfg["out_dim"]
    L = cfg["blocks"] * cfg["layers"]
    dil = tuple(cfg["dilations"])
    t_enc_in = TinN // N
    t_h = t_enc_in - sum(dil)
    assert t_h == 1, "map_func='fc' requires an encoder bottleneck of length 1"
    t_dec = t_h + sum(dil)
    n_fc = len(pk["fc"]) // 2

    ops = [x, pk["adjK_enc"], pk["adjK_dec"]]
    ops += [pk["enc"][k] for k in _BLOCK_KEYS]
    ops += list(pk["fc"])
    ops += [pk["dec"][k] for k in _BLOCK_KEYS]

    vmem = pl.BlockSpec(memory_space=pltpu.MemorySpace.VMEM)
    in_specs = ([pl.BlockSpec((pl.Squeezed(), 1, TinN), lambda b: (b, 0, 0))]
                + [vmem] * (len(ops) - 1))
    out_specs = pl.BlockSpec((pl.Squeezed(), 1, t_dec * N),
                             lambda b: (b, 0, 0))

    kernel = functools.partial(_stae_kernel, C=C, N=N, L=L, od=od, dil=dil,
                               t_enc_in=t_enc_in, n_fc=n_fc)
    return pl.pallas_call(
        kernel,
        grid=(B,),
        out_shape=jax.ShapeDtypeStruct((B, 1, t_dec * N), jnp.float32),
        in_specs=in_specs,
        out_specs=out_specs,
        compiler_params=pltpu.CompilerParams(
            dimension_semantics=("parallel",)),
    )(*ops)


# --------------------------------------------------------------------------
# Model configuration / parameters (torch-layout) and one-time packing
# --------------------------------------------------------------------------
def build_layer_config(blocks, layers, kernel_size):
    dilations, res_in, res_out = [], [], []
    rf = 1
    for _b in range(blocks):
        scope = kernel_size - 1
        d = 1
        for _i in range(layers):
            dilations.append(d)
            res_in.append(rf + kernel_size)
            res_out.append(rf + d - 1)
            d *= 2
            rf += scope
            scope *= 2
    return dilations, res_in, res_out, rf


def init_params(key, cfg):
    counter = [0]

    def nxt():
        counter[0] += 1
        return jax.random.fold_in(key, counter[0])

    def nrm(shape, scale=0.1):
        return scale * jax.random.normal(nxt(), shape, dtype=jnp.float32)

    C, N, D, od = cfg["channels"], cfg["num_nodes"], cfg["node_dim"], cfg["out_dim"]
    nl = cfg["blocks"] * cfg["layers"]
    p = {
        "nodevec1": nrm((N, D), 1.0), "nodevec2": nrm((D, N), 1.0),
        "nodevec1_t": nrm((N, D), 1.0), "nodevec2_t": nrm((D, N), 1.0),
        "start_conv_w": nrm((C, 1)), "start_conv_b": nrm((C,)),
        "start_conv_trans_w": nrm((1, C)), "start_conv_trans_b": nrm((1,)),
        "end_conv_w": nrm((od, C)), "end_conv_b": nrm((od,)),
        "end_conv_trans_w": nrm((C, od)), "end_conv_trans_b": nrm((C,)),
    }
    # map_func='fc' layers (torch init is eye/zeros; small noise added so the
    # self-check exercises the full data path).
    dims = [(N * od) // (2 ** i) for i in range(cfg["fc_layers"] + 1)]
    io = [(dims[i], dims[i + 1]) for i in range(cfg["fc_layers"])]
    io += [(dims[i + 1], dims[i]) for i in reversed(range(cfg["fc_layers"]))]
    fc_ws, fc_bs = [], []
    for f_in, f_out in io:
        fc_ws.append(jnp.eye(f_out, f_in, dtype=jnp.float32) + nrm((f_out, f_in), 0.05))
        fc_bs.append(nrm((f_out,), 0.02))
    p["fc_ws"], p["fc_bs"] = fc_ws, fc_bs

    layers = []
    for j in range(nl):
        t_i, t_o = cfg["res_in"][j], cfg["res_out"][j]
        layers.append({
            "Wf": nrm((C, C, 1, 2)), "bf": nrm((C,)),
            "Wg": nrm((C, C, 1, 2)), "bg": nrm((C,)),
            "Wft": nrm((C, C, 1, 2)), "bft": nrm((C,)),
            "Wgt": nrm((C, C, 1, 2)), "bgt": nrm((C,)),
            "Wskip": nrm((C, C)), "bskip": nrm((C,)),
            "Wskip_t": nrm((C, C)), "bskip_t": nrm((C,)),
            "res_map_w": nrm((t_o, t_i)), "res_map_b": nrm((t_o,)),
            "res_map_t_w": nrm((t_i, t_o)), "res_map_t_b": nrm((t_i,)),
            "skip_map_w": nrm((t_o, t_i)), "skip_map_b": nrm((t_o,)),
            "skip_map_t_w": nrm((t_i, t_o)), "skip_map_t_b": nrm((t_i,)),
            "bn_w": 1.0 + nrm((C,)), "bn_b": nrm((C,)),
            "bn_rm": nrm((C,)), "bn_rv": 1.0 + jnp.abs(nrm((C,))),
            "bn_t_w": 1.0 + nrm((C,)), "bn_t_b": nrm((C,)),
            "bn_t_rm": nrm((C,)), "bn_t_rv": 1.0 + jnp.abs(nrm((C,))),
            "Wgcn": nrm((C, 3 * C)), "bgcn": nrm((C,)),
            "Wgcn_t": nrm((C, 3 * C)), "bgcn_t": nrm((C,)),
        })
    p["layers"] = layers
    return p


def pack_params(p, cfg):
    """One-time re-layout of torch-style params for the fused kernel."""
    C, N, od = cfg["channels"], cfg["num_nodes"], cfg["out_dim"]
    L = cfg["blocks"] * cfg["layers"]
    rf = cfg["receptive_field"]
    TN = rf * N
    eps = 1e-5
    layers = p["layers"]
    eyeN = jnp.eye(N, dtype=jnp.float32)

    def col(v):
        return jnp.asarray(v, jnp.float32).reshape(-1, 1)

    def adj_kron(nv1, nv2):
        # support = I + softmax(relu(nv1 @ nv2), dim=1)   (exact softmax)
        adj = jnp.eye(N, dtype=jnp.float32) + jax.nn.softmax(
            jax.nn.relu(nv1 @ nv2), axis=1)
        return jnp.kron(jnp.eye(rf, dtype=jnp.float32), adj)

    def time_maps(wkey, bkey):
        # Linear over the time axis as a right matmul on the (C, T*N) layout:
        # kron(W^T, I_N) so that out[:, to*N+n] = sum_ti W[to,ti]*x[:, ti*N+n].
        M = jnp.zeros((L, TN, TN), jnp.float32)
        Bv = jnp.zeros((L, 1, TN), jnp.float32)
        for j, l in enumerate(layers):
            w = jnp.asarray(l[wkey], jnp.float32)
            b = jnp.asarray(l[bkey], jnp.float32)
            k = jnp.kron(w.T, eyeN)
            M = M.at[j, :k.shape[0], :k.shape[1]].set(k)
            Bv = Bv.at[j, 0, :b.shape[0] * N].set(jnp.repeat(b, N))
        return M, Bv

    def bn_fold(pref):
        s = [l[pref + "_w"] / jnp.sqrt(l[pref + "_rv"] + eps) for l in layers]
        sc = jnp.stack([col(v) for v in s])
        sh = jnp.stack([col(l[pref + "_b"] - l[pref + "_rm"] * v)
                        for l, v in zip(layers, s)])
        return sc, sh

    enc = {
        "in_w": jnp.asarray(p["start_conv_w"], jnp.float32),
        "in_b": col(p["start_conv_b"]),
        "Wfg": jnp.stack([jnp.concatenate([
            jnp.concatenate([l["Wf"][:, :, 0, 0], l["Wf"][:, :, 0, 1]], axis=1),
            jnp.concatenate([l["Wg"][:, :, 0, 0], l["Wg"][:, :, 0, 1]], axis=1)],
            axis=0) for l in layers]),                              # (L,2C,2C)
        "bfg": jnp.stack([col(jnp.concatenate([l["bf"], l["bg"]]))
                          for l in layers]),
        "Wsk": jnp.stack([l["Wskip"] for l in layers]),
        "bsk": jnp.stack([col(l["bskip"]) for l in layers]),
        "Wgc": jnp.stack([l["Wgcn"] for l in layers]),              # (L,C,3C)
        "bgc": jnp.stack([col(l["bgcn"]) for l in layers]),
        "out_w": jnp.asarray(p["end_conv_w"], jnp.float32),
        "out_b": col(p["end_conv_b"]),
    }
    enc["bn_s"], enc["bn_b"] = bn_fold("bn")
    enc["Mres"], enc["bres"] = time_maps("res_map_w", "res_map_b")
    enc["Msk"], enc["bskm"] = time_maps("skip_map_w", "skip_map_b")

    dec = {
        "in_w": jnp.asarray(p["end_conv_trans_w"], jnp.float32),    # (C, od)
        "in_b": col(p["end_conv_trans_b"]),
        "Wfg": jnp.stack([jnp.concatenate(
            [l["Wft"][:, :, 0, k].T, l["Wgt"][:, :, 0, k].T], axis=0)
            for l in layers for k in range(2)]),                    # (2L,2C,C)
        "bfg": jnp.stack([col(jnp.concatenate([l["bft"], l["bgt"]]))
                          for l in layers]),
        "Wsk": jnp.stack([l["Wskip_t"] for l in layers]),
        "bsk": jnp.stack([col(l["bskip_t"]) for l in layers]),
        "Wgc": jnp.stack([l["Wgcn_t"] for l in layers]),
        "bgc": jnp.stack([col(l["bgcn_t"]) for l in layers]),
        "out_w": jnp.asarray(p["start_conv_trans_w"], jnp.float32),
        "out_b": col(p["start_conv_trans_b"]),
    }
    dec["bn_s"], dec["bn_b"] = bn_fold("bn_t")
    dec["Mres"], dec["bres"] = time_maps("res_map_t_w", "res_map_t_b")
    dec["Msk"], dec["bskm"] = time_maps("skip_map_t_w", "skip_map_t_b")

    fc_flat = []
    for w, b in zip(p["fc_ws"], p["fc_bs"]):
        fc_flat += [jnp.asarray(w, jnp.float32).T,
                    jnp.asarray(b, jnp.float32).reshape(1, -1)]

    return {"enc": enc, "dec": dec, "fc": fc_flat,
            "adjK_enc": adj_kron(p["nodevec1"], p["nodevec2"]),
            "adjK_dec": adj_kron(p["nodevec1_t"], p["nodevec2_t"])}


# --------------------------------------------------------------------------
# Forward pass (stae_predict.forward, map_func='fc', eval mode)
# --------------------------------------------------------------------------
def stae_predict_forward(packed, inputs, cfg):
    N, rf = cfg["num_nodes"], cfg["receptive_field"]
    B = inputs.shape[0]
    x = inputs[:, 0, :, :].astype(jnp.float32)            # torch: inputs[:, :1]
    t_in = x.shape[-1]
    if t_in < rf:
        x = jnp.pad(x, ((0, 0), (0, 0), (rf - t_in, 0)))
        t_in = rf
    x = jnp.transpose(x, (0, 2, 1)).reshape(B, 1, t_in * N)   # lane = t*N + n

    out = _stae_call(x, packed, cfg)                           # (B, 1, T_d*N)
    t_dec = out.shape[-1] // N
    y = jnp.transpose(out.reshape(B, 1, t_dec, N), (0, 1, 3, 2))  # (B,1,N,T_d)
    if t_dec > cfg["seq_len"]:
        y = y[..., -cfg["seq_len"]:]
    return y[..., -cfg["horizon"]:]


# --------------------------------------------------------------------------
# Pure-JAX reference (mirrors the torch module op-by-op), used for validation
# --------------------------------------------------------------------------
def _reference_forward(params, inputs, cfg):
    N, od = cfg["num_nodes"], cfg["out_dim"]
    L = cfg["blocks"] * cfg["layers"]
    dil = cfg["dilations"]
    rf = cfg["receptive_field"]
    eps = 1e-5
    layers = params["layers"]

    def conv1x1(x, w, b):
        return jnp.einsum('oc,bcnt->bont', w, x) + b.reshape(1, -1, 1, 1)

    def lin_time(x, w, b):
        return jnp.einsum('ot,bcnt->bcno', w, x) + b.reshape(1, 1, 1, -1)

    def gcn(x, a, w, b):
        x1 = jnp.einsum('bcvt,vw->bcwt', x, a)
        x2 = jnp.einsum('bcvt,vw->bcwt', x1, a)
        h = jnp.concatenate([x, x1, x2], axis=1)
        return jnp.einsum('oc,bcnt->bont', w, h) + b.reshape(1, -1, 1, 1)

    def bn(x, w, bb, rm, rv):
        s = w / jnp.sqrt(rv + eps)
        return x * s.reshape(1, -1, 1, 1) + (bb - rm * s).reshape(1, -1, 1, 1)

    def adj_of(nv1, nv2):
        return (jnp.eye(N, dtype=jnp.float32)
                + jax.nn.softmax(jax.nn.relu(nv1 @ nv2), axis=1))

    # encoder
    x = inputs[:, :1, :, :].astype(jnp.float32)
    if x.shape[-1] < rf:
        x = jnp.pad(x, ((0, 0), (0, 0), (0, 0), (rf - x.shape[-1], 0)))
    adj = adj_of(params["nodevec1"], params["nodevec2"])
    x = conv1x1(x, params["start_conv_w"], params["start_conv_b"])
    skip = None
    for i in range(L):
        d = dil[i]
        l, lm = layers[i], layers[L - 1 - i]
        resid = x

        def dconv(w, b, r=resid, d=d):
            return (jnp.einsum('oc,bcnt->bont', w[:, :, 0, 0], r[..., :-d])
                    + jnp.einsum('oc,bcnt->bont', w[:, :, 0, 1], r[..., d:])
                    + b.reshape(1, -1, 1, 1))

        x = jnp.tanh(dconv(l["Wf"], l["bf"])) * jax.nn.sigmoid(dconv(l["Wg"], l["bg"]))
        s = conv1x1(x, l["Wskip"], l["bskip"])
        skip = s if skip is None else s + lin_time(skip, lm["skip_map_w"], lm["skip_map_b"])
        x = gcn(x, adj, l["Wgcn"], l["bgcn"])
        x = x + lin_time(resid, lm["res_map_w"], lm["res_map_b"])
        x = bn(x, l["bn_w"], l["bn_b"], l["bn_rm"], l["bn_rv"])
    hidden = conv1x1(skip, params["end_conv_w"], params["end_conv_b"])

    # fc bottleneck
    B = hidden.shape[0]
    hflat = hidden.reshape(B, -1)
    v = hflat
    for w, b in zip(params["fc_ws"], params["fc_bs"]):
        v = v @ w.T + b
    predict = (v + hflat).reshape(hidden.shape)

    # decoder
    adj_t = adj_of(params["nodevec1_t"], params["nodevec2_t"])
    y = (jnp.einsum('co,bont->bcnt', params["end_conv_trans_w"], predict)
         + params["end_conv_trans_b"].reshape(1, -1, 1, 1))
    skip = None
    for i in reversed(range(L)):
        d = dil[i]
        l, lm = layers[i], layers[L - 1 - i]
        resid = y

        def tconv(w, b, r=resid, d=d):
            y0 = jnp.einsum('co,bcnt->bont', w[:, :, 0, 0], r)
            y1 = jnp.einsum('co,bcnt->bont', w[:, :, 0, 1], r)
            z = jnp.zeros(y0.shape[:-1] + (d,), y0.dtype)
            return (jnp.concatenate([y0, z], axis=-1)
                    + jnp.concatenate([z, y1], axis=-1) + b.reshape(1, -1, 1, 1))

        y = jnp.tanh(tconv(l["Wft"], l["bft"])) * jax.nn.sigmoid(tconv(l["Wgt"], l["bgt"]))
        s = conv1x1(y, l["Wskip_t"], l["bskip_t"])
        skip = s if skip is None else s + lin_time(skip, lm["skip_map_t_w"], lm["skip_map_t_b"])
        y = gcn(y, adj_t, l["Wgcn_t"], l["bgcn_t"])
        y = y + lin_time(resid, lm["res_map_t_w"], lm["res_map_t_b"])
        y = bn(y, l["bn_t_w"], l["bn_t_b"], l["bn_t_rm"], l["bn_t_rv"])
    out = (jnp.einsum('oc,bcnt->bont', params["start_conv_trans_w"], skip)
           + params["start_conv_trans_b"].reshape(1, -1, 1, 1))
    if out.shape[-1] > cfg["seq_len"]:
        out = out[..., -cfg["seq_len"]:]
    return out[..., -cfg["horizon"]:]


# --------------------------------------------------------------------------
if __name__ == "__main__":
    cfg = dict(
        batch=2, in_dim=2,
        num_nodes=16, node_dim=8, channels=16, out_dim=2,
        blocks=2, layers=2, kernel_size=2,
        train_len=6, horizon=6, fc_layers=1,
    )
    dil, r_in, r_out, rf = build_layer_config(cfg["blocks"], cfg["layers"],
                                              cfg["kernel_size"])
    cfg.update(dilations=dil, res_in=r_in, res_out=r_out,
               receptive_field=rf, seq_len=cfg["train_len"])

    key = jax.random.PRNGKey(0)
    pkey, xkey = jax.random.split(key)
    params = init_params(pkey, cfg)
    packed = pack_params(params, cfg)
    inputs = jax.random.normal(
        xkey,
        (cfg["batch"], cfg["in_dim"], cfg["num_nodes"], cfg["train_len"]),
        dtype=jnp.float32)

    fwd = jax.jit(lambda pk, a: stae_predict_forward(pk, a, cfg))
    out = jax.block_until_ready(fwd(packed, inputs))

    assert out.shape == (cfg["batch"], 1, cfg["num_nodes"], cfg["horizon"]), out.shape
    assert bool(jnp.all(jnp.isfinite(out)))

    ref = _reference_forward(params, inputs, cfg)
    assert ref.shape == out.shape, (ref.shape, out.shape)
    assert bool(jnp.allclose(out, ref, atol=2e-2, rtol=2e-2)), \
        float(jnp.max(jnp.abs(out - ref)))

    print("KERNEL_OK")
</pallas_src>

<mosaic_0001>
module attributes {stable_mosaic.version = 11 : i64} {
  func.func @_stae_kernel(%arg0: i32, %arg1: memref<1x1x112xf32, #tpu.memory_space<vmem>>, %arg2: memref<112x112xf32, #tpu.memory_space<vmem>>, %arg3: memref<112x112xf32, #tpu.memory_space<vmem>>, %arg4: memref<16x1xf32, #tpu.memory_space<vmem>>, %arg5: memref<16x1xf32, #tpu.memory_space<vmem>>, %arg6: memref<4x32x32xf32, #tpu.memory_space<vmem>>, %arg7: memref<4x32x1xf32, #tpu.memory_space<vmem>>, %arg8: memref<4x16x16xf32, #tpu.memory_space<vmem>>, %arg9: memref<4x16x1xf32, #tpu.memory_space<vmem>>, %arg10: memref<4x16x48xf32, #tpu.memory_space<vmem>>, %arg11: memref<4x16x1xf32, #tpu.memory_space<vmem>>, %arg12: memref<4x16x1xf32, #tpu.memory_space<vmem>>, %arg13: memref<4x16x1xf32, #tpu.memory_space<vmem>>, %arg14: memref<4x112x112xf32, #tpu.memory_space<vmem>>, %arg15: memref<4x1x112xf32, #tpu.memory_space<vmem>>, %arg16: memref<4x112x112xf32, #tpu.memory_space<vmem>>, %arg17: memref<4x1x112xf32, #tpu.memory_space<vmem>>, %arg18: memref<2x16xf32, #tpu.memory_space<vmem>>, %arg19: memref<2x1xf32, #tpu.memory_space<vmem>>, %arg20: memref<32x16xf32, #tpu.memory_space<vmem>>, %arg21: memref<1x16xf32, #tpu.memory_space<vmem>>, %arg22: memref<16x32xf32, #tpu.memory_space<vmem>>, %arg23: memref<1x32xf32, #tpu.memory_space<vmem>>, %arg24: memref<16x2xf32, #tpu.memory_space<vmem>>, %arg25: memref<16x1xf32, #tpu.memory_space<vmem>>, %arg26: memref<8x32x16xf32, #tpu.memory_space<vmem>>, %arg27: memref<4x32x1xf32, #tpu.memory_space<vmem>>, %arg28: memref<4x16x16xf32, #tpu.memory_space<vmem>>, %arg29: memref<4x16x1xf32, #tpu.memory_space<vmem>>, %arg30: memref<4x16x48xf32, #tpu.memory_space<vmem>>, %arg31: memref<4x16x1xf32, #tpu.memory_space<vmem>>, %arg32: memref<4x16x1xf32, #tpu.memory_space<vmem>>, %arg33: memref<4x16x1xf32, #tpu.memory_space<vmem>>, %arg34: memref<4x112x112xf32, #tpu.memory_space<vmem>>, %arg35: memref<4x1x112xf32, #tpu.memory_space<vmem>>, %arg36: memref<4x112x112xf32, #tpu.memory_space<vmem>>, %arg37: memref<4x1x112xf32, #tpu.memory_space<vmem>>, %arg38: memref<1x16xf32, #tpu.memory_space<vmem>>, %arg39: memref<1x1xf32, #tpu.memory_space<vmem>>, %arg40: memref<1x1x112xf32, #tpu.memory_space<vmem>>) attributes {dimension_semantics = [#tpu.dimension_semantics<parallel>], iteration_bounds = array<i64: 2>, scalar_prefetch = 0 : i64, scratch_operands = 0 : i64, tpu.core_type = #tpu.core_type<tc>, window_params = [{transform_indices = @transform_0, window_bounds = array<i64: 1, 1, 112>}, {pipeline_mode = #tpu.pipeline_mode<synchronous>, transform_indices = @transform_1, window_bounds = array<i64: 112, 112>}, {pipeline_mode = #tpu.pipeline_mode<synchronous>, transform_indices = @transform_2, window_bounds = array<i64: 112, 112>}, {pipeline_mode = #tpu.pipeline_mode<synchronous>, transform_indices = @transform_3, window_bounds = array<i64: 16, 1>}, {pipeline_mode = #tpu.pipeline_mode<synchronous>, transform_indices = @transform_4, window_bounds = array<i64: 16, 1>}, {pipeline_mode = #tpu.pipeline_mode<synchronous>, transform_indices = @transform_5, window_bounds = array<i64: 4, 32, 32>}, {pipeline_mode = #tpu.pipeline_mode<synchronous>, transform_indices = @transform_6, window_bounds = array<i64: 4, 32, 1>}, {pipeline_mode = #tpu.pipeline_mode<synchronous>, transform_indices = @transform_7, window_bounds = array<i64: 4, 16, 16>}, {pipeline_mode = #tpu.pipeline_mode<synchronous>, transform_indices = @transform_8, window_bounds = array<i64: 4, 16, 1>}, {pipeline_mode = #tpu.pipeline_mode<synchronous>, transform_indices = @transform_9, window_bounds = array<i64: 4, 16, 48>}, {pipeline_mode = #tpu.pipeline_mode<synchronous>, transform_indices = @transform_10, window_bounds = array<i64: 4, 16, 1>}, {pipeline_mode = #tpu.pipeline_mode<synchronous>, transform_indices = @transform_11, window_bounds = array<i64: 4, 16, 1>}, {pipeline_mode = #tpu.pipeline_mode<synchronous>, transform_indices = @transform_12, window_bounds = array<i64: 4, 16, 1>}, {pipeline_mode = #tpu.pipeline_mode<synchronous>, transform_indices = @transform_13, window_bounds = array<i64: 4, 112, 112>}, {pipeline_mode = #tpu.pipeline_mode<synchronous>, transform_indices = @transform_14, window_bounds = array<i64: 4, 1, 112>}, {pipeline_mode = #tpu.pipeline_mode<synchronous>, transform_indices = @transform_15, window_bounds = array<i64: 4, 112, 112>}, {pipeline_mode = #tpu.pipeline_mode<synchronous>, transform_indices = @transform_16, window_bounds = array<i64: 4, 1, 112>}, {pipeline_mode = #tpu.pipeline_mode<synchronous>, transform_indices = @transform_17, window_bounds = array<i64: 2, 16>}, {pipeline_mode = #tpu.pipeline_mode<synchronous>, transform_indices = @transform_18, window_bounds = array<i64: 2, 1>}, {pipeline_mode = #tpu.pipeline_mode<synchronous>, transform_indices = @transform_19, window_bounds = array<i64: 32, 16>}, {pipeline_mode = #tpu.pipeline_mode<synchronous>, transform_indices = @transform_20, window_bounds = array<i64: 1, 16>}, {pipeline_mode = #tpu.pipeline_mode<synchronous>, transform_indices = @transform_21, window_bounds = array<i64: 16, 32>}, {pipeline_mode = #tpu.pipeline_mode<synchronous>, transform_indices = @transform_22, window_bounds = array<i64: 1, 32>}, {pipeline_mode = #tpu.pipeline_mode<synchronous>, transform_indices = @transform_23, window_bounds = array<i64: 16, 2>}, {pipeline_mode = #tpu.pipeline_mode<synchronous>, transform_indices = @transform_24, window_bounds = array<i64: 16, 1>}, {pipeline_mode = #tpu.pipeline_mode<synchronous>, transform_indices = @transform_25, window_bounds = array<i64: 8, 32, 16>}, {pipeline_mode = #tpu.pipeline_mode<synchronous>, transform_indices = @transform_26, window_bounds = array<i64: 4, 32, 1>}, {pipeline_mode = #tpu.pipeline_mode<synchronous>, transform_indices = @transform_27, window_bounds = array<i64: 4, 16, 16>}, {pipeline_mode = #tpu.pipeline_mode<synchronous>, transform_indices = @transform_28, window_bounds = array<i64: 4, 16, 1>}, {pipeline_mode = #tpu.pipeline_mode<synchronous>, transform_indices = @transform_29, window_bounds = array<i64: 4, 16, 48>}, {pipeline_mode = #tpu.pipeline_mode<synchronous>, transform_indices = @transform_30, window_bounds = array<i64: 4, 16, 1>}, {pipeline_mode = #tpu.pipeline_mode<synchronous>, transform_indices = @transform_31, window_bounds = array<i64: 4, 16, 1>}, {pipeline_mode = #tpu.pipeline_mode<synchronous>, transform_indices = @transform_32, window_bounds = array<i64: 4, 16, 1>}, {pipeline_mode = #tpu.pipeline_mode<synchronous>, transform_indices = @transform_33, window_bounds = array<i64: 4, 112, 112>}, {pipeline_mode = #tpu.pipeline_mode<synchronous>, transform_indices = @transform_34, window_bounds = array<i64: 4, 1, 112>}, {pipeline_mode = #tpu.pipeline_mode<synchronous>, transform_indices = @transform_35, window_bounds = array<i64: 4, 112, 112>}, {pipeline_mode = #tpu.pipeline_mode<synchronous>, transform_indices = @transform_36, window_bounds = array<i64: 4, 1, 112>}, {pipeline_mode = #tpu.pipeline_mode<synchronous>, transform_indices = @transform_37, window_bounds = array<i64: 1, 16>}, {pipeline_mode = #tpu.pipeline_mode<synchronous>, transform_indices = @transform_38, window_bounds = array<i64: 1, 1>}, {transform_indices = @transform_39, window_bounds = array<i64: 1, 1, 112>}]} {
    %c0 = arith.constant 0 : index
    %c0_0 = arith.constant 0 : index
    %c0_1 = arith.constant 0 : index
    %0 = vector.load %arg1[%c0, %c0_0, %c0_1] : memref<1x1x112xf32, #tpu.memory_space<vmem>>, vector<1x1x112xf32>
    %1 = vector.shape_cast %0 : vector<1x1x112xf32> to vector<1x112xf32>
    %c0_2 = arith.constant 0 : index
    %c0_3 = arith.constant 0 : index
    %2 = vector.load %arg4[%c0_2, %c0_3] : memref<16x1xf32, #tpu.memory_space<vmem>>, vector<16x1xf32>
    %3 = vector.broadcast %2 : vector<16x1xf32> to vector<16x112xf32>
    %4 = vector.broadcast %1 : vector<1x112xf32> to vector<16x112xf32>
    %5 = arith.mulf %3, %4 : vector<16x112xf32>
    %c0_4 = arith.constant 0 : index
    %c0_5 = arith.constant 0 : index
    %6 = vector.load %arg5[%c0_4, %c0_5] : memref<16x1xf32, #tpu.memory_space<vmem>>, vector<16x1xf32>
    %7 = vector.broadcast %6 : vector<16x1xf32> to vector<16x112xf32>
    %8 = arith.addf %5, %7 : vector<16x112xf32>
    %9 = vector.extract_strided_slice %8 {offsets = [0, 0], sizes = [16, 96], strides = [1, 1]} : vector<16x112xf32> to vector<16x96xf32>
    %10 = vector.extract_strided_slice %8 {offsets = [0, 16], sizes = [16, 96], strides = [1, 1]} : vector<16x112xf32> to vector<16x96xf32>
    %11 = tpu.concatenate %9, %10 in 0 : vector<16x96xf32>, vector<16x96xf32> -> vector<32x96xf32>
    %c0_6 = arith.constant 0 : index
    %c0_7 = arith.constant 0 : index
    %c0_8 = arith.constant 0 : index
    %12 = vector.load %arg6[%c0_6, %c0_7, %c0_8] : memref<4x32x32xf32, #tpu.memory_space<vmem>>, vector<1x32x32xf32>
    %13 = vector.shape_cast %12 : vector<1x32x32xf32> to vector<32x32xf32>
    %cst = arith.constant dense<0.000000e+00> : vector<32x96xf32>
    %14 = tpu.matmul %13, %11, %cst {dimension_numbers = #tpu.dot_dimension_numbers<[1], [0], [0], [1], [0, 0, 1, 1], [], []>} : vector<32x32xf32>, vector<32x96xf32>, vector<32x96xf32> -> vector<32x96xf32>
    %c0_9 = arith.constant 0 : index
    %c0_10 = arith.constant 0 : index
    %c0_11 = arith.constant 0 : index
    %15 = vector.load %arg7[%c0_9, %c0_10, %c0_11] : memref<4x32x1xf32, #tpu.memory_space<vmem>>, vector<1x32x1xf32>
    %16 = vector.shape_cast %15 : vector<1x32x1xf32> to vector<32x1xf32>
    %17 = vector.broadcast %16 : vector<32x1xf32> to vector<32x96xf32>
    %18 = arith.addf %14, %17 : vector<32x96xf32>
    %19 = vector.extract_strided_slice %18 {offsets = [0, 0], sizes = [16, 96], strides = [1, 1]} : vector<32x96xf32> to vector<16x96xf32>
    %20 = math.tanh %19 : vector<16x96xf32>
    %21 = vector.extract_strided_slice %18 {offsets = [16, 0], sizes = [16, 96], strides = [1, 1]} : vector<32x96xf32> to vector<16x96xf32>
    %22 = arith.negf %21 : vector<16x96xf32>
    %23 = math.exp %22 : vector<16x96xf32>
    %cst_12 = arith.constant 1.000000e+00 : f32
    %24 = vector.broadcast %cst_12 : f32 to vector<16x96xf32>
    %25 = arith.addf %24, %23 : vector<16x96xf32>
    %26 = arith.divf %24, %25 : vector<16x96xf32>
    %27 = arith.mulf %20, %26 : vector<16x96xf32>
    %c0_13 = arith.constant 0 : index
    %c0_14 = arith.constant 0 : index
    %c0_15 = arith.constant 0 : index
    %28 = vector.load %arg8[%c0_13, %c0_14, %c0_15] : memref<4x16x16xf32, #tpu.memory_space<vmem>>, vector<1x16x16xf32>
    %29 = vector.shape_cast %28 : vector<1x16x16xf32> to vector<16x16xf32>
    %cst_16 = arith.constant dense<0.000000e+00> : vector<16x96xf32>
    %30 = tpu.matmul %29, %27, %cst_16 {dimension_numbers = #tpu.dot_dimension_numbers<[1], [0], [0], [1], [0, 0, 1, 1], [], []>} : vector<16x16xf32>, vector<16x96xf32>, vector<16x96xf32> -> vector<16x96xf32>
    %c0_17 = arith.constant 0 : index
    %c0_18 = arith.constant 0 : index
    %c0_19 = arith.constant 0 : index
    %31 = vector.load %arg9[%c0_17, %c0_18, %c0_19] : memref<4x16x1xf32, #tpu.memory_space<vmem>>, vector<1x16x1xf32>
    %32 = vector.shape_cast %31 : vector<1x16x1xf32> to vector<16x1xf32>
    %33 = vector.broadcast %32 : vector<16x1xf32> to vector<16x96xf32>
    %34 = arith.addf %30, %33 : vector<16x96xf32>
    %c0_20 = arith.constant 0 : index
    %c0_21 = arith.constant 0 : index
    %35 = vector.load %arg2[%c0_20, %c0_21] : memref<112x112xf32, #tpu.memory_space<vmem>>, vector<96x96xf32>
    %cst_22 = arith.constant dense<0.000000e+00> : vector<16x96xf32>
    %36 = tpu.matmul %27, %35, %cst_22 {dimension_numbers = #tpu.dot_dimension_numbers<[1], [0], [0], [1], [0, 0, 1, 1], [], []>} : vector<16x96xf32>, vector<96x96xf32>, vector<16x96xf32> -> vector<16x96xf32>
    %cst_23 = arith.constant dense<0.000000e+00> : vector<16x96xf32>
    %37 = tpu.matmul %36, %35, %cst_23 {dimension_numbers = #tpu.dot_dimension_numbers<[1], [0], [0], [1], [0, 0, 1, 1], [], []>} : vector<16x96xf32>, vector<96x96xf32>, vector<16x96xf32> -> vector<16x96xf32>
    %38 = tpu.concatenate %27, %36, %37 in 0 : vector<16x96xf32>, vector<16x96xf32>, vector<16x96xf32> -> vector<48x96xf32>
    %c0_24 = arith.constant 0 : index
    %c0_25 = arith.constant 0 : index
    %c0_26 = arith.constant 0 : index
    %39 = vector.load %arg10[%c0_24, %c0_25, %c0_26] : memref<4x16x48xf32, #tpu.memory_space<vmem>>, vector<1x16x48xf32>
    %40 = vector.shape_cast %39 : vector<1x16x48xf32> to vector<16x48xf32>
    %cst_27 = arith.constant dense<0.000000e+00> : vector<16x96xf32>
    %41 = tpu.matmul %40, %38, %cst_27 {dimension_numbers = #tpu.dot_dimension_numbers<[1], [0], [0], [1], [0, 0, 1, 1], [], []>} : vector<16x48xf32>, vector<48x96xf32>, vector<16x96xf32> -> vector<16x96xf32>
    %c0_28 = arith.constant 0 : index
    %c0_29 = arith.constant 0 : index
    %c0_30 = arith.constant 0 : index
    %42 = vector.load %arg11[%c0_28, %c0_29, %c0_30] : memref<4x16x1xf32, #tpu.memory_space<vmem>>, vector<1x16x1xf32>
    %43 = vector.shape_cast %42 : vector<1x16x1xf32> to vector<16x1xf32>
    %44 = vector.broadcast %43 : vector<16x1xf32> to vector<16x96xf32>
    %45 = arith.addf %41, %44 : vector<16x96xf32>
    %c3 = arith.constant 3 : index
    %c0_31 = arith.constant 0 : index
    %c0_32 = arith.constant 0 : index
    %46 = vector.load %arg14[%c3, %c0_31, %c0_32] : memref<4x112x112xf32, #tpu.memory_space<vmem>>, vector<1x112x96xf32>
    %47 = vector.shape_cast %46 : vector<1x112x96xf32> to vector<112x96xf32>
    %cst_33 = arith.constant dense<0.000000e+00> : vector<16x96xf32>
    %48 = tpu.matmul %8, %47, %cst_33 {dimension_numbers = #tpu.dot_dimension_numbers<[1], [0], [0], [1], [0, 0, 1, 1], [], []>} : vector<16x112xf32>, vector<112x96xf32>, vector<16x96xf32> -> vector<16x96xf32>
    %49 = arith.addf %45, %48 : vector<16x96xf32>
    %c3_34 = arith.constant 3 : index
    %c0_35 = arith.constant 0 : index
    %c0_36 = arith.constant 0 : index
    %50 = vector.load %arg15[%c3_34, %c0_35, %c0_36] : memref<4x1x112xf32, #tpu.memory_space<vmem>>, vector<1x1x96xf32>
    %51 = vector.shape_cast %50 : vector<1x1x96xf32> to vector<1x96xf32>
    %52 = vector.broadcast %51 : vector<1x96xf32> to vector<16x96xf32>
    %53 = arith.addf %49, %52 : vector<16x96xf32>
    %c0_37 = arith.constant 0 : index
    %c0_38 = arith.constant 0 : index
    %c0_39 = arith.constant 0 : index
    %54 = vector.load %arg12[%c0_37, %c0_38, %c0_39] : memref<4x16x1xf32, #tpu.memory_space<vmem>>, vector<1x16x1xf32>
    %55 = vector.shape_cast %54 : vector<1x16x1xf32> to vector<16x1xf32>
    %56 = vector.broadcast %55 : vector<16x1xf32> to vector<16x96xf32>
    %57 = arith.mulf %53, %56 : vector<16x96xf32>
    %c0_40 = arith.constant 0 : index
    %c0_41 = arith.constant 0 : index
    %c0_42 = arith.constant 0 : index
    %58 = vector.load %arg13[%c0_40, %c0_41, %c0_42] : memref<4x16x1xf32, #tpu.memory_space<vmem>>, vector<1x16x1xf32>
    %59 = vector.shape_cast %58 : vector<1x16x1xf32> to vector<16x1xf32>
    %60 = vector.broadcast %59 : vector<16x1xf32> to vector<16x96xf32>
    %61 = arith.addf %57, %60 : vector<16x96xf32>
    %62 = vector.extract_strided_slice %61 {offsets = [0, 0], sizes = [16, 64], strides = [1, 1]} : vector<16x96xf32> to vector<16x64xf32>
    %63 = vector.extract_strided_slice %61 {offsets = [0, 32], sizes = [16, 64], strides = [1, 1]} : vector<16x96xf32> to vector<16x64xf32>
    %64 = tpu.concatenate %62, %63 in 0 : vector<16x64xf32>, vector<16x64xf32> -> vector<32x64xf32>
    %c1 = arith.constant 1 : index
    %c0_43 = arith.constant 0 : index
    %c0_44 = arith.constant 0 : index
    %65 = vector.load %arg6[%c1, %c0_43, %c0_44] : memref<4x32x32xf32, #tpu.memory_space<vmem>>, vector<1x32x32xf32>
    %66 = vector.shape_cast %65 : vector<1x32x32xf32> to vector<32x32xf32>
    %cst_45 = arith.constant dense<0.000000e+00> : vector<32x64xf32>
    %67 = tpu.matmul %66, %64, %cst_45 {dimension_numbers = #tpu.dot_dimension_numbers<[1], [0], [0], [1], [0, 0, 1, 1], [], []>} : vector<32x32xf32>, vector<32x64xf32>, vector<32x64xf32> -> vector<32x64xf32>
    %c1_46 = arith.constant 1 : index
    %c0_47 = arith.constant 0 : index
    %c0_48 = arith.constant 0 : index
    %68 = vector.load %arg7[%c1_46, %c0_47, %c0_48] : memref<4x32x1xf32, #tpu.memory_space<vmem>>, vector<1x32x1xf32>
    %69 = vector.shape_cast %68 : vector<1x32x1xf32> to vector<32x1xf32>
    %70 = vector.broadcast %69 : vector<32x1xf32> to vector<32x64xf32>
    %71 = arith.addf %67, %70 : vector<32x64xf32>
    %72 = vector.extract_strided_slice %71 {offsets = [0, 0], sizes = [16, 64], strides = [1, 1]} : vector<32x64xf32> to vector<16x64xf32>
    %73 = math.tanh %72 : vector<16x64xf32>
    %74 = vector.extract_strided_slice %71 {offsets = [16, 0], sizes = [16, 64], strides = [1, 1]} : vector<32x64xf32> to vector<16x64xf32>
    %75 = arith.negf %74 : vector<16x64xf32>
    %76 = math.exp %75 : vector<16x64xf32>
    %cst_49 = arith.constant 1.000000e+00 : f32
    %77 = vector.broadcast %cst_49 : f32 to vector<16x64xf32>
    %78 = arith.addf %77, %76 : vector<16x64xf32>
    %79 = arith.divf %77, %78 : vector<16x64xf32>
    %80 = arith.mulf %73, %79 : vector<16x64xf32>
    %c1_50 = arith.constant 1 : index
    %c0_51 = arith.constant 0 : index
    %c0_52 = arith.constant 0 : index
    %81 = vector.load %arg8[%c1_50, %c0_51, %c0_52] : memref<4x16x16xf32, #tpu.memory_space<vmem>>, vector<1x16x16xf32>
    %82 = vector.shape_cast %81 : vector<1x16x16xf32> to vector<16x16xf32>
    %cst_53 = arith.constant dense<0.000000e+00> : vector<16x64xf32>
    %83 = tpu.matmul %82, %80, %cst_53 {dimension_numbers = #tpu.dot_dimension_numbers<[1], [0], [0], [1], [0, 0, 1, 1], [], []>} : vector<16x16xf32>, vector<16x64xf32>, vector<16x64xf32> -> vector<16x64xf32>
    %c1_54 = arith.constant 1 : index
    %c0_55 = arith.constant 0 : index
    %c0_56 = arith.constant 0 : index
    %84 = vector.load %arg9[%c1_54, %c0_55, %c0_56] : memref<4x16x1xf32, #tpu.memory_space<vmem>>, vector<1x16x1xf32>
    %85 = vector.shape_cast %84 : vector<1x16x1xf32> to vector<16x1xf32>
    %86 = vector.broadcast %85 : vector<16x1xf32> to vector<16x64xf32>
    %87 = arith.addf %83, %86 : vector<16x64xf32>
    %c2 = arith.constant 2 : index
    %c0_57 = arith.constant 0 : index
    %c0_58 = arith.constant 0 : index
    %88 = vector.load %arg16[%c2, %c0_57, %c0_58] : memref<4x112x112xf32, #tpu.memory_space<vmem>>, vector<1x96x64xf32>
    %89 = vector.shape_cast %88 : vector<1x96x64xf32> to vector<96x64xf32>
    %cst_59 = arith.constant dense<0.000000e+00> : vector<16x64xf32>
    %90 = tpu.matmul %34, %89, %cst_59 {dimension_numbers = #tpu.dot_dimension_numbers<[1], [0], [0], [1], [0, 0, 1, 1], [], []>} : vector<16x96xf32>, vector<96x64xf32>, vector<16x64xf32> -> vector<16x64xf32>
    %91 = arith.addf %87, %90 : vector<16x64xf32>
    %c2_60 = arith.constant 2 : index
    %c0_61 = arith.constant 0 : index
    %c0_62 = arith.constant 0 : index
    %92 = vector.load %arg17[%c2_60, %c0_61, %c0_62] : memref<4x1x112xf32, #tpu.memory_space<vmem>>, vector<1x1x64xf32>
    %93 = vector.shape_cast %92 : vector<1x1x64xf32> to vector<1x64xf32>
    %94 = vector.broadcast %93 : vector<1x64xf32> to vector<16x64xf32>
    %95 = arith.addf %91, %94 : vector<16x64xf32>
    %c0_63 = arith.constant 0 : index
    %c0_64 = arith.constant 0 : index
    %96 = vector.load %arg2[%c0_63, %c0_64] : memref<112x112xf32, #tpu.memory_space<vmem>>, vector<64x64xf32>
    %cst_65 = arith.constant dense<0.000000e+00> : vector<16x64xf32>
    %97 = tpu.matmul %80, %96, %cst_65 {dimension_numbers = #tpu.dot_dimension_numbers<[1], [0], [0], [1], [0, 0, 1, 1], [], []>} : vector<16x64xf32>, vector<64x64xf32>, vector<16x64xf32> -> vector<16x64xf32>
    %cst_66 = arith.constant dense<0.000000e+00> : vector<16x64xf32>
    %98 = tpu.matmul %97, %96, %cst_66 {dimension_numbers = #tpu.dot_dimension_numbers<[1], [0], [0], [1], [0, 0, 1, 1], [], []>} : vector<16x64xf32>, vector<64x64xf32>, vector<16x64xf32> -> vector<16x64xf32>
    %99 = tpu.concatenate %80, %97, %98 in 0 : vector<16x64xf32>, vector<16x64xf32>, vector<16x64xf32> -> vector<48x64xf32>
    %c1_67 = arith.constant 1 : index
    %c0_68 = arith.constant 0 : index
    %c0_69 = arith.constant 0 : index
    %100 = vector.load %arg10[%c1_67, %c0_68, %c0_69] : memref<4x16x48xf32, #tpu.memory_space<vmem>>, vector<1x16x48xf32>
    %101 = vector.shape_cast %100 : vector<1x16x48xf32> to vector<16x48xf32>
    %cst_70 = arith.constant dense<0.000000e+00> : vector<16x64xf32>
    %102 = tpu.matmul %101, %99, %cst_70 {dimension_numbers = #tpu.dot_dimension_numbers<[1], [0], [0], [1], [0, 0, 1, 1], [], []>} : vector<16x48xf32>, vector<48x64xf32>, vector<16x64xf32> -> vector<16x64xf32>
    %c1_71 = arith.constant 1 : index
    %c0_72 = arith.constant 0 : index
    %c0_73 = arith.constant 0 : index
    %103 = vector.load %arg11[%c1_71, %c0_72, %c0_73] : memref<4x16x1xf32, #tpu.memory_space<vmem>>, vector<1x16x1xf32>
    %104 = vector.shape_cast %103 : vector<1x16x1xf32> to vector<16x1xf32>
    %105 = vector.broadcast %104 : vector<16x1xf32> to vector<16x64xf32>
    %106 = arith.addf %102, %105 : vector<16x64xf32>
    %c2_74 = arith.constant 2 : index
    %c0_75 = arith.constant 0 : index
    %c0_76 = arith.constant 0 : index
    %107 = vector.load %arg14[%c2_74, %c0_75, %c0_76] : memref<4x112x112xf32, #tpu.memory_space<vmem>>, vector<1x96x64xf32>
    %108 = vector.shape_cast %107 : vector<1x96x64xf32> to vector<96x64xf32>
    %cst_77 = arith.constant dense<0.000000e+00> : vector<16x64xf32>
    %109 = tpu.matmul %61, %108, %cst_77 {dimension_numbers = #tpu.dot_dimension_numbers<[1], [0], [0], [1], [0, 0, 1, 1], [], []>} : vector<16x96xf32>, vector<96x64xf32>, vector<16x64xf32> -> vector<16x64xf32>
    %110 = arith.addf %106, %109 : vector<16x64xf32>
    %c2_78 = arith.constant 2 : index
    %c0_79 = arith.constant 0 : index
    %c0_80 = arith.constant 0 : index
    %111 = vector.load %arg15[%c2_78, %c0_79, %c0_80] : memref<4x1x112xf32, #tpu.memory_space<vmem>>, vector<1x1x64xf32>
    %112 = vector.shape_cast %111 : vector<1x1x64xf32> to vector<1x64xf32>
    %113 = vector.broadcast %112 : vector<1x64xf32> to vector<16x64xf32>
    %114 = arith.addf %110, %113 : vector<16x64xf32>
    %c1_81 = arith.constant 1 : index
    %c0_82 = arith.constant 0 : index
    %c0_83 = arith.constant 0 : index
    %115 = vector.load %arg12[%c1_81, %c0_82, %c0_83] : memref<4x16x1xf32, #tpu.memory_space<vmem>>, vector<1x16x1xf32>
    %116 = vector.shape_cast %115 : vector<1x16x1xf32> to vector<16x1xf32>
    %117 = vector.broadcast %116 : vector<16x1xf32> to vector<16x64xf32>
    %118 = arith.mulf %114, %117 : vector<16x64xf32>
    %c1_84 = arith.constant 1 : index
    %c0_85 = arith.constant 0 : index
    %c0_86 = arith.constant 0 : index
    %119 = vector.load %arg13[%c1_84, %c0_85, %c0_86] : memref<4x16x1xf32, #tpu.memory_space<vmem>>, vector<1x16x1xf32>
    %120 = vector.shape_cast %119 : vector<1x16x1xf32> to vector<16x1xf32>
    %121 = vector.broadcast %120 : vector<16x1xf32> to vector<16x64xf32>
    %122 = arith.addf %118, %121 : vector<16x64xf32>
    %123 = vector.extract_strided_slice %122 {offsets = [0, 0], sizes = [16, 48], strides = [1, 1]} : vector<16x64xf32> to vector<16x48xf32>
    %124 = vector.extract_strided_slice %122 {offsets = [0, 16], sizes = [16, 48], strides = [1, 1]} : vector<16x64xf32> to vector<16x48xf32>
    %125 = tpu.concatenate %123, %124 in 0 : vector<16x48xf32>, vector<16x48xf32> -> vector<32x48xf32>
    %c2_87 = arith.constant 2 : index
    %c0_88 = arith.constant 0 : index
    %c0_89 = arith.constant 0 : index
    %126 = vector.load %arg6[%c2_87, %c0_88, %c0_89] : memref<4x32x32xf32, #tpu.memory_space<vmem>>, vector<1x32x32xf32>
    %127 = vector.shape_cast %126 : vector<1x32x32xf32> to vector<32x32xf32>
    %cst_90 = arith.constant dense<0.000000e+00> : vector<32x48xf32>
    %128 = tpu.matmul %127, %125, %cst_90 {dimension_numbers = #tpu.dot_dimension_numbers<[1], [0], [0], [1], [0, 0, 1, 1], [], []>} : vector<32x32xf32>, vector<32x48xf32>, vector<32x48xf32> -> vector<32x48xf32>
    %c2_91 = arith.constant 2 : index
    %c0_92 = arith.constant 0 : index
    %c0_93 = arith.constant 0 : index
    %129 = vector.load %arg7[%c2_91, %c0_92, %c0_93] : memref<4x32x1xf32, #tpu.memory_space<vmem>>, vector<1x32x1xf32>
    %130 = vector.shape_cast %129 : vector<1x32x1xf32> to vector<32x1xf32>
    %131 = vector.broadcast %130 : vector<32x1xf32> to vector<32x48xf32>
    %132 = arith.addf %128, %131 : vector<32x48xf32>
    %133 = vector.extract_strided_slice %132 {offsets = [0, 0], sizes = [16, 48], strides = [1, 1]} : vector<32x48xf32> to vector<16x48xf32>
    %134 = math.tanh %133 : vector<16x48xf32>
    %135 = vector.extract_strided_slice %132 {offsets = [16, 0], sizes = [16, 48], strides = [1, 1]} : vector<32x48xf32> to vector<16x48xf32>
    %136 = arith.negf %135 : vector<16x48xf32>
    %137 = math.exp %136 : vector<16x48xf32>
    %cst_94 = arith.constant 1.000000e+00 : f32
    %138 = vector.broadcast %cst_94 : f32 to vector<16x48xf32>
    %139 = arith.addf %138, %137 : vector<16x48xf32>
    %140 = arith.divf %138, %139 : vector<16x48xf32>
    %141 = arith.mulf %134, %140 : vector<16x48xf32>
    %c2_95 = arith.constant 2 : index
    %c0_96 = arith.constant 0 : index
    %c0_97 = arith.constant 0 : index
    %142 = vector.load %arg8[%c2_95, %c0_96, %c0_97] : memref<4x16x16xf32, #tpu.memory_space<vmem>>, vector<1x16x16xf32>
    %143 = vector.shape_cast %142 : vector<1x16x16xf32> to vector<16x16xf32>
    %cst_98 = arith.constant dense<0.000000e+00> : vector<16x48xf32>
    %144 = tpu.matmul %143, %141, %cst_98 {dimension_numbers = #tpu.dot_dimension_numbers<[1], [0], [0], [1], [0, 0, 1, 1], [], []>} : vector<16x16xf32>, vector<16x48xf32>, vector<16x48xf32> -> vector<16x48xf32>
    %c2_99 = arith.constant 2 : index
    %c0_100 = arith.constant 0 : index
    %c0_101 = arith.constant 0 : index
    %145 = vector.load %arg9[%c2_99, %c0_100, %c0_101] : memref<4x16x1xf32, #tpu.memory_space<vmem>>, vector<1x16x1xf32>
    %146 = vector.shape_cast %145 : vector<1x16x1xf32> to vector<16x1xf32>
    %147 = vector.broadcast %146 : vector<16x1xf32> to vector<16x48xf32>
    %148 = arith.addf %144, %147 : vector<16x48xf32>
    %c1_102 = arith.constant 1 : index
    %c0_103 = arith.constant 0 : index
    %c0_104 = arith.constant 0 : index
    %149 = vector.load %arg16[%c1_102, %c0_103, %c0_104] : memref<4x112x112xf32, #tpu.memory_space<vmem>>, vector<1x64x48xf32>
    %150 = vector.shape_cast %149 : vector<1x64x48xf32> to vector<64x48xf32>
    %cst_105 = arith.constant dense<0.000000e+00> : vector<16x48xf32>
    %151 = tpu.matmul %95, %150, %cst_105 {dimension_numbers = #tpu.dot_dimension_numbers<[1], [0], [0], [1], [0, 0, 1, 1], [], []>} : vector<16x64xf32>, vector<64x48xf32>, vector<16x48xf32> -> vector<16x48xf32>
    %152 = arith.addf %148, %151 : vector<16x48xf32>
    %c1_106 = arith.constant 1 : index
    %c0_107 = arith.constant 0 : index
    %c0_108 = arith.constant 0 : index
    %153 = vector.load %arg17[%c1_106, %c0_107, %c0_108] : memref<4x1x112xf32, #tpu.memory_space<vmem>>, vector<1x1x48xf32>
    %154 = vector.shape_cast %153 : vector<1x1x48xf32> to vector<1x48xf32>
    %155 = vector.broadcast %154 : vector<1x48xf32> to vector<16x48xf32>
    %156 = arith.addf %152, %155 : vector<16x48xf32>
    %c0_109 = arith.constant 0 : index
    %c0_110 = arith.constant 0 : index
    %157 = vector.load %arg2[%c0_109, %c0_110] : memref<112x112xf32, #tpu.memory_space<vmem>>, vector<48x48xf32>
    %cst_111 = arith.constant dense<0.000000e+00> : vector<16x48xf32>
    %158 = tpu.matmul %141, %157, %cst_111 {dimension_numbers = #tpu.dot_dimension_numbers<[1], [0], [0], [1], [0, 0, 1, 1], [], []>} : vector<16x48xf32>, vector<48x48xf32>, vector<16x48xf32> -> vector<16x48xf32>
    %cst_112 = arith.constant dense<0.000000e+00> : vector<16x48xf32>
    %159 = tpu.matmul %158, %157, %cst_112 {dimension_numbers = #tpu.dot_dimension_numbers<[1], [0], [0], [1], [0, 0, 1, 1], [], []>} : vector<16x48xf32>, vector<48x48xf32>, vector<16x48xf32> -> vector<16x48xf32>
    %160 = tpu.concatenate %141, %158, %159 in 0 : vector<16x48xf32>, vector<16x48xf32>, vector<16x48xf32> -> vector<48x48xf32>
    %c2_113 = arith.constant 2 : index
    %c0_114 = arith.constant 0 : index
    %c0_115 = arith.constant 0 : index
    %161 = vector.load %arg10[%c2_113, %c0_114, %c0_115] : memref<4x16x48xf32, #tpu.memory_space<vmem>>, vector<1x16x48xf32>
    %162 = vector.shape_cast %161 : vector<1x16x48xf32> to vector<16x48xf32>
    %cst_116 = arith.constant dense<0.000000e+00> : vector<16x48xf32>
    %163 = tpu.matmul %162, %160, %cst_116 {dimension_numbers = #tpu.dot_dimension_numbers<[1], [0], [0], [1], [0, 0, 1, 1], [], []>} : vector<16x48xf32>, vector<48x48xf32>, vector<16x48xf32> -> vector<16x48xf32>
    %c2_117 = arith.constant 2 : index
    %c0_118 = arith.constant 0 : index
    %c0_119 = arith.constant 0 : index
    %164 = vector.load %arg11[%c2_117, %c0_118, %c0_119] : memref<4x16x1xf32, #tpu.memory_space<vmem>>, vector<1x16x1xf32>
    %165 = vector.shape_cast %164 : vector<1x16x1xf32> to vector<16x1xf32>
    %166 = vector.broadcast %165 : vector<16x1xf32> to vector<16x48xf32>
    %167 = arith.addf %163, %166 : vector<16x48xf32>
    %c1_120 = arith.constant 1 : index
    %c0_121 = arith.constant 0 : index
    %c0_122 = arith.constant 0 : index
    %168 = vector.load %arg14[%c1_120, %c0_121, %c0_122] : memref<4x112x112xf32, #tpu.memory_space<vmem>>, vector<1x64x48xf32>
    %169 = vector.shape_cast %168 : vector<1x64x48xf32> to vector<64x48xf32>
    %cst_123 = arith.constant dense<0.000000e+00> : vector<16x48xf32>
    %170 = tpu.matmul %122, %169, %cst_123 {dimension_numbers = #tpu.dot_dimension_numbers<[1], [0], [0], [1], [0, 0, 1, 1], [], []>} : vector<16x64xf32>, vector<64x48xf32>, vector<16x48xf32> -> vector<16x48xf32>
    %171 = arith.addf %167, %170 : vector<16x48xf32>
    %c1_124 = arith.constant 1 : index
    %c0_125 = arith.constant 0 : index
    %c0_126 = arith.constant 0 : index
    %172 = vector.load %arg15[%c1_124, %c0_125, %c0_126] : memref<4x1x112xf32, #tpu.memory_space<vmem>>, vector<1x1x48xf32>
    %173 = vector.shape_cast %172 : vector<1x1x48xf32> to vector<1x48xf32>
    %174 = vector.broadcast %173 : vector<1x48xf32> to vector<16x48xf32>
    %175 = arith.addf %171, %174 : vector<16x48xf32>
    %c2_127 = arith.constant 2 : index
    %c0_128 = arith.constant 0 : index
    %c0_129 = arith.constant 0 : index
    %176 = vector.load %arg12[%c2_127, %c0_128, %c0_129] : memref<4x16x1xf32, #tpu.memory_space<vmem>>, vector<1x16x1xf32>
    %177 = vector.shape_cast %176 : vector<1x16x1xf32> to vector<16x1xf32>
    %178 = vector.broadcast %177 : vector<16x1xf32> to vector<16x48xf32>
    %179 = arith.mulf %175, %178 : vector<16x48xf32>
    %c2_130 = arith.constant 2 : index
    %c0_131 = arith.constant 0 : index
    %c0_132 = arith.constant 0 : index
    %180 = vector.load %arg13[%c2_130, %c0_131, %c0_132] : memref<4x16x1xf32, #tpu.memory_space<vmem>>, vector<1x16x1xf32>
    %181 = vector.shape_cast %180 : vector<1x16x1xf32> to vector<16x1xf32>
    %182 = vector.broadcast %181 : vector<16x1xf32> to vector<16x48xf32>
    %183 = arith.addf %179, %182 : vector<16x48xf32>
    %184 = vector.extract_strided_slice %183 {offsets = [0, 0], sizes = [16, 16], strides = [1, 1]} : vector<16x48xf32> to vector<16x16xf32>
    %185 = vector.extract_strided_slice %183 {offsets = [0, 32], sizes = [16, 16], strides = [1, 1]} : vector<16x48xf32> to vector<16x16xf32>
    %186 = tpu.concatenate %184, %185 in 0 : vector<16x16xf32>, vector<16x16xf32> -> vector<32x16xf32>
    %c3_133 = arith.constant 3 : index
    %c0_134 = arith.constant 0 : index
    %c0_135 = arith.constant 0 : index
    %187 = vector.load %arg6[%c3_133, %c0_134, %c0_135] : memref<4x32x32xf32, #tpu.memory_space<vmem>>, vector<1x32x32xf32>
    %188 = vector.shape_cast %187 : vector<1x32x32xf32> to vector<32x32xf32>
    %cst_136 = arith.constant dense<0.000000e+00> : vector<32x16xf32>
    %189 = tpu.matmul %188, %186, %cst_136 {dimension_numbers = #tpu.dot_dimension_numbers<[1], [0], [0], [1], [0, 0, 1, 1], [], []>} : vector<32x32xf32>, vector<32x16xf32>, vector<32x16xf32> -> vector<32x16xf32>
    %c3_137 = arith.constant 3 : index
    %c0_138 = arith.constant 0 : index
    %c0_139 = arith.constant 0 : index
    %190 = vector.load %arg7[%c3_137, %c0_138, %c0_139] : memref<4x32x1xf32, #tpu.memory_space<vmem>>, vector<1x32x1xf32>
    %191 = vector.shape_cast %190 : vector<1x32x1xf32> to vector<32x1xf32>
    %192 = vector.broadcast %191 : vector<32x1xf32> to vector<32x16xf32>
    %193 = arith.addf %189, %192 : vector<32x16xf32>
    %194 = vector.extract_strided_slice %193 {offsets = [0, 0], sizes = [16, 16], strides = [1, 1]} : vector<32x16xf32> to vector<16x16xf32>
    %195 = math.tanh %194 : vector<16x16xf32>
    %196 = vector.extract_strided_slice %193 {offsets = [16, 0], sizes = [16, 16], strides = [1, 1]} : vector<32x16xf32> to vector<16x16xf32>
    %197 = arith.negf %196 : vector<16x16xf32>
    %198 = math.exp %197 : vector<16x16xf32>
    %cst_140 = arith.constant 1.000000e+00 : f32
    %199 = vector.broadcast %cst_140 : f32 to vector<16x16xf32>
    %200 = arith.addf %199, %198 : vector<16x16xf32>
    %201 = arith.divf %199, %200 : vector<16x16xf32>
    %202 = arith.mulf %195, %201 : vector<16x16xf32>
    %c3_141 = arith.constant 3 : index
    %c0_142 = arith.constant 0 : index
    %c0_143 = arith.constant 0 : index
    %203 = vector.load %arg8[%c3_141, %c0_142, %c0_143] : memref<4x16x16xf32, #tpu.memory_space<vmem>>, vector<1x16x16xf32>
    %204 = vector.shape_cast %203 : vector<1x16x16xf32> to vector<16x16xf32>
    %cst_144 = arith.constant dense<0.000000e+00> : vector<16x16xf32>
    %205 = tpu.matmul %204, %202, %cst_144 {dimension_numbers = #tpu.dot_dimension_numbers<[1], [0], [0], [1], [0, 0, 1, 1], [], []>} : vector<16x16xf32>, vector<16x16xf32>, vector<16x16xf32> -> vector<16x16xf32>
    %c3_145 = arith.constant 3 : index
    %c0_146 = arith.constant 0 : index
    %c0_147 = arith.constant 0 : index
    %206 = vector.load %arg9[%c3_145, %c0_146, %c0_147] : memref<4x16x1xf32, #tpu.memory_space<vmem>>, vector<1x16x1xf32>
    %207 = vector.shape_cast %206 : vector<1x16x1xf32> to vector<16x1xf32>
    %208 = vector.broadcast %207 : vector<16x1xf32> to vector<16x16xf32>
    %209 = arith.addf %205, %208 : vector<16x16xf32>
    %c0_148 = arith.constant 0 : index
    %c0_149 = arith.constant 0 : index
    %c0_150 = arith.constant 0 : index
    %210 = vector.load %arg16[%c0_148, %c0_149, %c0_150] : memref<4x112x112xf32, #tpu.memory_space<vmem>>, vector<1x48x16xf32>
    %211 = vector.shape_cast %210 : vector<1x48x16xf32> to vector<48x16xf32>
    %cst_151 = arith.constant dense<0.000000e+00> : vector<16x16xf32>
    %212 = tpu.matmul %156, %211, %cst_151 {dimension_numbers = #tpu.dot_dimension_numbers<[1], [0], [0], [1], [0, 0, 1, 1], [], []>} : vector<16x48xf32>, vector<48x16xf32>, vector<16x16xf32> -> vector<16x16xf32>
    %213 = arith.addf %209, %212 : vector<16x16xf32>
    %c0_152 = arith.constant 0 : index
    %c0_153 = arith.constant 0 : index
    %c0_154 = arith.constant 0 : index
    %214 = vector.load %arg17[%c0_152, %c0_153, %c0_154] : memref<4x1x112xf32, #tpu.memory_space<vmem>>, vector<1x1x16xf32>
    %215 = vector.shape_cast %214 : vector<1x1x16xf32> to vector<1x16xf32>
    %216 = vector.broadcast %215 : vector<1x16xf32> to vector<16x16xf32>
    %217 = arith.addf %213, %216 : vector<16x16xf32>
    %c0_155 = arith.constant 0 : index
    %c0_156 = arith.constant 0 : index
    %218 = vector.load %arg18[%c0_155, %c0_156] : memref<2x16xf32, #tpu.memory_space<vmem>>, vector<2x16xf32>
    %cst_157 = arith.constant dense<0.000000e+00> : vector<2x16xf32>
    %219 = tpu.matmul %218, %217, %cst_157 {dimension_numbers = #tpu.dot_dimension_numbers<[1], [0], [0], [1], [0, 0, 1, 1], [], []>} : vector<2x16xf32>, vector<16x16xf32>, vector<2x16xf32> -> vector<2x16xf32>
    %c0_158 = arith.constant 0 : index
    %c0_159 = arith.constant 0 : index
    %220 = vector.load %arg19[%c0_158, %c0_159] : memref<2x1xf32, #tpu.memory_space<vmem>>, vector<2x1xf32>
    %221 = vector.broadcast %220 : vector<2x1xf32> to vector<2x16xf32>
    %222 = arith.addf %219, %221 : vector<2x16xf32>
    %223 = vector.extract_strided_slice %222 {offsets = [0, 0], sizes = [1, 16], strides = [1, 1]} : vector<2x16xf32> to vector<1x16xf32>
    %224 = vector.extract_strided_slice %222 {offsets = [1, 0], sizes = [1, 16], strides = [1, 1]} : vector<2x16xf32> to vector<1x16xf32>
    %225 = tpu.concatenate %223, %224 in 1 : vector<1x16xf32>, vector<1x16xf32> -> vector<1x32xf32>
    %c0_160 = arith.constant 0 : index
    %c0_161 = arith.constant 0 : index
    %226 = vector.load %arg20[%c0_160, %c0_161] : memref<32x16xf32, #tpu.memory_space<vmem>>, vector<32x16xf32>
    %cst_162 = arith.constant dense<0.000000e+00> : vector<1x16xf32>
    %227 = tpu.matmul %225, %226, %cst_162 {dimension_numbers = #tpu.dot_dimension_numbers<[1], [0], [0], [1], [0, 0, 1, 1], [], []>} : vector<1x32xf32>, vector<32x16xf32>, vector<1x16xf32> -> vector<1x16xf32>
    %c0_163 = arith.constant 0 : index
    %c0_164 = arith.constant 0 : index
    %228 = vector.load %arg21[%c0_163, %c0_164] : memref<1x16xf32, #tpu.memory_space<vmem>>, vector<1x16xf32>
    %229 = arith.addf %227, %228 : vector<1x16xf32>
    %c0_165 = arith.constant 0 : index
    %c0_166 = arith.constant 0 : index
    %230 = vector.load %arg22[%c0_165, %c0_166] : memref<16x32xf32, #tpu.memory_space<vmem>>, vector<16x32xf32>
    %cst_167 = arith.constant dense<0.000000e+00> : vector<1x32xf32>
    %231 = tpu.matmul %229, %230, %cst_167 {dimension_numbers = #tpu.dot_dimension_numbers<[1], [0], [0], [1], [0, 0, 1, 1], [], []>} : vector<1x16xf32>, vector<16x32xf32>, vector<1x32xf32> -> vector<1x32xf32>
    %c0_168 = arith.constant 0 : index
    %c0_169 = arith.constant 0 : index
    %232 = vector.load %arg23[%c0_168, %c0_169] : memref<1x32xf32, #tpu.memory_space<vmem>>, vector<1x32xf32>
    %233 = arith.addf %231, %232 : vector<1x32xf32>
    %234 = arith.addf %233, %225 : vector<1x32xf32>
    %235 = vector.extract_strided_slice %234 {offsets = [0, 0], sizes = [1, 16], strides = [1, 1]} : vector<1x32xf32> to vector<1x16xf32>
    %236 = vector.extract_strided_slice %234 {offsets = [0, 16], sizes = [1, 16], strides = [1, 1]} : vector<1x32xf32> to vector<1x16xf32>
    %237 = tpu.concatenate %235, %236 in 0 : vector<1x16xf32>, vector<1x16xf32> -> vector<2x16xf32>
    %c0_170 = arith.constant 0 : index
    %c0_171 = arith.constant 0 : index
    %238 = vector.load %arg24[%c0_170, %c0_171] : memref<16x2xf32, #tpu.memory_space<vmem>>, vector<16x2xf32>
    %cst_172 = arith.constant dense<0.000000e+00> : vector<16x16xf32>
    %239 = tpu.matmul %238, %237, %cst_172 {dimension_numbers = #tpu.dot_dimension_numbers<[1], [0], [0], [1], [0, 0, 1, 1], [], []>} : vector<16x2xf32>, vector<2x16xf32>, vector<16x16xf32> -> vector<16x16xf32>
    %c0_173 = arith.constant 0 : index
    %c0_174 = arith.constant 0 : index
    %240 = vector.load %arg25[%c0_173, %c0_174] : memref<16x1xf32, #tpu.memory_space<vmem>>, vector<16x1xf32>
    %241 = vector.broadcast %240 : vector<16x1xf32> to vector<16x16xf32>
    %242 = arith.addf %239, %241 : vector<16x16xf32>
    %c6 = arith.constant 6 : index
    %c0_175 = arith.constant 0 : index
    %c0_176 = arith.constant 0 : index
    %243 = vector.load %arg26[%c6, %c0_175, %c0_176] : memref<8x32x16xf32, #tpu.memory_space<vmem>>, vector<1x32x16xf32>
    %244 = vector.shape_cast %243 : vector<1x32x16xf32> to vector<32x16xf32>
    %cst_177 = arith.constant dense<0.000000e+00> : vector<32x16xf32>
    %245 = tpu.matmul %244, %242, %cst_177 {dimension_numbers = #tpu.dot_dimension_numbers<[1], [0], [0], [1], [0, 0, 1, 1], [], []>} : vector<32x16xf32>, vector<16x16xf32>, vector<32x16xf32> -> vector<32x16xf32>
    %c7 = arith.constant 7 : index
    %c0_178 = arith.constant 0 : index
    %c0_179 = arith.constant 0 : index
    %246 = vector.load %arg26[%c7, %c0_178, %c0_179] : memref<8x32x16xf32, #tpu.memory_space<vmem>>, vector<1x32x16xf32>
    %247 = vector.shape_cast %246 : vector<1x32x16xf32> to vector<32x16xf32>
    %cst_180 = arith.constant dense<0.000000e+00> : vector<32x16xf32>
    %248 = tpu.matmul %247, %242, %cst_180 {dimension_numbers = #tpu.dot_dimension_numbers<[1], [0], [0], [1], [0, 0, 1, 1], [], []>} : vector<32x16xf32>, vector<16x16xf32>, vector<32x16xf32> -> vector<32x16xf32>
    %cst_181 = arith.constant 0.000000e+00 : f32
    %249 = vector.broadcast %cst_181 : f32 to vector<32x32xf32>
    %250 = tpu.concatenate %245, %249 in 1 : vector<32x16xf32>, vector<32x32xf32> -> vector<32x48xf32>
    %251 = tpu.concatenate %249, %248 in 1 : vector<32x32xf32>, vector<32x16xf32> -> vector<32x48xf32>
    %252 = arith.addf %250, %251 : vector<32x48xf32>
    %c3_182 = arith.constant 3 : index
    %c0_183 = arith.constant 0 : index
    %c0_184 = arith.constant 0 : index
    %253 = vector.load %arg27[%c3_182, %c0_183, %c0_184] : memref<4x32x1xf32, #tpu.memory_space<vmem>>, vector<1x32x1xf32>
    %254 = vector.shape_cast %253 : vector<1x32x1xf32> to vector<32x1xf32>
    %255 = vector.broadcast %254 : vector<32x1xf32> to vector<32x48xf32>
    %256 = arith.addf %252, %255 : vector<32x48xf32>
    %257 = vector.extract_strided_slice %256 {offsets = [0, 0], sizes = [16, 48], strides = [1, 1]} : vector<32x48xf32> to vector<16x48xf32>
    %258 = math.tanh %257 : vector<16x48xf32>
    %259 = vector.extract_strided_slice %256 {offsets = [16, 0], sizes = [16, 48], strides = [1, 1]} : vector<32x48xf32> to vector<16x48xf32>
    %260 = arith.negf %259 : vector<16x48xf32>
    %261 = math.exp %260 : vector<16x48xf32>
    %cst_185 = arith.constant 1.000000e+00 : f32
    %262 = vector.broadcast %cst_185 : f32 to vector<16x48xf32>
    %263 = arith.addf %262, %261 : vector<16x48xf32>
    %264 = arith.divf %262, %263 : vector<16x48xf32>
    %265 = arith.mulf %258, %264 : vector<16x48xf32>
    %c3_186 = arith.constant 3 : index
    %c0_187 = arith.constant 0 : index
    %c0_188 = arith.constant 0 : index
    %266 = vector.load %arg28[%c3_186, %c0_187, %c0_188] : memref<4x16x16xf32, #tpu.memory_space<vmem>>, vector<1x16x16xf32>
    %267 = vector.shape_cast %266 : vector<1x16x16xf32> to vector<16x16xf32>
    %cst_189 = arith.constant dense<0.000000e+00> : vector<16x48xf32>
    %268 = tpu.matmul %267, %265, %cst_189 {dimension_numbers = #tpu.dot_dimension_numbers<[1], [0], [0], [1], [0, 0, 1, 1], [], []>} : vector<16x16xf32>, vector<16x48xf32>, vector<16x48xf32> -> vector<16x48xf32>
    %c3_190 = arith.constant 3 : index
    %c0_191 = arith.constant 0 : index
    %c0_192 = arith.constant 0 : index
    %269 = vector.load %arg29[%c3_190, %c0_191, %c0_192] : memref<4x16x1xf32, #tpu.memory_space<vmem>>, vector<1x16x1xf32>
    %270 = vector.shape_cast %269 : vector<1x16x1xf32> to vector<16x1xf32>
    %271 = vector.broadcast %270 : vector<16x1xf32> to vector<16x48xf32>
    %272 = arith.addf %268, %271 : vector<16x48xf32>
    %c0_193 = arith.constant 0 : index
    %c0_194 = arith.constant 0 : index
    %273 = vector.load %arg3[%c0_193, %c0_194] : memref<112x112xf32, #tpu.memory_space<vmem>>, vector<48x48xf32>
    %cst_195 = arith.constant dense<0.000000e+00> : vector<16x48xf32>
    %274 = tpu.matmul %265, %273, %cst_195 {dimension_numbers = #tpu.dot_dimension_numbers<[1], [0], [0], [1], [0, 0, 1, 1], [], []>} : vector<16x48xf32>, vector<48x48xf32>, vector<16x48xf32> -> vector<16x48xf32>
    %cst_196 = arith.constant dense<0.000000e+00> : vector<16x48xf32>
    %275 = tpu.matmul %274, %273, %cst_196 {dimension_numbers = #tpu.dot_dimension_numbers<[1], [0], [0], [1], [0, 0, 1, 1], [], []>} : vector<16x48xf32>, vector<48x48xf32>, vector<16x48xf32> -> vector<16x48xf32>
    %276 = tpu.concatenate %265, %274, %275 in 0 : vector<16x48xf32>, vector<16x48xf32>, vector<16x48xf32> -> vector<48x48xf32>
    %c3_197 = arith.constant 3 : index
    %c0_198 = arith.constant 0 : index
    %c0_199 = arith.constant 0 : index
    %277 = vector.load %arg30[%c3_197, %c0_198, %c0_199] : memref<4x16x48xf32, #tpu.memory_space<vmem>>, vector<1x16x48xf32>
    %278 = vector.shape_cast %277 : vector<1x16x48xf32> to vector<16x48xf32>
    %cst_200 = arith.constant dense<0.000000e+00> : vector<16x48xf32>
    %279 = tpu.matmul %278, %276, %cst_200 {dimension_numbers = #tpu.dot_dimension_numbers<[1], [0], [0], [1], [0, 0, 1, 1], [], []>} : vector<16x48xf32>, vector<48x48xf32>, vector<16x48xf32> -> vector<16x48xf32>
    %c3_201 = arith.constant 3 : index
    %c0_202 = arith.constant 0 : index
    %c0_203 = arith.constant 0 : index
    %280 = vector.load %arg31[%c3_201, %c0_202, %c0_203] : memref<4x16x1xf32, #tpu.memory_space<vmem>>, vector<1x16x1xf32>
    %281 = vector.shape_cast %280 : vector<1x16x1xf32> to vector<16x1xf32>
    %282 = vector.broadcast %281 : vector<16x1xf32> to vector<16x48xf32>
    %283 = arith.addf %279, %282 : vector<16x48xf32>
    %c0_204 = arith.constant 0 : index
    %c0_205 = arith.constant 0 : index
    %c0_206 = arith.constant 0 : index
    %284 = vector.load %arg34[%c0_204, %c0_205, %c0_206] : memref<4x112x112xf32, #tpu.memory_space<vmem>>, vector<1x16x48xf32>
    %285 = vector.shape_cast %284 : vector<1x16x48xf32> to vector<16x48xf32>
    %cst_207 = arith.constant dense<0.000000e+00> : vector<16x48xf32>
    %286 = tpu.matmul %242, %285, %cst_207 {dimension_numbers = #tpu.dot_dimension_numbers<[1], [0], [0], [1], [0, 0, 1, 1], [], []>} : vector<16x16xf32>, vector<16x48xf32>, vector<16x48xf32> -> vector<16x48xf32>
    %287 = arith.addf %283, %286 : vector<16x48xf32>
    %c0_208 = arith.constant 0 : index
    %c0_209 = arith.constant 0 : index
    %c0_210 = arith.constant 0 : index
    %288 = vector.load %arg35[%c0_208, %c0_209, %c0_210] : memref<4x1x112xf32, #tpu.memory_space<vmem>>, vector<1x1x48xf32>
    %289 = vector.shape_cast %288 : vector<1x1x48xf32> to vector<1x48xf32>
    %290 = vector.broadcast %289 : vector<1x48xf32> to vector<16x48xf32>
    %291 = arith.addf %287, %290 : vector<16x48xf32>
    %c3_211 = arith.constant 3 : index
    %c0_212 = arith.constant 0 : index
    %c0_213 = arith.constant 0 : index
    %292 = vector.load %arg32[%c3_211, %c0_212, %c0_213] : memref<4x16x1xf32, #tpu.memory_space<vmem>>, vector<1x16x1xf32>
    %293 = vector.shape_cast %292 : vector<1x16x1xf32> to vector<16x1xf32>
    %294 = vector.broadcast %293 : vector<16x1xf32> to vector<16x48xf32>
    %295 = arith.mulf %291, %294 : vector<16x48xf32>
    %c3_214 = arith.constant 3 : index
    %c0_215 = arith.constant 0 : index
    %c0_216 = arith.constant 0 : index
    %296 = vector.load %arg33[%c3_214, %c0_215, %c0_216] : memref<4x16x1xf32, #tpu.memory_space<vmem>>, vector<1x16x1xf32>
    %297 = vector.shape_cast %296 : vector<1x16x1xf32> to vector<16x1xf32>
    %298 = vector.broadcast %297 : vector<16x1xf32> to vector<16x48xf32>
    %299 = arith.addf %295, %298 : vector<16x48xf32>
    %c4 = arith.constant 4 : index
    %c0_217 = arith.constant 0 : index
    %c0_218 = arith.constant 0 : index
    %300 = vector.load %arg26[%c4, %c0_217, %c0_218] : memref<8x32x16xf32, #tpu.memory_space<vmem>>, vector<1x32x16xf32>
    %301 = vector.shape_cast %300 : vector<1x32x16xf32> to vector<32x16xf32>
    %cst_219 = arith.constant dense<0.000000e+00> : vector<32x48xf32>
    %302 = tpu.matmul %301, %299, %cst_219 {dimension_numbers = #tpu.dot_dimension_numbers<[1], [0], [0], [1], [0, 0, 1, 1], [], []>} : vector<32x16xf32>, vector<16x48xf32>, vector<32x48xf32> -> vector<32x48xf32>
    %c5 = arith.constant 5 : index
    %c0_220 = arith.constant 0 : index
    %c0_221 = arith.constant 0 : index
    %303 = vector.load %arg26[%c5, %c0_220, %c0_221] : memref<8x32x16xf32, #tpu.memory_space<vmem>>, vector<1x32x16xf32>
    %304 = vector.shape_cast %303 : vector<1x32x16xf32> to vector<32x16xf32>
    %cst_222 = arith.constant dense<0.000000e+00> : vector<32x48xf32>
    %305 = tpu.matmul %304, %299, %cst_222 {dimension_numbers = #tpu.dot_dimension_numbers<[1], [0], [0], [1], [0, 0, 1, 1], [], []>} : vector<32x16xf32>, vector<16x48xf32>, vector<32x48xf32> -> vector<32x48xf32>
    %cst_223 = arith.constant 0.000000e+00 : f32
    %306 = vector.broadcast %cst_223 : f32 to vector<32x16xf32>
    %307 = tpu.concatenate %302, %306 in 1 : vector<32x48xf32>, vector<32x16xf32> -> vector<32x64xf32>
    %308 = tpu.concatenate %306, %305 in 1 : vector<32x16xf32>, vector<32x48xf32> -> vector<32x64xf32>
    %309 = arith.addf %307, %308 : vector<32x64xf32>
    %c2_224 = arith.constant 2 : index
    %c0_225 = arith.constant 0 : index
    %c0_226 = arith.constant 0 : index
    %310 = vector.load %arg27[%c2_224, %c0_225, %c0_226] : memref<4x32x1xf32, #tpu.memory_space<vmem>>, vector<1x32x1xf32>
    %311 = vector.shape_cast %310 : vector<1x32x1xf32> to vector<32x1xf32>
    %312 = vector.broadcast %311 : vector<32x1xf32> to vector<32x64xf32>
    %313 = arith.addf %309, %312 : vector<32x64xf32>
    %314 = vector.extract_strided_slice %313 {offsets = [0, 0], sizes = [16, 64], strides = [1, 1]} : vector<32x64xf32> to vector<16x64xf32>
    %315 = math.tanh %314 : vector<16x64xf32>
    %316 = vector.extract_strided_slice %313 {offsets = [16, 0], sizes = [16, 64], strides = [1, 1]} : vector<32x64xf32> to vector<16x64xf32>
    %317 = arith.negf %316 : vector<16x64xf32>
    %318 = math.exp %317 : vector<16x64xf32>
    %cst_227 = arith.constant 1.000000e+00 : f32
    %319 = vector.broadcast %cst_227 : f32 to vector<16x64xf32>
    %320 = arith.addf %319, %318 : vector<16x64xf32>
    %321 = arith.divf %319, %320 : vector<16x64xf32>
    %322 = arith.mulf %315, %321 : vector<16x64xf32>
    %c2_228 = arith.constant 2 : index
    %c0_229 = arith.constant 0 : index
    %c0_230 = arith.constant 0 : index
    %323 = vector.load %arg28[%c2_228, %c0_229, %c0_230] : memref<4x16x16xf32, #tpu.memory_space<vmem>>, vector<1x16x16xf32>
    %324 = vector.shape_cast %323 : vector<1x16x16xf32> to vector<16x16xf32>
    %cst_231 = arith.constant dense<0.000000e+00> : vector<16x64xf32>
    %325 = tpu.matmul %324, %322, %cst_231 {dimension_numbers = #tpu.dot_dimension_numbers<[1], [0], [0], [1], [0, 0, 1, 1], [], []>} : vector<16x16xf32>, vector<16x64xf32>, vector<16x64xf32> -> vector<16x64xf32>
    %c2_232 = arith.constant 2 : index
    %c0_233 = arith.constant 0 : index
    %c0_234 = arith.constant 0 : index
    %326 = vector.load %arg29[%c2_232, %c0_233, %c0_234] : memref<4x16x1xf32, #tpu.memory_space<vmem>>, vector<1x16x1xf32>
    %327 = vector.shape_cast %326 : vector<1x16x1xf32> to vector<16x1xf32>
    %328 = vector.broadcast %327 : vector<16x1xf32> to vector<16x64xf32>
    %329 = arith.addf %325, %328 : vector<16x64xf32>
    %c1_235 = arith.constant 1 : index
    %c0_236 = arith.constant 0 : index
    %c0_237 = arith.constant 0 : index
    %330 = vector.load %arg36[%c1_235, %c0_236, %c0_237] : memref<4x112x112xf32, #tpu.memory_space<vmem>>, vector<1x48x64xf32>
    %331 = vector.shape_cast %330 : vector<1x48x64xf32> to vector<48x64xf32>
    %cst_238 = arith.constant dense<0.000000e+00> : vector<16x64xf32>
    %332 = tpu.matmul %272, %331, %cst_238 {dimension_numbers = #tpu.dot_dimension_numbers<[1], [0], [0], [1], [0, 0, 1, 1], [], []>} : vector<16x48xf32>, vector<48x64xf32>, vector<16x64xf32> -> vector<16x64xf32>
    %333 = arith.addf %329, %332 : vector<16x64xf32>
    %c1_239 = arith.constant 1 : index
    %c0_240 = arith.constant 0 : index
    %c0_241 = arith.constant 0 : index
    %334 = vector.load %arg37[%c1_239, %c0_240, %c0_241] : memref<4x1x112xf32, #tpu.memory_space<vmem>>, vector<1x1x64xf32>
    %335 = vector.shape_cast %334 : vector<1x1x64xf32> to vector<1x64xf32>
    %336 = vector.broadcast %335 : vector<1x64xf32> to vector<16x64xf32>
    %337 = arith.addf %333, %336 : vector<16x64xf32>
    %c0_242 = arith.constant 0 : index
    %c0_243 = arith.constant 0 : index
    %338 = vector.load %arg3[%c0_242, %c0_243] : memref<112x112xf32, #tpu.memory_space<vmem>>, vector<64x64xf32>
    %cst_244 = arith.constant dense<0.000000e+00> : vector<16x64xf32>
    %339 = tpu.matmul %322, %338, %cst_244 {dimension_numbers = #tpu.dot_dimension_numbers<[1], [0], [0], [1], [0, 0, 1, 1], [], []>} : vector<16x64xf32>, vector<64x64xf32>, vector<16x64xf32> -> vector<16x64xf32>
    %cst_245 = arith.constant dense<0.000000e+00> : vector<16x64xf32>
    %340 = tpu.matmul %339, %338, %cst_245 {dimension_numbers = #tpu.dot_dimension_numbers<[1], [0], [0], [1], [0, 0, 1, 1], [], []>} : vector<16x64xf32>, vector<64x64xf32>, vector<16x64xf32> -> vector<16x64xf32>
    %341 = tpu.concatenate %322, %339, %340 in 0 : vector<16x64xf32>, vector<16x64xf32>, vector<16x64xf32> -> vector<48x64xf32>
    %c2_246 = arith.constant 2 : index
    %c0_247 = arith.constant 0 : index
    %c0_248 = arith.constant 0 : index
    %342 = vector.load %arg30[%c2_246, %c0_247, %c0_248] : memref<4x16x48xf32, #tpu.memory_space<vmem>>, vector<1x16x48xf32>
    %343 = vector.shape_cast %342 : vector<1x16x48xf32> to vector<16x48xf32>
    %cst_249 = arith.constant dense<0.000000e+00> : vector<16x64xf32>
    %344 = tpu.matmul %343, %341, %cst_249 {dimension_numbers = #tpu.dot_dimension_numbers<[1], [0], [0], [1], [0, 0, 1, 1], [], []>} : vector<16x48xf32>, vector<48x64xf32>, vector<16x64xf32> -> vector<16x64xf32>
    %c2_250 = arith.constant 2 : index
    %c0_251 = arith.constant 0 : index
    %c0_252 = arith.constant 0 : index
    %345 = vector.load %arg31[%c2_250, %c0_251, %c0_252] : memref<4x16x1xf32, #tpu.memory_space<vmem>>, vector<1x16x1xf32>
    %346 = vector.shape_cast %345 : vector<1x16x1xf32> to vector<16x1xf32>
    %347 = vector.broadcast %346 : vector<16x1xf32> to vector<16x64xf32>
    %348 = arith.addf %344, %347 : vector<16x64xf32>
    %c1_253 = arith.constant 1 : index
    %c0_254 = arith.constant 0 : index
    %c0_255 = arith.constant 0 : index
    %349 = vector.load %arg34[%c1_253, %c0_254, %c0_255] : memref<4x112x112xf32, #tpu.memory_space<vmem>>, vector<1x48x64xf32>
    %350 = vector.shape_cast %349 : vector<1x48x64xf32> to vector<48x64xf32>
    %cst_256 = arith.constant dense<0.000000e+00> : vector<16x64xf32>
    %351 = tpu.matmul %299, %350, %cst_256 {dimension_numbers = #tpu.dot_dimension_numbers<[1], [0], [0], [1], [0, 0, 1, 1], [], []>} : vector<16x48xf32>, vector<48x64xf32>, vector<16x64xf32> -> vector<16x64xf32>
    %352 = arith.addf %348, %351 : vector<16x64xf32>
    %c1_257 = arith.constant 1 : index
    %c0_258 = arith.constant 0 : index
    %c0_259 = arith.constant 0 : index
    %353 = vector.load %arg35[%c1_257, %c0_258, %c0_259] : memref<4x1x112xf32, #tpu.memory_space<vmem>>, vector<1x1x64xf32>
    %354 = vector.shape_cast %353 : vector<1x1x64xf32> to vector<1x64xf32>
    %355 = vector.broadcast %354 : vector<1x64xf32> to vector<16x64xf32>
    %356 = arith.addf %352, %355 : vector<16x64xf32>
    %c2_260 = arith.constant 2 : index
    %c0_261 = arith.constant 0 : index
    %c0_262 = arith.constant 0 : index
    %357 = vector.load %arg32[%c2_260, %c0_261, %c0_262] : memref<4x16x1xf32, #tpu.memory_space<vmem>>, vector<1x16x1xf32>
    %358 = vector.shape_cast %357 : vector<1x16x1xf32> to vector<16x1xf32>
    %359 = vector.broadcast %358 : vector<16x1xf32> to vector<16x64xf32>
    %360 = arith.mulf %356, %359 : vector<16x64xf32>
    %c2_263 = arith.constant 2 : index
    %c0_264 = arith.constant 0 : index
    %c0_265 = arith.constant 0 : index
    %361 = vector.load %arg33[%c2_263, %c0_264, %c0_265] : memref<4x16x1xf32, #tpu.memory_space<vmem>>, vector<1x16x1xf32>
    %362 = vector.shape_cast %361 : vector<1x16x1xf32> to vector<16x1xf32>
    %363 = vector.broadcast %362 : vector<16x1xf32> to vector<16x64xf32>
    %364 = arith.addf %360, %363 : vector<16x64xf32>
    %c2_266 = arith.constant 2 : index
    %c0_267 = arith.constant 0 : index
    %c0_268 = arith.constant 0 : index
    %365 = vector.load %arg26[%c2_266, %c0_267, %c0_268] : memref<8x32x16xf32, #tpu.memory_space<vmem>>, vector<1x32x16xf32>
    %366 = vector.shape_cast %365 : vector<1x32x16xf32> to vector<32x16xf32>
    %cst_269 = arith.constant dense<0.000000e+00> : vector<32x64xf32>
    %367 = tpu.matmul %366, %364, %cst_269 {dimension_numbers = #tpu.dot_dimension_numbers<[1], [0], [0], [1], [0, 0, 1, 1], [], []>} : vector<32x16xf32>, vector<16x64xf32>, vector<32x64xf32> -> vector<32x64xf32>
    %c3_270 = arith.constant 3 : index
    %c0_271 = arith.constant 0 : index
    %c0_272 = arith.constant 0 : index
    %368 = vector.load %arg26[%c3_270, %c0_271, %c0_272] : memref<8x32x16xf32, #tpu.memory_space<vmem>>, vector<1x32x16xf32>
    %369 = vector.shape_cast %368 : vector<1x32x16xf32> to vector<32x16xf32>
    %cst_273 = arith.constant dense<0.000000e+00> : vector<32x64xf32>
    %370 = tpu.matmul %369, %364, %cst_273 {dimension_numbers = #tpu.dot_dimension_numbers<[1], [0], [0], [1], [0, 0, 1, 1], [], []>} : vector<32x16xf32>, vector<16x64xf32>, vector<32x64xf32> -> vector<32x64xf32>
    %cst_274 = arith.constant 0.000000e+00 : f32
    %371 = vector.broadcast %cst_274 : f32 to vector<32x32xf32>
    %372 = tpu.concatenate %367, %371 in 1 : vector<32x64xf32>, vector<32x32xf32> -> vector<32x96xf32>
    %373 = tpu.concatenate %371, %370 in 1 : vector<32x32xf32>, vector<32x64xf32> -> vector<32x96xf32>
    %374 = arith.addf %372, %373 : vector<32x96xf32>
    %c1_275 = arith.constant 1 : index
    %c0_276 = arith.constant 0 : index
    %c0_277 = arith.constant 0 : index
    %375 = vector.load %arg27[%c1_275, %c0_276, %c0_277] : memref<4x32x1xf32, #tpu.memory_space<vmem>>, vector<1x32x1xf32>
    %376 = vector.shape_cast %375 : vector<1x32x1xf32> to vector<32x1xf32>
    %377 = vector.broadcast %376 : vector<32x1xf32> to vector<32x96xf32>
    %378 = arith.addf %374, %377 : vector<32x96xf32>
    %379 = vector.extract_strided_slice %378 {offsets = [0, 0], sizes = [16, 96], strides = [1, 1]} : vector<32x96xf32> to vector<16x96xf32>
    %380 = math.tanh %379 : vector<16x96xf32>
    %381 = vector.extract_strided_slice %378 {offsets = [16, 0], sizes = [16, 96], strides = [1, 1]} : vector<32x96xf32> to vector<16x96xf32>
    %382 = arith.negf %381 : vector<16x96xf32>
    %383 = math.exp %382 : vector<16x96xf32>
    %cst_278 = arith.constant 1.000000e+00 : f32
    %384 = vector.broadcast %cst_278 : f32 to vector<16x96xf32>
    %385 = arith.addf %384, %383 : vector<16x96xf32>
    %386 = arith.divf %384, %385 : vector<16x96xf32>
    %387 = arith.mulf %380, %386 : vector<16x96xf32>
    %c1_279 = arith.constant 1 : index
    %c0_280 = arith.constant 0 : index
    %c0_281 = arith.constant 0 : index
    %388 = vector.load %arg28[%c1_279, %c0_280, %c0_281] : memref<4x16x16xf32, #tpu.memory_space<vmem>>, vector<1x16x16xf32>
    %389 = vector.shape_cast %388 : vector<1x16x16xf32> to vector<16x16xf32>
    %cst_282 = arith.constant dense<0.000000e+00> : vector<16x96xf32>
    %390 = tpu.matmul %389, %387, %cst_282 {dimension_numbers = #tpu.dot_dimension_numbers<[1], [0], [0], [1], [0, 0, 1, 1], [], []>} : vector<16x16xf32>, vector<16x96xf32>, vector<16x96xf32> -> vector<16x96xf32>
    %c1_283 = arith.constant 1 : index
    %c0_284 = arith.constant 0 : index
    %c0_285 = arith.constant 0 : index
    %391 = vector.load %arg29[%c1_283, %c0_284, %c0_285] : memref<4x16x1xf32, #tpu.memory_space<vmem>>, vector<1x16x1xf32>
    %392 = vector.shape_cast %391 : vector<1x16x1xf32> to vector<16x1xf32>
    %393 = vector.broadcast %392 : vector<16x1xf32> to vector<16x96xf32>
    %394 = arith.addf %390, %393 : vector<16x96xf32>
    %c2_286 = arith.constant 2 : index
    %c0_287 = arith.constant 0 : index
    %c0_288 = arith.constant 0 : index
    %395 = vector.load %arg36[%c2_286, %c0_287, %c0_288] : memref<4x112x112xf32, #tpu.memory_space<vmem>>, vector<1x64x96xf32>
    %396 = vector.shape_cast %395 : vector<1x64x96xf32> to vector<64x96xf32>
    %cst_289 = arith.constant dense<0.000000e+00> : vector<16x96xf32>
    %397 = tpu.matmul %337, %396, %cst_289 {dimension_numbers = #tpu.dot_dimension_numbers<[1], [0], [0], [1], [0, 0, 1, 1], [], []>} : vector<16x64xf32>, vector<64x96xf32>, vector<16x96xf32> -> vector<16x96xf32>
    %398 = arith.addf %394, %397 : vector<16x96xf32>
    %c2_290 = arith.constant 2 : index
    %c0_291 = arith.constant 0 : index
    %c0_292 = arith.constant 0 : index
    %399 = vector.load %arg37[%c2_290, %c0_291, %c0_292] : memref<4x1x112xf32, #tpu.memory_space<vmem>>, vector<1x1x96xf32>
    %400 = vector.shape_cast %399 : vector<1x1x96xf32> to vector<1x96xf32>
    %401 = vector.broadcast %400 : vector<1x96xf32> to vector<16x96xf32>
    %402 = arith.addf %398, %401 : vector<16x96xf32>
    %c0_293 = arith.constant 0 : index
    %c0_294 = arith.constant 0 : index
    %403 = vector.load %arg3[%c0_293, %c0_294] : memref<112x112xf32, #tpu.memory_space<vmem>>, vector<96x96xf32>
    %cst_295 = arith.constant dense<0.000000e+00> : vector<16x96xf32>
    %404 = tpu.matmul %387, %403, %cst_295 {dimension_numbers = #tpu.dot_dimension_numbers<[1], [0], [0], [1], [0, 0, 1, 1], [], []>} : vector<16x96xf32>, vector<96x96xf32>, vector<16x96xf32> -> vector<16x96xf32>
    %cst_296 = arith.constant dense<0.000000e+00> : vector<16x96xf32>
    %405 = tpu.matmul %404, %403, %cst_296 {dimension_numbers = #tpu.dot_dimension_numbers<[1], [0], [0], [1], [0, 0, 1, 1], [], []>} : vector<16x96xf32>, vector<96x96xf32>, vector<16x96xf32> -> vector<16x96xf32>
    %406 = tpu.concatenate %387, %404, %405 in 0 : vector<16x96xf32>, vector<16x96xf32>, vector<16x96xf32> -> vector<48x96xf32>
    %c1_297 = arith.constant 1 : index
    %c0_298 = arith.constant 0 : index
    %c0_299 = arith.constant 0 : index
    %407 = vector.load %arg30[%c1_297, %c0_298, %c0_299] : memref<4x16x48xf32, #tpu.memory_space<vmem>>, vector<1x16x48xf32>
    %408 = vector.shape_cast %407 : vector<1x16x48xf32> to vector<16x48xf32>
    %cst_300 = arith.constant dense<0.000000e+00> : vector<16x96xf32>
    %409 = tpu.matmul %408, %406, %cst_300 {dimension_numbers = #tpu.dot_dimension_numbers<[1], [0], [0], [1], [0, 0, 1, 1], [], []>} : vector<16x48xf32>, vector<48x96xf32>, vector<16x96xf32> -> vector<16x96xf32>
    %c1_301 = arith.constant 1 : index
    %c0_302 = arith.constant 0 : index
    %c0_303 = arith.constant 0 : index
    %410 = vector.load %arg31[%c1_301, %c0_302, %c0_303] : memref<4x16x1xf32, #tpu.memory_space<vmem>>, vector<1x16x1xf32>
    %411 = vector.shape_cast %410 : vector<1x16x1xf32> to vector<16x1xf32>
    %412 = vector.broadcast %411 : vector<16x1xf32> to vector<16x96xf32>
    %413 = arith.addf %409, %412 : vector<16x96xf32>
    %c2_304 = arith.constant 2 : index
    %c0_305 = arith.constant 0 : index
    %c0_306 = arith.constant 0 : index
    %414 = vector.load %arg34[%c2_304, %c0_305, %c0_306] : memref<4x112x112xf32, #tpu.memory_space<vmem>>, vector<1x64x96xf32>
    %415 = vector.shape_cast %414 : vector<1x64x96xf32> to vector<64x96xf32>
    %cst_307 = arith.constant dense<0.000000e+00> : vector<16x96xf32>
    %416 = tpu.matmul %364, %415, %cst_307 {dimension_numbers = #tpu.dot_dimension_numbers<[1], [0], [0], [1], [0, 0, 1, 1], [], []>} : vector<16x64xf32>, vector<64x96xf32>, vector<16x96xf32> -> vector<16x96xf32>
    %417 = arith.addf %413, %416 : vector<16x96xf32>
    %c2_308 = arith.constant 2 : index
    %c0_309 = arith.constant 0 : index
    %c0_310 = arith.constant 0 : index
    %418 = vector.load %arg35[%c2_308, %c0_309, %c0_310] : memref<4x1x112xf32, #tpu.memory_space<vmem>>, vector<1x1x96xf32>
    %419 = vector.shape_cast %418 : vector<1x1x96xf32> to vector<1x96xf32>
    %420 = vector.broadcast %419 : vector<1x96xf32> to vector<16x96xf32>
    %421 = arith.addf %417, %420 : vector<16x96xf32>
    %c1_311 = arith.constant 1 : index
    %c0_312 = arith.constant 0 : index
    %c0_313 = arith.constant 0 : index
    %422 = vector.load %arg32[%c1_311, %c0_312, %c0_313] : memref<4x16x1xf32, #tpu.memory_space<vmem>>, vector<1x16x1xf32>
    %423 = vector.shape_cast %422 : vector<1x16x1xf32> to vector<16x1xf32>
    %424 = vector.broadcast %423 : vector<16x1xf32> to vector<16x96xf32>
    %425 = arith.mulf %421, %424 : vector<16x96xf32>
    %c1_314 = arith.constant 1 : index
    %c0_315 = arith.constant 0 : index
    %c0_316 = arith.constant 0 : index
    %426 = vector.load %arg33[%c1_314, %c0_315, %c0_316] : memref<4x16x1xf32, #tpu.memory_space<vmem>>, vector<1x16x1xf32>
    %427 = vector.shape_cast %426 : vector<1x16x1xf32> to vector<16x1xf32>
    %428 = vector.broadcast %427 : vector<16x1xf32> to vector<16x96xf32>
    %429 = arith.addf %425, %428 : vector<16x96xf32>
    %c0_317 = arith.constant 0 : index
    %c0_318 = arith.constant 0 : index
    %c0_319 = arith.constant 0 : index
    %430 = vector.load %arg26[%c0_317, %c0_318, %c0_319] : memref<8x32x16xf32, #tpu.memory_space<vmem>>, vector<1x32x16xf32>
    %431 = vector.shape_cast %430 : vector<1x32x16xf32> to vector<32x16xf32>
    %cst_320 = arith.constant dense<0.000000e+00> : vector<32x96xf32>
    %432 = tpu.matmul %431, %429, %cst_320 {dimension_numbers = #tpu.dot_dimension_numbers<[1], [0], [0], [1], [0, 0, 1, 1], [], []>} : vector<32x16xf32>, vector<16x96xf32>, vector<32x96xf32> -> vector<32x96xf32>
    %c1_321 = arith.constant 1 : index
    %c0_322 = arith.constant 0 : index
    %c0_323 = arith.constant 0 : index
    %433 = vector.load %arg26[%c1_321, %c0_322, %c0_323] : memref<8x32x16xf32, #tpu.memory_space<vmem>>, vector<1x32x16xf32>
    %434 = vector.shape_cast %433 : vector<1x32x16xf32> to vector<32x16xf32>
    %cst_324 = arith.constant dense<0.000000e+00> : vector<32x96xf32>
    %435 = tpu.matmul %434, %429, %cst_324 {dimension_numbers = #tpu.dot_dimension_numbers<[1], [0], [0], [1], [0, 0, 1, 1], [], []>} : vector<32x16xf32>, vector<16x96xf32>, vector<32x96xf32> -> vector<32x96xf32>
    %cst_325 = arith.constant 0.000000e+00 : f32
    %436 = vector.broadcast %cst_325 : f32 to vector<32x16xf32>
    %437 = tpu.concatenate %432, %436 in 1 : vector<32x96xf32>, vector<32x16xf32> -> vector<32x112xf32>
    %438 = tpu.concatenate %436, %435 in 1 : vector<32x16xf32>, vector<32x96xf32> -> vector<32x112xf32>
    %439 = arith.addf %437, %438 : vector<32x112xf32>
    %c0_326 = arith.constant 0 : index
    %c0_327 = arith.constant 0 : index
    %c0_328 = arith.constant 0 : index
    %440 = vector.load %arg27[%c0_326, %c0_327, %c0_328] : memref<4x32x1xf32, #tpu.memory_space<vmem>>, vector<1x32x1xf32>
    %441 = vector.shape_cast %440 : vector<1x32x1xf32> to vector<32x1xf32>
    %442 = vector.broadcast %441 : vector<32x1xf32> to vector<32x112xf32>
    %443 = arith.addf %439, %442 : vector<32x112xf32>
    %444 = vector.extract_strided_slice %443 {offsets = [0, 0], sizes = [16, 112], strides = [1, 1]} : vector<32x112xf32> to vector<16x112xf32>
    %445 = math.tanh %444 : vector<16x112xf32>
    %446 = vector.extract_strided_slice %443 {offsets = [16, 0], sizes = [16, 112], strides = [1, 1]} : vector<32x112xf32> to vector<16x112xf32>
    %447 = arith.negf %446 : vector<16x112xf32>
    %448 = math.exp %447 : vector<16x112xf32>
    %cst_329 = arith.constant 1.000000e+00 : f32
    %449 = vector.broadcast %cst_329 : f32 to vector<16x112xf32>
    %450 = arith.addf %449, %448 : vector<16x112xf32>
    %451 = arith.divf %449, %450 : vector<16x112xf32>
    %452 = arith.mulf %445, %451 : vector<16x112xf32>
    %c0_330 = arith.constant 0 : index
    %c0_331 = arith.constant 0 : index
    %c0_332 = arith.constant 0 : index
    %453 = vector.load %arg28[%c0_330, %c0_331, %c0_332] : memref<4x16x16xf32, #tpu.memory_space<vmem>>, vector<1x16x16xf32>
    %454 = vector.shape_cast %453 : vector<1x16x16xf32> to vector<16x16xf32>
    %cst_333 = arith.constant dense<0.000000e+00> : vector<16x112xf32>
    %455 = tpu.matmul %454, %452, %cst_333 {dimension_numbers = #tpu.dot_dimension_numbers<[1], [0], [0], [1], [0, 0, 1, 1], [], []>} : vector<16x16xf32>, vector<16x112xf32>, vector<16x112xf32> -> vector<16x112xf32>
    %c0_334 = arith.constant 0 : index
    %c0_335 = arith.constant 0 : index
    %c0_336 = arith.constant 0 : index
    %456 = vector.load %arg29[%c0_334, %c0_335, %c0_336] : memref<4x16x1xf32, #tpu.memory_space<vmem>>, vector<1x16x1xf32>
    %457 = vector.shape_cast %456 : vector<1x16x1xf32> to vector<16x1xf32>
    %458 = vector.broadcast %457 : vector<16x1xf32> to vector<16x112xf32>
    %459 = arith.addf %455, %458 : vector<16x112xf32>
    %c3_337 = arith.constant 3 : index
    %c0_338 = arith.constant 0 : index
    %c0_339 = arith.constant 0 : index
    %460 = vector.load %arg36[%c3_337, %c0_338, %c0_339] : memref<4x112x112xf32, #tpu.memory_space<vmem>>, vector<1x96x112xf32>
    %461 = vector.shape_cast %460 : vector<1x96x112xf32> to vector<96x112xf32>
    %cst_340 = arith.constant dense<0.000000e+00> : vector<16x112xf32>
    %462 = tpu.matmul %402, %461, %cst_340 {dimension_numbers = #tpu.dot_dimension_numbers<[1], [0], [0], [1], [0, 0, 1, 1], [], []>} : vector<16x96xf32>, vector<96x112xf32>, vector<16x112xf32> -> vector<16x112xf32>
    %463 = arith.addf %459, %462 : vector<16x112xf32>
    %c3_341 = arith.constant 3 : index
    %c0_342 = arith.constant 0 : index
    %c0_343 = arith.constant 0 : index
    %464 = vector.load %arg37[%c3_341, %c0_342, %c0_343] : memref<4x1x112xf32, #tpu.memory_space<vmem>>, vector<1x1x112xf32>
    %465 = vector.shape_cast %464 : vector<1x1x112xf32> to vector<1x112xf32>
    %466 = vector.broadcast %465 : vector<1x112xf32> to vector<16x112xf32>
    %467 = arith.addf %463, %466 : vector<16x112xf32>
    %c0_344 = arith.constant 0 : index
    %c0_345 = arith.constant 0 : index
    %468 = vector.load %arg38[%c0_344, %c0_345] : memref<1x16xf32, #tpu.memory_space<vmem>>, vector<1x16xf32>
    %cst_346 = arith.constant dense<0.000000e+00> : vector<1x112xf32>
    %469 = tpu.matmul %468, %467, %cst_346 {dimension_numbers = #tpu.dot_dimension_numbers<[1], [0], [0], [1], [0, 0, 1, 1], [], []>} : vector<1x16xf32>, vector<16x112xf32>, vector<1x112xf32> -> vector<1x112xf32>
    %c0_347 = arith.constant 0 : index
    %c0_348 = arith.constant 0 : index
    %470 = vector.load %arg39[%c0_347, %c0_348] : memref<1x1xf32, #tpu.memory_space<vmem>>, vector<1x1xf32>
    %471 = vector.broadcast %470 : vector<1x1xf32> to vector<1x112xf32>
    %472 = arith.addf %469, %471 : vector<1x112xf32>
    %c0_349 = arith.constant 0 : index
    %c0_350 = arith.constant 0 : index
    %c0_351 = arith.constant 0 : index
    %473 = vector.load %arg40[%c0_349, %c0_350, %c0_351] : memref<1x1x112xf32, #tpu.memory_space<vmem>>, vector<1x1x112xf32>
    %474 = vector.shape_cast %473 : vector<1x1x112xf32> to vector<1x112xf32>
    %475 = vector.shape_cast %472 : vector<1x112xf32> to vector<1x1x112xf32>
    tpu.vector_store %arg40[%c0_349, %c0_350, %c0_351], %475 {strides = array<i32>} : memref<1x1x112xf32, #tpu.memory_space<vmem>>, vector<1x1x112xf32>,
    return
  }
  func.func @transform_0(%arg0: i32) -> (i32, i32, i32) {
    %c0_i32 = arith.constant 0 : i32
    %c0_i32_0 = arith.constant 0 : i32
    %c0_i32_1 = arith.constant 0 : i32
    return %arg0, %c0_i32, %c0_i32_0 : i32, i32, i32
  }
  func.func @transform_1(%arg0: i32) -> (i32, i32) {
    %c0_i32 = arith.constant 0 : i32
    %c0_i32_0 = arith.constant 0 : i32
    %c0_i32_1 = arith.constant 0 : i32
    return %c0_i32, %c0_i32_0 : i32, i32
  }
  func.func @transform_2(%arg0: i32) -> (i32, i32) {
    %c0_i32 = arith.constant 0 : i32
    %c0_i32_0 = arith.constant 0 : i32
    %c0_i32_1 = arith.constant 0 : i32
    return %c0_i32, %c0_i32_0 : i32, i32
  }
  func.func @transform_3(%arg0: i32) -> (i32, i32) {
    %c0_i32 = arith.constant 0 : i32
    %c0_i32_0 = arith.constant 0 : i32
    %c0_i32_1 = arith.constant 0 : i32
    return %c0_i32, %c0_i32_0 : i32, i32
  }
  func.func @transform_4(%arg0: i32) -> (i32, i32) {
    %c0_i32 = arith.constant 0 : i32
    %c0_i32_0 = arith.constant 0 : i32
    %c0_i32_1 = arith.constant 0 : i32
    return %c0_i32, %c0_i32_0 : i32, i32
  }
  func.func @transform_5(%arg0: i32) -> (i32, i32, i32) {
    %c0_i32 = arith.constant 0 : i32
    %c0_i32_0 = arith.constant 0 : i32
    %c0_i32_1 = arith.constant 0 : i32
    %c0_i32_2 = arith.constant 0 : i32
    return %c0_i32, %c0_i32_0, %c0_i32_1 : i32, i32, i32
  }
  func.func @transform_6(%arg0: i32) -> (i32, i32, i32) {
    %c0_i32 = arith.constant 0 : i32
    %c0_i32_0 = arith.constant 0 : i32
    %c0_i32_1 = arith.constant 0 : i32
    %c0_i32_2 = arith.constant 0 : i32
    return %c0_i32, %c0_i32_0, %c0_i32_1 : i32, i32, i32
  }
  func.func @transform_7(%arg0: i32) -> (i32, i32, i32) {
    %c0_i32 = arith.constant 0 : i32
    %c0_i32_0 = arith.constant 0 : i32
    %c0_i32_1 = arith.constant 0 : i32
    %c0_i32_2 = arith.constant 0 : i32
    return %c0_i32, %c0_i32_0, %c0_i32_1 : i32, i32, i32
  }
  func.func @transform_8(%arg0: i32) -> (i32, i32, i32) {
    %c0_i32 = arith.constant 0 : i32
    %c0_i32_0 = arith.constant 0 : i32
    %c0_i32_1 = arith.constant 0 : i32
    %c0_i32_2 = arith.constant 0 : i32
    return %c0_i32, %c0_i32_0, %c0_i32_1 : i32, i32, i32
  }
  func.func @transform_9(%arg0: i32) -> (i32, i32, i32) {
    %c0_i32 = arith.constant 0 : i32
    %c0_i32_0 = arith.constant 0 : i32
    %c0_i32_1 = arith.constant 0 : i32
    %c0_i32_2 = arith.constant 0 : i32
    return %c0_i32, %c0_i32_0, %c0_i32_1 : i32, i32, i32
  }
  func.func @transform_10(%arg0: i32) -> (i32, i32, i32) {
    %c0_i32 = arith.constant 0 : i32
    %c0_i32_0 = arith.constant 0 : i32
    %c0_i32_1 = arith.constant 0 : i32
    %c0_i32_2 = arith.constant 0 : i32
    return %c0_i32, %c0_i32_0, %c0_i32_1 : i32, i32, i32
  }
  func.func @transform_11(%arg0: i32) -> (i32, i32, i32) {
    %c0_i32 = arith.constant 0 : i32
    %c0_i32_0 = arith.constant 0 : i32
    %c0_i32_1 = arith.constant 0 : i32
    %c0_i32_2 = arith.constant 0 : i32
    return %c0_i32, %c0_i32_0, %c0_i32_1 : i32, i32, i32
  }
  func.func @transform_12(%arg0: i32) -> (i32, i32, i32) {
    %c0_i32 = arith.constant 0 : i32
    %c0_i32_0 = arith.constant 0 : i32
    %c0_i32_1 = arith.constant 0 : i32
    %c0_i32_2 = arith.constant 0 : i32
    return %c0_i32, %c0_i32_0, %c0_i32_1 : i32, i32, i32
  }
  func.func @transform_13(%arg0: i32) -> (i32, i32, i32) {
    %c0_i32 = arith.constant 0 : i32
    %c0_i32_0 = arith.constant 0 : i32
    %c0_i32_1 = arith.constant 0 : i32
    %c0_i32_2 = arith.constant 0 : i32
    return %c0_i32, %c0_i32_0, %c0_i32_1 : i32, i32, i32
  }
  func.func @transform_14(%arg0: i32) -> (i32, i32, i32) {
    %c0_i32 = arith.constant 0 : i32
    %c0_i32_0 = arith.constant 0 : i32
    %c0_i32_1 = arith.constant 0 : i32
    %c0_i32_2 = arith.constant 0 : i32
    return %c0_i32, %c0_i32_0, %c0_i32_1 : i32, i32, i32
  }
  func.func @transform_15(%arg0: i32) -> (i32, i32, i32) {
    %c0_i32 = arith.constant 0 : i32
    %c0_i32_0 = arith.constant 0 : i32
    %c0_i32_1 = arith.constant 0 : i32
    %c0_i32_2 = arith.constant 0 : i32
    return %c0_i32, %c0_i32_0, %c0_i32_1 : i32, i32, i32
  }
  func.func @transform_16(%arg0: i32) -> (i32, i32, i32) {
    %c0_i32 = arith.constant 0 : i32
    %c0_i32_0 = arith.constant 0 : i32
    %c0_i32_1 = arith.constant 0 : i32
    %c0_i32_2 = arith.constant 0 : i32
    return %c0_i32, %c0_i32_0, %c0_i32_1 : i32, i32, i32
  }
  func.func @transform_17(%arg0: i32) -> (i32, i32) {
    %c0_i32 = arith.constant 0 : i32
    %c0_i32_0 = arith.constant 0 : i32
    %c0_i32_1 = arith.constant 0 : i32
    return %c0_i32, %c0_i32_0 : i32, i32
  }
  func.func @transform_18(%arg0: i32) -> (i32, i32) {
    %c0_i32 = arith.constant 0 : i32
    %c0_i32_0 = arith.constant 0 : i32
    %c0_i32_1 = arith.constant 0 : i32
    return %c0_i32, %c0_i32_0 : i32, i32
  }
  func.func @transform_19(%arg0: i32) -> (i32, i32) {
    %c0_i32 = arith.constant 0 : i32
    %c0_i32_0 = arith.constant 0 : i32
    %c0_i32_1 = arith.constant 0 : i32
    return %c0_i32, %c0_i32_0 : i32, i32
  }
  func.func @transform_20(%arg0: i32) -> (i32, i32) {
    %c0_i32 = arith.constant 0 : i32
    %c0_i32_0 = arith.constant 0 : i32
    %c0_i32_1 = arith.constant 0 : i32
    return %c0_i32, %c0_i32_0 : i32, i32
  }
  func.func @transform_21(%arg0: i32) -> (i32, i32) {
    %c0_i32 = arith.constant 0 : i32
    %c0_i32_0 = arith.constant 0 : i32
    %c0_i32_1 = arith.constant 0 : i32
    return %c0_i32, %c0_i32_0 : i32, i32
  }
  func.func @transform_22(%arg0: i32) -> (i32, i32) {
    %c0_i32 = arith.constant 0 : i32
    %c0_i32_0 = arith.constant 0 : i32
    %c0_i32_1 = arith.constant 0 : i32
    return %c0_i32, %c0_i32_0 : i32, i32
  }
  func.func @transform_23(%arg0: i32) -> (i32, i32) {
    %c0_i32 = arith.constant 0 : i32
    %c0_i32_0 = arith.constant 0 : i32
    %c0_i32_1 = arith.constant 0 : i32
    return %c0_i32, %c0_i32_0 : i32, i32
  }
  func.func @transform_24(%arg0: i32) -> (i32, i32) {
    %c0_i32 = arith.constant 0 : i32
    %c0_i32_0 = arith.constant 0 : i32
    %c0_i32_1 = arith.constant 0 : i32
    return %c0_i32, %c0_i32_0 : i32, i32
  }
  func.func @transform_25(%arg0: i32) -> (i32, i32, i32) {
    %c0_i32 = arith.constant 0 : i32
    %c0_i32_0 = arith.constant 0 : i32
    %c0_i32_1 = arith.constant 0 : i32
    %c0_i32_2 = arith.constant 0 : i32
    return %c0_i32, %c0_i32_0, %c0_i32_1 : i32, i32, i32
  }
  func.func @transform_26(%arg0: i32) -> (i32, i32, i32) {
    %c0_i32 = arith.constant 0 : i32
    %c0_i32_0 = arith.constant 0 : i32
    %c0_i32_1 = arith.constant 0 : i32
    %c0_i32_2 = arith.constant 0 : i32
    return %c0_i32, %c0_i32_0, %c0_i32_1 : i32, i32, i32
  }
  func.func @transform_27(%arg0: i32) -> (i32, i32, i32) {
    %c0_i32 = arith.constant 0 : i32
    %c0_i32_0 = arith.constant 0 : i32
    %c0_i32_1 = arith.constant 0 : i32
    %c0_i32_2 = arith.constant 0 : i32
    return %c0_i32, %c0_i32_0, %c0_i32_1 : i32, i32, i32
  }
  func.func @transform_28(%arg0: i32) -> (i32, i32, i32) {
    %c0_i32 = arith.constant 0 : i32
    %c0_i32_0 = arith.constant 0 : i32
    %c0_i32_1 = arith.constant 0 : i32
    %c0_i32_2 = arith.constant 0 : i32
    return %c0_i32, %c0_i32_0, %c0_i32_1 : i32, i32, i32
  }
  func.func @transform_29(%arg0: i32) -> (i32, i32, i32) {
    %c0_i32 = arith.constant 0 : i32
    %c0_i32_0 = arith.constant 0 : i32
    %c0_i32_1 = arith.constant 0 : i32
    %c0_i32_2 = arith.constant 0 : i32
    return %c0_i32, %c0_i32_0, %c0_i32_1 : i32, i32, i32
  }
  func.func @transform_30(%arg0: i32) -> (i32, i32, i32) {
    %c0_i32 = arith.constant 0 : i32
    %c0_i32_0 = arith.constant 0 : i32
    %c0_i32_1 = arith.constant 0 : i32
    %c0_i32_2 = arith.constant 0 : i32
    return %c0_i32, %c0_i32_0, %c0_i32_1 : i32, i32, i32
  }
  func.func @transform_31(%arg0: i32) -> (i32, i32, i32) {
    %c0_i32 = arith.constant 0 : i32
    %c0_i32_0 = arith.constant 0 : i32
    %c0_i32_1 = arith.constant 0 : i32
    %c0_i32_2 = arith.constant 0 : i32
    return %c0_i32, %c0_i32_0, %c0_i32_1 : i32, i32, i32
  }
  func.func @transform_32(%arg0: i32) -> (i32, i32, i32) {
    %c0_i32 = arith.constant 0 : i32
    %c0_i32_0 = arith.constant 0 : i32
    %c0_i32_1 = arith.constant 0 : i32
    %c0_i32_2 = arith.constant 0 : i32
    return %c0_i32, %c0_i32_0, %c0_i32_1 : i32, i32, i32
  }
  func.func @transform_33(%arg0: i32) -> (i32, i32, i32) {
    %c0_i32 = arith.constant 0 : i32
    %c0_i32_0 = arith.constant 0 : i32
    %c0_i32_1 = arith.constant 0 : i32
    %c0_i32_2 = arith.constant 0 : i32
    return %c0_i32, %c0_i32_0, %c0_i32_1 : i32, i32, i32
  }
  func.func @transform_34(%arg0: i32) -> (i32, i32, i32) {
    %c0_i32 = arith.constant 0 : i32
    %c0_i32_0 = arith.constant 0 : i32
    %c0_i32_1 = arith.constant 0 : i32
    %c0_i32_2 = arith.constant 0 : i32
    return %c0_i32, %c0_i32_0, %c0_i32_1 : i32, i32, i32
  }
  func.func @transform_35(%arg0: i32) -> (i32, i32, i32) {
    %c0_i32 = arith.constant 0 : i32
    %c0_i32_0 = arith.constant 0 : i32
    %c0_i32_1 = arith.constant 0 : i32
    %c0_i32_2 = arith.constant 0 : i32
    return %c0_i32, %c0_i32_0, %c0_i32_1 : i32, i32, i32
  }
  func.func @transform_36(%arg0: i32) -> (i32, i32, i32) {
    %c0_i32 = arith.constant 0 : i32
    %c0_i32_0 = arith.constant 0 : i32
    %c0_i32_1 = arith.constant 0 : i32
    %c0_i32_2 = arith.constant 0 : i32
    return %c0_i32, %c0_i32_0, %c0_i32_1 : i32, i32, i32
  }
  func.func @transform_37(%arg0: i32) -> (i32, i32) {
    %c0_i32 = arith.constant 0 : i32
    %c0_i32_0 = arith.constant 0 : i32
    %c0_i32_1 = arith.constant 0 : i32
    return %c0_i32, %c0_i32_0 : i32, i32
  }
  func.func @transform_38(%arg0: i32) -> (i32, i32) {
    %c0_i32 = arith.constant 0 : i32
    %c0_i32_0 = arith.constant 0 : i32
    %c0_i32_1 = arith.constant 0 : i32
    return %c0_i32, %c0_i32_0 : i32, i32
  }
  func.func @transform_39(%arg0: i32) -> (i32, i32, i32) {
    %c0_i32 = arith.constant 0 : i32
    %c0_i32_0 = arith.constant 0 : i32
    %c0_i32_1 = arith.constant 0 : i32
    return %arg0, %c0_i32, %c0_i32_0 : i32, i32, i32
  }
}

</mosaic_0001>

<bundles_post_ra>
// kernel: _lambda_.1
= control target key start
LH: loop header
LB: loop body
LE: loop exit
PB: predicated region body
PF: predicated region fallthrough
CT: control target
= control target key end

     0   :  { %s10663_s6 = smov 1   ;;  %s10664_s10 = smov 2   ;;  %s11863_s0 = inlined_call_operand.smem [shape: u32[40], index: -1, kind: input, shape index: {}] }
   0x1   :  { %s10738_s5 = sld [smem:[%s11863_s0]]   ;;  %s10665_s14 = smov 3  }
   0x2   :  { %s10743_s9 = sld [smem:[%s11863_s0 + %s10663_s6]]   ;;  %s10666_s18 = smov 4  }
   0x3   :  { %s10748_s13 = sld [smem:[%s11863_s0 + %s10664_s10]]   ;;  %s10667_s22 = smov 5  }
   0x4   :  { %s10753_s17 = sld [smem:[%s11863_s0 + %s10665_s14]]   ;;  %s10668_s26 = smov 6  }
   0x5   :  { %s10758_s21 = sld [smem:[%s11863_s0 + %s10666_s18]]   ;;  %s10669_s30 = smov 7  }
   0x6   :  { %s10763_s25 = sld [smem:[%s11863_s0 + %s10667_s22]]   ;;  %s10670_s4 = smov 8  }
   0x7   :  { %11909 = sst [smem:[#allocation37_spill]] %s10738_s5  ;;  %s10671_s10 = smov 9  }
   0x8   :  { %11910 = sst [smem:[#allocation38_spill]] %s10743_s9  ;;  %s10672_s15 = smov 10  }
   0x9   :  { %s10768_s29 = sld [smem:[%s11863_s0 + %s10668_s26]]   ;;  %s10673_s20 = smov 11  }
   0xa   :  { %11911 = sst [smem:[#allocation39_spill]] %s10753_s17  ;;  %s10674_s26 = smov 12  }
   0xb   :  { %11912 = sst [smem:[#allocation40_spill]] %s10758_s21  ;;  %s10675_s1 = smov 13  }
   0xc   :  { %s10773_s3 = sld [smem:[%s11863_s0 + %s10669_s30]]   ;;  %s10676_s7 = smov 14  }
   0xd   :  { %s10778_s8 = sld [smem:[%s11863_s0 + %s10670_s4]]   ;;  %s10678_s22 = smov 16  }
   0xe   :  { %s10783_s14 = sld [smem:[%s11863_s0 + %s10671_s10]]   ;;  %s10679_s28 = smov 17  }
   0xf   :  { %11913 = sst [smem:[#allocation41_spill]] %s10768_s29  ;;  %s10701_s16 = smov 39  }
  0x10   :  { %s10788_s19 = sld [smem:[%s11863_s0 + %s10672_s15]]   ;;  %s10677_s15 = smov 15  }
  0x11   :  { %s10793_s24 = sld [smem:[%s11863_s0 + %s10673_s20]]  }
  0x12   :  { %11914 = sst [smem:[#allocation42_spill]] %s10773_s3 }
  0x13   :  { %11915 = sst [smem:[#allocation43_spill]] %s10778_s8 }
  0x14   :  { %s10798_s30 = sld [smem:[%s11863_s0 + %s10674_s26]]  }
  0x15   :  { %s10803_s6 = sld [smem:[%s11863_s0 + %s10675_s1]]  }
  0x16   :  { %11916 = sst [smem:[#allocation44_spill]] %s10788_s19 }
  0x17   :  { %11917 = sst [smem:[#allocation45_spill]] %s10793_s24 }
  0x18   :  { %s10808_s12 = sld [smem:[%s11863_s0 + %s10676_s7]]   ;;  %s10680_s7 = smov 18  }
  0x19   :  { %s10813_s20 = sld [smem:[%s11863_s0 + %s10677_s15]]   ;;  %s10681_s15 = smov 19  }
  0x1a   :  { %11918 = sst [smem:[#allocation46_spill]] %s10798_s30 }
  0x1b   :  { %11919 = sst [smem:[#allocation47_spill]] %s10803_s6 }
  0x1c   :  { %s10818_s27 = sld [smem:[%s11863_s0 + %s10678_s22]]   ;;  %s10682_s22 = smov 20  }
  0x1d   :  { %s10823_s4 = sld [smem:[%s11863_s0 + %s10679_s28]]   ;;  %s10683_s28 = smov 21  }
  0x1e   :  { %s10828_s6 = sld [smem:[%s11863_s0 + %s10680_s7]]   ;;  %s10684_s7 = smov 22  }
  0x1f   :  { %11920 = sst [smem:[#allocation48_spill]] %s10813_s20 }
  0x20   :  { %s10833_s20 = sld [smem:[%s11863_s0 + %s10681_s15]]   ;;  %s10685_s15 = smov 23  }
  0x21   :  { %s10838_s9 = sld [smem:[%s11863_s0 + %s10682_s22]]   ;;  %s10686_s22 = smov 24  }
  0x22   :  { %s10843_s8 = sld [smem:[%s11863_s0 + %s10683_s28]]   ;;  %s10687_s28 = smov 25  }
  0x23   :  { %11921 = sst [smem:[#allocation49_spill]] %s10823_s4 }
  0x24   :  { %11922 = sst [smem:[#allocation50_spill]] %s10828_s6 }
  0x25   :  { %s10848_s6 = sld [smem:[%s11863_s0 + %s10684_s7]]   ;;  %s10688_s7 = smov 26  }
  0x26   :  { %11923 = sst [smem:[#allocation51_spill]] %s10833_s20 }
  0x27   :  { %s10853_s20 = sld [smem:[%s11863_s0 + %s10685_s15]]   ;;  %s10689_s15 = smov 27  }
  0x28   :  { %11924 = sst [smem:[#allocation52_spill]] %s10843_s8 }
  0x29   :  { %s10858_s5 = sld [smem:[%s11863_s0 + %s10686_s22]]   ;;  %s10690_s22 = smov 28  }
  0x2a   :  { %s10863_s30 = sld [smem:[%s11863_s0 + %s10687_s28]]   ;;  %s10691_s28 = smov 29  }
  0x2b   :  { %11925 = sst [smem:[#allocation53_spill]] %s10848_s6 }
  0x2c   :  { %s10868_s24 = sld [smem:[%s11863_s0 + %s10688_s7]]   ;;  %s10692_s7 = smov 30  }
  0x2d   :  { %11926 = sst [smem:[#allocation54_spill]] %s10853_s20 }
  0x2e   :  { %s10873_s20 = sld [smem:[%s11863_s0 + %s10689_s15]]   ;;  %s10693_s15 = smov 31  }
  0x2f   :  { %11927 = sst [smem:[#allocation55_spill]] %s10858_s5 }
  0x30   :  { %11928 = sst [smem:[#allocation56_spill]] %s10863_s30 }
  0x31   :  { %s10878_s5 = sld [smem:[%s11863_s0 + %s10690_s22]]   ;;  %s10694_s22 = smov 32  }
  0x32   :  { %11929 = sst [smem:[#allocation57_spill]] %s10868_s24 }
  0x33   :  { %s10883_s30 = sld [smem:[%s11863_s0 + %s10691_s28]]   ;;  %s10695_s28 = smov 33  }
  0x34   :  { %s10888_s24 = sld [smem:[%s11863_s0 + %s10692_s7]]   ;;  %s10696_s7 = smov 34  }
  0x35   :  { %s10893_s19 = sld [smem:[%s11863_s0 + %s10693_s15]]   ;;  %s10697_s15 = smov 35  }
  0x36   :  { %s10903_s29 = sld [smem:[%s11863_s0 + %s10695_s28]]   ;;  %s10699_s28 = smov 37  }
  0x37   :  { %11930 = sst [smem:[#allocation58_spill]] %s10878_s5 }
  0x38   :  { %s10898_s5 = sld [smem:[%s11863_s0 + %s10694_s22]]   ;;  %s10698_s22 = smov 36  }
  0x39   :  { %s10931_s21 = sld [smem:[%s11863_s0 + %s10701_s16]]  }
  0x3a   :  { %11931 = sst [smem:[#allocation59_spill]] %s10888_s24 }
  0x3b   :  { %11932 = sst [smem:[#allocation60_spill]] %s10893_s19 }
  0x3c   :  { %11934 = sst [smem:[#allocation62_spill]] %s10903_s29 }
  0x3d   :  { %s10908_s24 = sld [smem:[%s11863_s0 + %s10696_s7]]   ;;  %s10700_s7 = smov 38  }
  0x3e   :  { %11933 = sst [smem:[#allocation61_spill]] %s10898_s5 }
  0x3f   :  { %s10913_s19 = sld [smem:[%s11863_s0 + %s10697_s15]]  }
  0x40   :  { %s10918_s5 = sld [smem:[%s11863_s0 + %s10698_s22]]  }
  0x41   :  { %s10923_s29 = sld [smem:[%s11863_s0 + %s10699_s28]]  }
  0x42   :  { %s7593_s17 = sld [smem:[%s11863_s0 + %s10700_s7]]  }
  0x46   :  { %11935 = sst [smem:[#allocation63_spill]] %s10918_s5 }
  0x48   :  { %v84_v0 = vstv %s7593_s17 }
  0x49   :  { %85 = vst [vmem:[#allocation2] sm:$0x1] %v84_v0 }
  0x4a   :  { %86 = vsyncpa [#allocation4], 0 }
  0x4b   :  { %87 = vsyncpa [#allocation6], 0 }
  0x4c   :  { %88 = vsyncpa [#allocation9], 0 }
  0x4d   :  { %89 = vsyncpa [#allocation12], 0 }
  0x4e   :  { %90 = vsyncpa [#allocation15], 0 }
  0x4f   :  { %91 = vsyncpa [#allocation18], 0 }
  0x50   :  { %92 = vsyncpa [#allocation21], 0 }
  0x51   :  { %93 = vsyncpa [#allocation24], 0 }
  0x52   :  { %94 = vsyncpa [#allocation27], 0  ;;  %s10933_s22 = smov 0  }
  0x53 LB: > { %s11936_s8 = sld [smem:[#allocation52_spill]]  ;;  %s11937_s6 = sld [smem:[#allocation53_spill]]  ;;  %s10661_s22 = sphi %s10933_s22, %s100_s22  }
  0x54   : > { %s11938_s5 = sld [smem:[#allocation63_spill]]  ;;  %s11939_s4 = sld [smem:[#allocation49_spill]] }
  0x55   : > { %s11940_s3 = sld [smem:[#allocation42_spill]]  ;;  %s10939_s0 = sadd.s32 4294967295, %s10661_s22  }
  0x56   : > { %p7597_p0 = scmp.ge.s32.totalorder %s10661_s22, 1  ;;  %p955_p1 = scmp.lt.s32.totalorder %s10661_s22, 3 }
  0x57   : > { %p11884_p2 = scmp.eq.s32.totalorder %s10939_s0, 0  ;;  %s10702_s23 = smov [#allocation5]  }
  0x58   : > { %p10944_p3 = pnand %p7597_p0, %p955_p1  ;;  %s989_s26 = sshll.u32 %s10702_s23, 4  ;;  %s10948_s26 = int_to_ptr.vmem [resolvable:$true] %s989_s26 }
  0x59   : > { %s10703_s28 = smov [#allocation8]   ;;  %s10704_s7 = smov [#allocation11]  }
  0x5a   : > { %s11941_s17 = scalar_select %p10944_p3, 1, 0 }
  0x5b   : > { %p9897_p4 = pneg %p10944_p3  ;;  %s1021_s1 = sshll.u32 %s10703_s28, 4  ;;  %s10952_s1 = int_to_ptr.vmem [resolvable:$true] %s1021_s1 }
  0x5c   : > { %s10960_s10 = sshll.u32 %s10704_s7, 4  ;;  %s10171_s11 = scalar_lea.hbm %s10763_s25, 2048  ;;  %s1063_s10 = int_to_ptr.vmem [resolvable:$true] %s10960_s10 }
  0x5d   : > { %p10956_p5 = pnand %p11884_p2, %p9897_p4  ;;  %p10172_p6 = scmp.ne.s32.totalorder %s10763_s25, %s10171_s11 }
  0x5e   : > { %p10178_p10 = scmp.lt.u32.totalorder %s10171_s11, %s10763_s25 }
  0x5f   : > { %p10966_p7 = pneg %p10956_p5 }
  0x61   : > { %p10174_p8 = pnand %p10966_p7, %p10172_p6 }
  0x63   : > { %p10175_p9 = pneg %p10174_p8 }
  0x65   : > { %p10180_p11 = pnand %p10178_p10, %p10175_p9 }
  0x67   : > { %10183 = shalt.err (!%p10180_p11)
}
  0x68   : > { %s10184_s15 = scalar_lea.vmem %s10948_s26, 2048  ;;  %p10192_p1 = scmp.lt.s32.totalorder %s10948_s26, %s10948_s26 }
  0x69   : > { %p10185_p12 = scmp.ne.s32.totalorder %s10948_s26, %s10184_s15  ;;  %p10193_p4 = scmp.lt.s32.totalorder %s10184_s15, %s10184_s15 }
  0x6b   : > { %p10187_p13 = pnand %p10185_p12, %p10966_p7  ;;  %p10194_p2 = por %p10193_p4, %p10192_p1 }
  0x6d   : > { %p10188_p0 = pneg %p10187_p13 }
  0x6f   : > { %p10195_p3 = pnand %p10194_p2, %p10188_p0 }
  0x71   : > { %10198 = shalt.err (!%p10195_p3)
}
  0x72   : > { %s11890_s18 = smov 128   ;;  %s11892_s23 = smov 8  }
  0x73   : > { %9903 = dma.hbm_to_vmem [thread:$0]  (!%p10956_p5), %s10763_s25, 2048, %s10948_s26, [#allocation6], %s11890_s18, %s11890_s18, %s11892_s23  }
  0x74   : > { %s10199_s28 = scalar_lea.hbm %s10783_s14, 1024 }
  0x75   : > { %p10200_p6 = scmp.ne.s32.totalorder %s10783_s14, %s10199_s28  ;;  %p10206_p3 = scmp.lt.u32.totalorder %s10199_s28, %s10783_s14 }
  0x77   : > { %p10202_p8 = pnand %p10200_p6, %p10966_p7 }
  0x79   : > { %p10203_p2 = pneg %p10202_p8 }
  0x7b   : > { %p10208_p9 = pnand %p10206_p3, %p10203_p2 }
  0x7d   : > { %10211 = shalt.err (!%p10208_p9)
}
  0x7e   : > { %s10212_s7 = scalar_lea.vmem %s10952_s1, 1024  ;;  %p10220_p13 = scmp.lt.s32.totalorder %s10952_s1, %s10952_s1 }
  0x7f   : > { %p10213_p10 = scmp.ne.s32.totalorder %s10952_s1, %s10212_s7  ;;  %p10221_p0 = scmp.lt.s32.totalorder %s10212_s7, %s10212_s7 }
  0x81   : > { %p10215_p11 = pnand %p10213_p10, %p10966_p7  ;;  %p10222_p1 = por %p10221_p0, %p10220_p13 }
  0x83   : > { %p10216_p12 = pneg %p10215_p11 }
  0x85   : > { %p10223_p4 = pnand %p10222_p1, %p10216_p12 }
  0x87   : > { %10226 = shalt.err (!%p10223_p4)
}
  0x88   : > { %9909 = dma.hbm_to_vmem [thread:$0]  (!%p10956_p5), %s10783_s14, 1024, %s10952_s1, [#allocation9], %s11890_s18, %s11890_s18, %s11892_s23  }
  0x89   : > { %s10707_s26 = smov [#allocation14]   ;;  %s10227_s15 = scalar_lea.hbm %s10818_s27, 64 }
  0x8a   : > { %s1093_s11 = sshll.u32 %s10707_s26, 4  ;;  %p10228_p6 = scmp.ne.s32.totalorder %s10818_s27, %s10227_s15  ;;  %s1094_s11 = int_to_ptr.vmem [resolvable:$true] %s1093_s11 }
  0x8b   : > { %p10234_p3 = scmp.lt.u32.totalorder %s10227_s15, %s10818_s27 }
  0x8c   : > { %p10230_p8 = pnand %p10228_p6, %p10966_p7 }
  0x8e   : > { %p10231_p2 = pneg %p10230_p8 }
  0x90   : > { %p10236_p9 = pnand %p10234_p3, %p10231_p2 }
  0x92   : > { %10239 = shalt.err (!%p10236_p9)
}
  0x93   : > { %s10240_s28 = scalar_lea.vmem %s1063_s10, 64  ;;  %p10248_p13 = scmp.lt.s32.totalorder %s1063_s10, %s1063_s10 }
  0x94   : > { %p10241_p10 = scmp.ne.s32.totalorder %s1063_s10, %s10240_s28  ;;  %p10249_p0 = scmp.lt.s32.totalorder %s10240_s28, %s10240_s28 }
  0x96   : > { %p10243_p11 = pnand %p10241_p10, %p10966_p7  ;;  %p10250_p1 = por %p10249_p0, %p10248_p13 }
  0x98   : > { %p10244_p12 = pneg %p10243_p11 }
  0x9a   : > { %p10251_p4 = pnand %p10250_p1, %p10244_p12 }
  0x9c   : > { %10254 = shalt.err (!%p10251_p4)
}
  0x9d   : > { %s11886_s1 = smov 16   ;;  %s11888_s7 = smov 1  }
  0x9e   : > { %9915 = dma.hbm_to_vmem [thread:$0]  (!%p10956_p5), %s10818_s27, 64, %s1063_s10, [#allocation12], %s11886_s1, %s11886_s1, %s11888_s7  }
  0x9f   : > { %s10255_s26 = scalar_lea.hbm %s10838_s9, 16 }
  0xa0   : > { %p10256_p6 = scmp.ne.s32.totalorder %s10838_s9, %s10255_s26  ;;  %p10262_p3 = scmp.lt.u32.totalorder %s10255_s26, %s10838_s9 }
  0xa2   : > { %p10258_p8 = pnand %p10256_p6, %p10966_p7 }
  0xa4   : > { %p10259_p2 = pneg %p10258_p8 }
  0xa6   : > { %p10264_p9 = pnand %p10262_p3, %p10259_p2 }
  0xa8   : > { %10267 = shalt.err (!%p10264_p9)
}
  0xa9   : > { %s10268_s15 = scalar_lea.vmem %s1094_s11, 16  ;;  %s10275_s28 = scalar_lea.vmem %s1094_s11, 32 }
  0xaa   : > { %p10269_p10 = scmp.ne.s32.totalorder %s1094_s11, %s10268_s15  ;;  %p10276_p13 = scmp.lt.s32.totalorder %s1094_s11, %s1094_s11 }
  0xab   : > { %p10277_p0 = scmp.lt.s32.totalorder %s10275_s28, %s10268_s15 }
  0xac   : > { %p10271_p11 = pnand %p10269_p10, %p10966_p7 }
  0xad   : > { %p10278_p1 = por %p10277_p0, %p10276_p13 }
  0xae   : > { %p10272_p12 = pneg %p10271_p11 }
  0xb0   : > { %p10279_p4 = pnand %p10278_p1, %p10272_p12 }
  0xb2   : > { %10282 = shalt.err (!%p10279_p4)
}
  0xb3   : > { %9921 = dma.hbm_to_vmem [thread:$0]  (!%p10956_p5), %s10838_s9, 16, %s1094_s11, [#allocation15]  }
  0xb4   : > { %s10710_s10 = smov [#allocation17]   ;;  %s10711_s1 = smov [#allocation20]  }
  0xb5   : > { %s1117_s26 = sshll.u32 %s10710_s10, 4  ;;  %s1155_s7 = sshll.u32 %s10711_s1, 4  ;;  %s1118_s26 = int_to_ptr.vmem [resolvable:$true] %s1117_s26  ;;  %s1156_s7 = int_to_ptr.vmem [resolvable:$true] %s1155_s7 }
  0xb6   : > { %s10283_s18 = scalar_lea.hbm %s11937_s6, 16 }
  0xb7   : > { %p10284_p6 = scmp.ne.s32.totalorder %s11937_s6, %s10283_s18  ;;  %p10290_p3 = scmp.lt.u32.totalorder %s10283_s18, %s11937_s6 }
  0xb9   : > { %p10286_p8 = pnand %p10284_p6, %p10966_p7 }
  0xbb   : > { %p10287_p2 = pneg %p10286_p8 }
  0xbd   : > { %p10292_p9 = pnand %p10290_p3, %p10287_p2 }
  0xbf   : > { %10295 = shalt.err (!%p10292_p9)
}
  0xc0   : > { %s10296_s15 = scalar_lea.vmem %s1118_s26, 16  ;;  %s10303_s11 = scalar_lea.vmem %s1118_s26, 32 }
  0xc1   : > { %p10297_p10 = scmp.ne.s32.totalorder %s1118_s26, %s10296_s15  ;;  %p10304_p13 = scmp.lt.s32.totalorder %s1118_s26, %s1118_s26 }
  0xc2   : > { %p10305_p0 = scmp.lt.s32.totalorder %s10303_s11, %s10296_s15 }
  0xc3   : > { %p10299_p11 = pnand %p10297_p10, %p10966_p7 }
  0xc4   : > { %p10306_p1 = por %p10305_p0, %p10304_p13 }
  0xc5   : > { %p10300_p12 = pneg %p10299_p11 }
  0xc7   : > { %p10307_p4 = pnand %p10306_p1, %p10300_p12 }
  0xc9   : > { %10310 = shalt.err (!%p10307_p4)
}
  0xca   : > { %9927 = dma.hbm_to_vmem [thread:$0]  (!%p10956_p5), %s11937_s6, 16, %s1118_s26, [#allocation18]  }
  0xcb   : > { %s10311_s18 = scalar_lea.hbm %s10883_s30, 1024 }
  0xcc   : > { %p10312_p6 = scmp.ne.s32.totalorder %s10883_s30, %s10311_s18  ;;  %p10318_p3 = scmp.lt.u32.totalorder %s10311_s18, %s10883_s30 }
  0xce   : > { %p10314_p8 = pnand %p10312_p6, %p10966_p7 }
  0xd0   : > { %p10315_p2 = pneg %p10314_p8 }
  0xd2   : > { %p10320_p9 = pnand %p10318_p3, %p10315_p2 }
  0xd4   : > { %10323 = shalt.err (!%p10320_p9)
}
  0xd5   : > { %s10324_s1 = scalar_lea.vmem %s1156_s7, 1024  ;;  %p10332_p13 = scmp.lt.s32.totalorder %s1156_s7, %s1156_s7 }
  0xd6   : > { %p10325_p10 = scmp.ne.s32.totalorder %s1156_s7, %s10324_s1  ;;  %p10333_p0 = scmp.lt.s32.totalorder %s10324_s1, %s10324_s1 }
  0xd8   : > { %p10327_p11 = pnand %p10325_p10, %p10966_p7  ;;  %p10334_p1 = por %p10333_p0, %p10332_p13 }
  0xda   : > { %p10328_p12 = pneg %p10327_p11 }
  0xdc   : > { %p10335_p4 = pnand %p10334_p1, %p10328_p12 }
  0xde   : > { %10338 = shalt.err (!%p10335_p4)
}
  0xdf   : > { %s11944_s28 = smov 128   ;;  %s10712_s10 = smov [#allocation23]  }
  0xe0   : > { %9933 = dma.hbm_to_vmem [thread:$0]  (!%p10956_p5), %s10883_s30, 1024, %s1156_s7, [#allocation21], %s11944_s28, %s11944_s28, %s11892_s23  }
  0xe1   : > { %s1193_s26 = sshll.u32 %s10712_s10, 4  ;;  %s10713_s15 = smov [#allocation3]   ;;  %s1194_s26 = int_to_ptr.vmem [resolvable:$true] %s1193_s26 }
  0xe2   : > { %s970_s11 = sshll.u32 %s10713_s15, 4  ;;  %s10339_s18 = scalar_lea.hbm %s10913_s19, 7168  ;;  %s971_s11 = int_to_ptr.vmem [resolvable:$true] %s970_s11 }
  0xe3   : > { %p10340_p6 = scmp.ne.s32.totalorder %s10913_s19, %s10339_s18  ;;  %p10346_p3 = scmp.lt.u32.totalorder %s10339_s18, %s10913_s19 }
  0xe5   : > { %p10342_p8 = pnand %p10340_p6, %p10966_p7 }
  0xe7   : > { %p10343_p2 = pneg %p10342_p8 }
  0xe9   : > { %p10348_p9 = pnand %p10346_p3, %p10343_p2 }
  0xeb   : > { %10351 = shalt.err (!%p10348_p9)
}
  0xec   : > { %s10352_s1 = scalar_lea.vmem %s1194_s26, 7168  ;;  %p10360_p13 = scmp.lt.s32.totalorder %s1194_s26, %s1194_s26 }
  0xed   : > { %p10353_p10 = scmp.ne.s32.totalorder %s1194_s26, %s10352_s1  ;;  %p10361_p0 = scmp.lt.s32.totalorder %s10352_s1, %s10352_s1 }
  0xef   : > { %p10355_p11 = pnand %p10353_p10, %p10966_p7  ;;  %p10362_p1 = por %p10361_p0, %p10360_p13 }
  0xf1   : > { %p10356_p12 = pneg %p10355_p11 }
  0xf3   : > { %p10363_p4 = pnand %p10362_p1, %p10356_p12 }
  0xf5   : > { %10366 = shalt.err (!%p10363_p4)
}
  0xf6   : > { %9939 = dma.hbm_to_vmem [thread:$0]  (!%p10956_p5), %s10913_s19, 7168, %s1194_s26, [#allocation24], %s11944_s28, %s11944_s28, %s11892_s23  }
  0xf7   : > { %s10367_s7 = scalar_lea.hbm %s10748_s13, 1792 }
  0xf8   : > { %p10368_p6 = scmp.ne.s32.totalorder %s10748_s13, %s10367_s7  ;;  %p10374_p3 = scmp.lt.u32.totalorder %s10367_s7, %s10748_s13 }
  0xfa   : > { %p10370_p8 = pnand %p10368_p6, %p10966_p7 }
  0xfc   : > { %p10371_p2 = pneg %p10370_p8 }
  0xfe   : > { %p10376_p9 = pnand %p10374_p3, %p10371_p2 }
 0x100   : > { %10379 = shalt.err (!%p10376_p9)
}
 0x101   : > { %s10380_s10 = scalar_lea.vmem %s971_s11, 1792  ;;  %p10388_p13 = scmp.lt.s32.totalorder %s971_s11, %s971_s11 }
 0x102   : > { %p10381_p10 = scmp.ne.s32.totalorder %s971_s11, %s10380_s10  ;;  %p10389_p0 = scmp.lt.s32.totalorder %s10380_s10, %s10380_s10 }
 0x104   : > { %p10383_p11 = pnand %p10381_p10, %p10966_p7  ;;  %p10390_p1 = por %p10389_p0, %p10388_p13 }
 0x106   : > { %p10384_p12 = pneg %p10383_p11 }
 0x108   : > { %p10391_p4 = pnand %p10390_p1, %p10384_p12 }
 0x10a   : > { %10394 = shalt.err (!%p10391_p4)
}
 0x10b   : > { %9900 = dma.hbm_to_vmem [thread:$0]  (!%p10956_p5), %s10748_s13, 1792, %s971_s11, [#allocation4], %s11944_s28, %s11944_s28, %s11892_s23  }
 0x10c   : > { %s10714_s26 = smov [#allocation7]   ;;  %s10715_s18 = smov [#allocation10]  }
 0x10d   : > { %s1005_s15 = sshll.u32 %s10714_s26, 4  ;;  %s1046_s1 = sshll.u32 %s10715_s18, 4  ;;  %s1006_s15 = int_to_ptr.vmem [resolvable:$true] %s1005_s15  ;;  %s1047_s1 = int_to_ptr.vmem [resolvable:$true] %s1046_s1 }
 0x10e   : > { %s10395_s7 = scalar_lea.hbm %s11940_s3, 1024 }
 0x10f   : > { %p10396_p6 = scmp.ne.s32.totalorder %s11940_s3, %s10395_s7  ;;  %p10402_p3 = scmp.lt.u32.totalorder %s10395_s7, %s11940_s3 }
 0x111   : > { %p10398_p8 = pnand %p10396_p6, %p10966_p7 }
 0x113   : > { %p10399_p2 = pneg %p10398_p8 }
 0x115   : > { %p10404_p9 = pnand %p10402_p3, %p10399_p2 }
 0x117   : > { %10407 = shalt.err (!%p10404_p9)
}
 0x118   : > { %s10408_s10 = scalar_lea.vmem %s1006_s15, 1024  ;;  %p10416_p13 = scmp.lt.s32.totalorder %s1006_s15, %s1006_s15 }
 0x119   : > { %p10409_p10 = scmp.ne.s32.totalorder %s1006_s15, %s10408_s10  ;;  %p10417_p0 = scmp.lt.s32.totalorder %s10408_s10, %s10408_s10 }
 0x11b   : > { %p10411_p11 = pnand %p10409_p10, %p10966_p7  ;;  %p10418_p1 = por %p10417_p0, %p10416_p13 }
 0x11d   : > { %p10412_p12 = pneg %p10411_p11 }
 0x11f   : > { %p10419_p4 = pnand %p10418_p1, %p10412_p12 }
 0x121   : > { %10422 = shalt.err (!%p10419_p4)
}
 0x122   : > { %9906 = dma.hbm_to_vmem [thread:$0]  (!%p10956_p5), %s11940_s3, 1024, %s1006_s15, [#allocation6], %s11944_s28, %s11944_s28, %s11892_s23  }
 0x123   : > { %s10423_s11 = scalar_lea.hbm %s10808_s12, 64 }
 0x124   : > { %p10424_p6 = scmp.ne.s32.totalorder %s10808_s12, %s10423_s11  ;;  %p10430_p3 = scmp.lt.u32.totalorder %s10423_s11, %s10808_s12 }
 0x126   : > { %p10426_p8 = pnand %p10424_p6, %p10966_p7 }
 0x128   : > { %p10427_p2 = pneg %p10426_p8 }
 0x12a   : > { %p10432_p9 = pnand %p10430_p3, %p10427_p2 }
 0x12c   : > { %10435 = shalt.err (!%p10432_p9)
}
 0x12d   : > { %s10436_s26 = scalar_lea.vmem %s1047_s1, 64  ;;  %p10444_p13 = scmp.lt.s32.totalorder %s1047_s1, %s1047_s1 }
 0x12e   : > { %p10437_p10 = scmp.ne.s32.totalorder %s1047_s1, %s10436_s26  ;;  %p10445_p0 = scmp.lt.s32.totalorder %s10436_s26, %s10436_s26 }
 0x130   : > { %p10439_p11 = pnand %p10437_p10, %p10966_p7  ;;  %p10446_p1 = por %p10445_p0, %p10444_p13 }
 0x132   : > { %p10440_p12 = pneg %p10439_p11 }
 0x134   : > { %p10447_p4 = pnand %p10446_p1, %p10440_p12 }
 0x136   : > { %10450 = shalt.err (!%p10447_p4)
}
 0x137   : > { %s11945_s15 = smov 1   ;;  %s11946_s18 = smov 16  }
 0x138   : > { %9912 = dma.hbm_to_vmem [thread:$0]  (!%p10956_p5), %s10808_s12, 64, %s1047_s1, [#allocation9], %s11946_s18, %s11946_s18, %s11945_s15  }
 0x139   : > { %s10716_s7 = smov [#allocation13]   ;;  %s10717_s11 = smov [#allocation16]  }
 0x13a   : > { %s1076_s10 = sshll.u32 %s10716_s7, 4  ;;  %s1103_s23 = sshll.u32 %s10717_s11, 4  ;;  %s1077_s10 = int_to_ptr.vmem [resolvable:$true] %s1076_s10  ;;  %s1104_s23 = int_to_ptr.vmem [resolvable:$true] %s1103_s23 }
 0x13b   : > { %s10451_s26 = scalar_lea.hbm %s11939_s4, 32 }
 0x13c   : > { %p10452_p6 = scmp.ne.s32.totalorder %s11939_s4, %s10451_s26  ;;  %p10458_p3 = scmp.lt.u32.totalorder %s10451_s26, %s11939_s4 }
 0x13e   : > { %p10454_p8 = pnand %p10452_p6, %p10966_p7 }
 0x140   : > { %p10455_p2 = pneg %p10454_p8 }
 0x142   : > { %p10460_p9 = pnand %p10458_p3, %p10455_p2 }
 0x144   : > { %10463 = shalt.err (!%p10460_p9)
}
 0x145   : > { %s10464_s3 = scalar_lea.vmem %s1077_s10, 32  ;;  %p10472_p13 = scmp.lt.s32.totalorder %s1077_s10, %s1077_s10 }
 0x146   : > { %p10465_p10 = scmp.ne.s32.totalorder %s1077_s10, %s10464_s3  ;;  %p10473_p0 = scmp.lt.s32.totalorder %s10464_s3, %s10464_s3 }
 0x148   : > { %p10467_p11 = pnand %p10465_p10, %p10966_p7  ;;  %p10474_p1 = por %p10473_p0, %p10472_p13 }
 0x14a   : > { %p10468_p12 = pneg %p10467_p11 }
 0x14c   : > { %p10475_p4 = pnand %p10474_p1, %p10468_p12 }
 0x14e   : > { %10478 = shalt.err (!%p10475_p4)
}
 0x14f   : > { %9918 = dma.hbm_to_vmem [thread:$0]  (!%p10956_p5), %s11939_s4, 32, %s1077_s10, [#allocation12]  }
 0x150   : > { %s10479_s1 = scalar_lea.hbm %s11936_s8, 256 }
 0x151   : > { %p10480_p6 = scmp.ne.s32.totalorder %s11936_s8, %s10479_s1  ;;  %p10486_p3 = scmp.lt.u32.totalorder %s10479_s1, %s11936_s8 }
 0x153   : > { %p10482_p8 = pnand %p10480_p6, %p10966_p7 }
 0x155   : > { %p10483_p2 = pneg %p10482_p8 }
 0x157   : > { %p10488_p9 = pnand %p10486_p3, %p10483_p2 }
 0x159   : > { %10491 = shalt.err (!%p10488_p9)
}
 0x15a   : > { %s10492_s3 = scalar_lea.vmem %s1104_s23, 256  ;;  %p10500_p13 = scmp.lt.s32.totalorder %s1104_s23, %s1104_s23 }
 0x15b   : > { %p10493_p10 = scmp.ne.s32.totalorder %s1104_s23, %s10492_s3  ;;  %p10501_p0 = scmp.lt.s32.totalorder %s10492_s3, %s10492_s3 }
 0x15d   : > { %p10495_p11 = pnand %p10493_p10, %p10966_p7  ;;  %p10502_p1 = por %p10501_p0, %p10500_p13 }
 0x15f   : > { %p10496_p12 = pneg %p10495_p11 }
 0x161   : > { %p10503_p4 = pnand %p10502_p1, %p10496_p12 }
 0x163   : > { %10506 = shalt.err (!%p10503_p4)
}
 0x164   : > { %s11947_s7 = smov 8   ;;  %s10718_s10 = smov [#allocation19]  }
 0x165   : > { %9924 = dma.hbm_to_vmem [thread:$0]  (!%p10956_p5), %s11936_s8, 256, %s1104_s23, [#allocation15], %s11944_s28, %s11944_s28, %s11947_s7  }
 0x166   : > { %s1139_s11 = sshll.u32 %s10718_s10, 4  ;;  %s10719_s26 = smov [#allocation22]   ;;  %s1140_s11 = int_to_ptr.vmem [resolvable:$true] %s1139_s11 }
 0x167   : > { %s1180_s1 = sshll.u32 %s10719_s26, 4  ;;  %s10507_s3 = scalar_lea.hbm %s10873_s20, 1024  ;;  %s1181_s1 = int_to_ptr.vmem [resolvable:$true] %s1180_s1 }
 0x168   : > { %p10508_p6 = scmp.ne.s32.totalorder %s10873_s20, %s10507_s3  ;;  %p10514_p3 = scmp.lt.u32.totalorder %s10507_s3, %s10873_s20 }
 0x16a   : > { %p10510_p8 = pnand %p10508_p6, %p10966_p7 }
 0x16c   : > { %p10511_p2 = pneg %p10510_p8 }
 0x16e   : > { %p10516_p9 = pnand %p10514_p3, %p10511_p2 }
 0x170   : > { %10519 = shalt.err (!%p10516_p9)
}
 0x171   : > { %s10520_s4 = scalar_lea.vmem %s1140_s11, 1024  ;;  %p10528_p13 = scmp.lt.s32.totalorder %s1140_s11, %s1140_s11 }
 0x172   : > { %p10521_p10 = scmp.ne.s32.totalorder %s1140_s11, %s10520_s4  ;;  %p10529_p0 = scmp.lt.s32.totalorder %s10520_s4, %s10520_s4 }
 0x174   : > { %p10523_p11 = pnand %p10521_p10, %p10966_p7  ;;  %p10530_p1 = por %p10529_p0, %p10528_p13 }
 0x176   : > { %p10524_p12 = pneg %p10523_p11 }
 0x178   : > { %p10531_p4 = pnand %p10530_p1, %p10524_p12 }
 0x17a   : > { %10534 = shalt.err (!%p10531_p4)
}
 0x17b   : > { %9930 = dma.hbm_to_vmem [thread:$0]  (!%p10956_p5), %s10873_s20, 1024, %s1140_s11, [#allocation18], %s11944_s28, %s11944_s28, %s11947_s7  }
 0x17c   : > { %s10535_s23 = scalar_lea.hbm %s10908_s24, 64 }
 0x17d   : > { %p10536_p6 = scmp.ne.s32.totalorder %s10908_s24, %s10535_s23  ;;  %p10542_p3 = scmp.lt.u32.totalorder %s10535_s23, %s10908_s24 }
 0x17f   : > { %p10538_p8 = pnand %p10536_p6, %p10966_p7 }
 0x181   : > { %p10539_p2 = pneg %p10538_p8 }
 0x183   : > { %p10544_p9 = pnand %p10542_p3, %p10539_p2 }
 0x185   : > { %10547 = shalt.err (!%p10544_p9)
}
 0x186   : > { %s10548_s4 = scalar_lea.vmem %s1181_s1, 64  ;;  %p10556_p13 = scmp.lt.s32.totalorder %s1181_s1, %s1181_s1 }
 0x187   : > { %p10549_p10 = scmp.ne.s32.totalorder %s1181_s1, %s10548_s4  ;;  %p10557_p0 = scmp.lt.s32.totalorder %s10548_s4, %s10548_s4 }
 0x189   : > { %p10551_p11 = pnand %p10549_p10, %p10966_p7  ;;  %p10558_p1 = por %p10557_p0, %p10556_p13 }
 0x18b   : > { %p10552_p12 = pneg %p10551_p11 }
 0x18d   : > { %p10559_p4 = pnand %p10558_p1, %p10552_p12 }
 0x18f   : > { %10562 = shalt.err (!%p10559_p4)
}
 0x190   : > { %9936 = dma.hbm_to_vmem [thread:$0]  (!%p10956_p5), %s10908_s24, 64, %s1181_s1, [#allocation21], %s11946_s18, %s11946_s18, %s11945_s15  }
 0x191   : > { %s10720_s28 = smov [#allocation25]   ;;  %s10721_s10 = smov [#allocation26]  }
 0x192   : > { %s1206_s7 = sshll.u32 %s10720_s28, 4  ;;  %s1220_s11 = sshll.u32 %s10721_s10, 4  ;;  %s1207_s7 = int_to_ptr.vmem [resolvable:$true] %s1206_s7  ;;  %s1221_s11 = int_to_ptr.vmem [resolvable:$true] %s1220_s11 }
 0x193   : > { %s10563_s26 = scalar_lea.hbm %s11938_s5, 64 }
 0x194   : > { %p10564_p6 = scmp.ne.s32.totalorder %s11938_s5, %s10563_s26  ;;  %p10570_p3 = scmp.lt.u32.totalorder %s10563_s26, %s11938_s5 }
 0x196   : > { %p10566_p8 = pnand %p10564_p6, %p10966_p7 }
 0x198   : > { %p10567_p2 = pneg %p10566_p8 }
 0x19a   : > { %p10572_p9 = pnand %p10570_p3, %p10567_p2 }
 0x19c   : > { %10575 = shalt.err (!%p10572_p9)
}
 0x19d   : > { %s10576_s3 = scalar_lea.vmem %s1207_s7, 64  ;;  %p10584_p13 = scmp.lt.s32.totalorder %s1207_s7, %s1207_s7 }
 0x19e   : > { %p10577_p10 = scmp.ne.s32.totalorder %s1207_s7, %s10576_s3  ;;  %p10585_p0 = scmp.lt.s32.totalorder %s10576_s3, %s10576_s3 }
 0x1a0   : > { %p10579_p11 = pnand %p10577_p10, %p10966_p7  ;;  %p10586_p1 = por %p10585_p0, %p10584_p13 }
 0x1a2   : > { %p10580_p12 = pneg %p10579_p11 }
 0x1a4   : > { %p10587_p4 = pnand %p10586_p1, %p10580_p12 }
 0x1a6   : > { %10590 = shalt.err (!%p10587_p4)
}
 0x1a7   : > { %9942 = dma.hbm_to_vmem [thread:$0]  (!%p10956_p5), %s11938_s5, 64, %s1207_s7, [#allocation24], %s11946_s18, %s11946_s18, %s11945_s15  }
 0x1a8   : > { %s10591_s1 = scalar_lea.hbm %s10923_s29, 16 }
 0x1a9   : > { %p10592_p6 = scmp.ne.s32.totalorder %s10923_s29, %s10591_s1  ;;  %p10598_p3 = scmp.lt.u32.totalorder %s10591_s1, %s10923_s29 }
 0x1ab   : > { %p10594_p8 = pnand %p10592_p6, %p10966_p7 }
 0x1ad   : > { %p10595_p2 = pneg %p10594_p8 }
 0x1af   : > { %p10600_p9 = pnand %p10598_p3, %p10595_p2 }
 0x1b1   : > { %10603 = shalt.err (!%p10600_p9)
}
 0x1b2   : > { %s10604_s23 = scalar_lea.vmem %s1221_s11, 16  ;;  %s10611_s4 = scalar_lea.vmem %s1221_s11, 32 }
 0x1b3   : > { %p10605_p10 = scmp.ne.s32.totalorder %s1221_s11, %s10604_s23  ;;  %p10612_p13 = scmp.lt.s32.totalorder %s1221_s11, %s1221_s11 }
 0x1b4   : > { %p10613_p0 = scmp.lt.s32.totalorder %s10611_s4, %s10604_s23 }
 0x1b5   : > { %p10607_p11 = pnand %p10605_p10, %p10966_p7 }
 0x1b6   : > { %p10614_p1 = por %p10613_p0, %p10612_p13 }
 0x1b7   : > { %p10608_p12 = pneg %p10607_p11 }
 0x1b9   : > { %p10615_p4 = pnand %p10614_p1, %p10608_p12 }
 0x1bb   : > { %10618 = shalt.err (!%p10615_p4)
}
 0x1bc   : > { %9945 = dma.hbm_to_vmem [thread:$0]  (!%p10956_p5), %s10923_s29, 16, %s1221_s11, [#allocation27]  }
 0x1bd   : > { %p11948_p6 = scmp.ne.s32.totalorder %s11941_s17, 0 }
 0x1be   : > { %p11949_p8 = scmp.eq.s32.totalorder (!%p11948_p6), %s10939_s0, 0 }
 0x1bf   : > { %1242 = sbr.rel (%p11948_p6) target bundleno = 9544 (0x2548), region = 176 }
 0x1c6   : > { %10624 = dma.done.wait (%p11949_p8), [#allocation4], 1792   ;;  %p11950_p2 = pmov %p11949_p8 }
 0x1c8   : > { %10626 = vsyncadd (%p11950_p2), [#allocation4], 4294965504  ;;  %p11951_p7 = pmov %p11950_p2 }
 0x1c9   : > { %p11952_p3 = pmov %p11950_p2 }
 0x1ca   : > { %10628 = dma.done.wait (%p11951_p7), [#allocation6], 3072  }
 0x1cb   : > { %10630 = vsyncadd (%p11952_p3), [#allocation6], 4294964224  ;;  %p11953_p9 = pmov %p11950_p2 }
 0x1cc   : > { %p11954_p5 = pmov %p11950_p2 }
 0x1cd   : > { %10632 = dma.done.wait (%p11953_p9), [#allocation9], 1088  }
 0x1ce   : > { %10634 = vsyncadd (%p11954_p5), [#allocation9], 4294966208  ;;  %p11955_p10 = pmov %p11950_p2 }
 0x1cf   : > { %p11956_p11 = pmov %p11950_p2 }
 0x1d0   : > { %10636 = dma.done.wait (%p11955_p10), [#allocation12], 96  }
 0x1d1   : > { %10638 = vsyncadd (%p11956_p11), [#allocation12], 4294967200  ;;  %p11957_p12 = pmov %p11950_p2 }
 0x1d2   : > { %p11958_p13 = pmov %p11950_p2 }
 0x1d3   : > { %10640 = dma.done.wait (%p11957_p12), [#allocation15], 272  }
 0x1d4   : > { %10642 = vsyncadd (%p11958_p13), [#allocation15], 4294967024  ;;  %p11959_p0 = pmov %p11950_p2 }
 0x1d6   : > { %10644 = dma.done.wait (%p11959_p0), [#allocation18], 1040   ;;  %p11960_p1 = pmov %p11959_p0 }
 0x1d7   : > { %p11961_p4 = pmov %p11959_p0 }
 0x1d8   : > { %10646 = vsyncadd (%p11960_p1), [#allocation18], 4294966256 }
 0x1d9   : > { %10648 = dma.done.wait (%p11961_p4), [#allocation21], 1088   ;;  %p11962_p6 = pmov %p11959_p0 }
 0x1da   : > { %p11963_p8 = pmov %p11959_p0 }
 0x1db   : > { %10650 = vsyncadd (%p11962_p6), [#allocation21], 4294966208 }
 0x1dc   : > { %10652 = dma.done.wait (%p11963_p8), [#allocation24], 7232   ;;  %p11964_p2 = pmov %p11959_p0 }
 0x1dd   : > { %p11965_p7 = pmov %p11959_p0 }
 0x1de   : > { %10654 = vsyncadd (%p11964_p2), [#allocation24], 4294960064 }
 0x1df   : > { %10656 = dma.done.wait (%p11965_p7), [#allocation27], 16   ;;  %p11966_p3 = pmov %p11959_p0 }
 0x1e0   : > { %s11967_s17 = sld [smem:[#allocation40_spill]]  ;;  %s11968_s2 = sld [smem:[#allocation39_spill]]  ;;  %v10722_v1 = vmov 0   ;;  %v1443_v15 = vld [vmem:[#allocation5] sm:$0xff]  ;;  %vm1471_vm0 = vcmask 261120   ;;  %v1444_v38 = vld [vmem:[#allocation5 + $0x8] sm:$0xff] }
 0x1e1   : > { %10658 = vsyncadd (%p11966_p3), [#allocation27], 4294967280  ;;  %s11969_s16 = sld [smem:[#allocation41_spill]]  ;;  %s11970_s15 = sld [smem:[#allocation44_spill]]  ;;  %10054 = vset.pattern.permute.xlu1 %v10722_v1  ;;  %10053 = vset.pattern.permute.xlu0 %v10722_v1  ;;  %v1445_v39 = vld [vmem:[#allocation5 + $0x10] sm:$0xff]  ;;  %v1446_v40 = vld [vmem:[#allocation5 + $0x18] sm:$0xff] }
 0x1e2   : > { %s11971_s18 = sld [smem:[#allocation45_spill]]  ;;  %s11972_s28 = sld [smem:[#allocation46_spill]]  ;;  %8395 = vmatprep.mubr.msk.f32.mxu0 %vm1471_vm0, %v1443_v15  ;;  %v1585_v41 = vld [vmem:[#allocation7] sm:$0xff]  ;;  %vm1599_vm1 = vcmask 130048   ;;  %vm1693_vm2 = vcmask 785408   ;;  %vm1870_vm3 = vcmask 392192  }
 0x1e3   : > { %s11973_s7 = sld [smem:[#allocation37_spill]]  ;;  %p1394_p9 = scmp.lt.s32.totalorder %s10939_s0, 1  ;;  %8405 = vmatprep.mubr.msk.f32.mxu1 %vm1599_vm1, %v1585_v41  ;;  %vm1967_vm4 = vcmask 916480   ;;  %vm2449_vm5 = vcmask 523264   ;;  %vm10726_vm6 = vmmov 0   ;;  %vm4196_vm7 = vcmask 15360  }
 0x1e4   : > { %s11896_s11 = smov 112   ;;  %s11974_s26 = sld [smem:[#allocation43_spill]]  ;;  %vm4180_vm8 = vcmask 1040384   ;;  %vm4203_vm9 = vcmask 1041408   ;;  %vm7355_vm10 = vcmask 909312  }
 0x1e5   : > { %s11993_s0 = smov (!%p1394_p9, %s10939_s0), 1  ;;  %s11975_s3 = sld [smem:[#allocation38_spill]] }
 0x1e6   : > { %v1421_v2 = vld [vmem:[%s11967_s17] sm:$0xff]  ;;  %v1422_v4 = vld [vmem:[%s11967_s17 + $0x8] sm:$0xff]  ;;  %s11976_s1 = sld [smem:[#allocation47_spill]]  ;;  %s10724_s23 = smov 96  }
 0x1e7   : > { %v1401_v3 = vld [vmem:[%s11968_s2] sm:$0xff]  ;;  %1425 = vperm.xlu1 %10054, %v1421_v2   ;;  %v1402_v5 = vld [vmem:[%s11968_s2 + $0x8] sm:$0xff]  ;;  %v1449_v6 = vld [vmem:[%s11969_s16 + $0x10] sm:$0xff]  ;;  %s11977_s4 = sld [smem:[#allocation48_spill]]  ;;  %s11984_s2 = smov 112  }
 0x1e8   : > { %1405 = vperm.xlu0 %10053, %v1401_v3   ;;  %v1447_v7 = vld [vmem:[%s11969_s16] sm:$0xff]  ;;  %v1450_v23 = vld [vmem:[%s11969_s16 + $0x18] sm:$0xff]  ;;  %v1448_v24 = vld [vmem:[%s11969_s16 + $0x8] sm:$0xff]  ;;  %s11989_s5 = sld [smem:[#allocation58_spill]]  ;;  %s11990_s6 = smov 16  }
 0x1e9   : > { %v1858_v8 = vld [vmem:[%s11970_s15] sm:$0xff]  ;;  %s1396_s10 = scalar_lea.vmem %s11973_s7, %s11993_s0  ;;  %v1859_v25 = vld [vmem:[%s11970_s15 + $0x8] sm:$0xff]  ;;  %v7666_v28 = vld [vmem:[%s11969_s16 + $0x30] sm:$0xff]  ;;  %s11978_s7 = sld [smem:[#allocation50_spill]] }
 0x1ea   : > { %v2059_v9 = vld [vmem:[%s11971_s18] sm:$0xff]  ;;  %v2060_v26 = vld [vmem:[%s11971_s18 + $0x8] sm:$0xff]  ;;  %v7697_v31 = vld [vmem:[%s11970_s15 + $0x10] sm:$0xff]  ;;  %s11991_s8 = smov 32  }
 0x1eb   : > { %1430 = vperm.xlu1 %10054, %v1422_v4   ;;  %v2073_v10 = vld [vmem:[%s11972_s28] sm:$0xff]  ;;  %v2074_v27 = vld [vmem:[%s11972_s28 + $0x8] sm:$0xff]  ;;  %v7716_v32 = vld [vmem:[%s11971_s18 + $0x10] sm:$0xff] }
 0x1ec   : > { %1410 = vperm.xlu0 %10053, %v1402_v5   ;;  %v7632_v13 = vld [vmem:[%s1396_s10] ss:$0 sm:$0xff]  ;;  %v7718_v33 = vld [vmem:[%s11972_s28 + $0x10] sm:$0xff]  ;;  %v1682_v43 = vld [vmem:[%s11975_s3 + $0x8] sm:$0xff]  ;;  %s11979_s10 = sld [smem:[#allocation51_spill]] }
 0x1ed   : > { %v7664_v29 = vld [vmem:[%s11969_s16 + $0x20] sm:$0xff]  ;;  %v1683_v45 = vld [vmem:[%s11975_s3 + $0x10] sm:$0xff]  ;;  %v1684_v46 = vld [vmem:[%s11975_s3 + $0x18] sm:$0xff] }
 0x1ee   : > { %v1587_v30 = vld [vmem:[%s11974_s26] sm:$0xff]  ;;  %v11260_v47 = vpack.c.bf16 %v1684_v46, %v1683_v45  ;;  %v1686_v49 = vld [vmem:[%s11975_s3 + $0x28] sm:$0xff]  ;;  %v1687_v51 = vld [vmem:[%s11975_s3 + $0x30] sm:$0xff] }
 0x1ef   : > { %1463 = vperm.xlu1 %10054, %v1449_v6   ;;  %v1681_v42 = vld [vmem:[%s11975_s3] sm:$0xff]  ;;  %v1688_v52 = vld [vmem:[%s11975_s3 + $0x38] sm:$0xff]  ;;  %v1690_v55 = vld [vmem:[%s11975_s3 + $0x48] sm:$0xff] }
 0x1f0   : > { %v11255_v44 = vpack.c.bf16 %v1682_v43, %v1681_v42  ;;  %v1685_v48 = vld [vmem:[%s11975_s3 + $0x20] sm:$0xff]  ;;  %v11272_v53 = vpack.c.bf16 %v1688_v52, %v1687_v51  ;;  %v1691_v57 = vld [vmem:[%s11975_s3 + $0x50] sm:$0xff]  ;;  %v1692_v58 = vld [vmem:[%s11975_s3 + $0x58] sm:$0xff] }
 0x1f1   : > { %v11266_v50 = vpack.c.bf16 %v1686_v49, %v1685_v48  ;;  %v1689_v54 = vld [vmem:[%s11975_s3 + $0x40] sm:$0xff]  ;;  %v9222_v59 = vpack.c.bf16 %v1692_v58, %v1691_v57  ;;  %v7652_v41 = vld [vmem:[%s11976_s1 + $0x178] sm:$0xff]  ;;  %v7654_v45 = vld [vmem:[%s11976_s1 + $0x188] sm:$0xff]  ;;  %s11904_s3 = smov 32  }
 0x1f2   : > { %v9218_v56 = vpack.c.bf16 %v1690_v55, %v1689_v54  ;;  %v7653_v43 = vld [vmem:[%s11976_s1 + $0x180] sm:$0xff]  ;;  %v7655_v48 = vld [vmem:[%s11976_s1 + $0x190] sm:$0xff]  ;;  %v7656_v49 = vld [vmem:[%s11976_s1 + $0x198] sm:$0xff] }
 0x1f3   : > { %1453 = vperm.xlu1 %10054, %v1447_v7   ;;  %v9274_v46 = vpack.c.bf16 %v7654_v45, %v7653_v43  ;;  %v9278_v51 = vpack.c.bf16 %v7656_v49, %v7655_v48  ;;  %v7657_v52 = vld [vmem:[%s11976_s1 + $0x1a0] sm:$0xff]  ;;  %v7658_v54 = vld [vmem:[%s11976_s1 + $0x1a8] sm:$0xff] }
 0x1f4   : > { %v9282_v55 = vpack.c.bf16 %v7658_v54, %v7657_v52 }
 0x1f7   : > { %1862 = vperm.xlu1 %10054, %v1858_v8  }
 0x1fb   : > { %2063 = vperm.xlu1 %10054, %v2059_v9  }
 0x1ff   : > { %2077 = vperm.xlu1 %10054, %v2073_v10  }
 0x266   : > { %v1426_v11 = vpop.permute.xlu1 %1425 }
 0x267   : > { %v1406_v12 = vpop.permute.xlu0 %1405 }
 0x268   : > { %v1419_v14 = vmul.f32 %v7632_v13, %v1406_v12 }
 0x26a   : > { %v1431_v18 = vpop.permute.xlu1 %1430  ;;  %v11229_v19 = vadd.f32 %v1426_v11, %v1419_v14 }
 0x26b   : > { %v1411_v16 = vpop.permute.xlu0 %1410 }
 0x26c   : > { %v1420_v17 = vmul.f32 %v7632_v13, %v1411_v16 }
 0x26e   : > { %v11231_v20 = vadd.f32 %v1431_v18, %v1420_v17  ;;  %v1464_v0 = vpop.permute.xlu1 %1463 }
 0x270   : > { %v10055_v21 = vpack.i.bf16 %v11231_v20, %v11229_v19  ;;  %v9190_v22 = vpack.c.bf16 %v11231_v20, %v11229_v19 }
 0x272   : > { %10056 = vrot.lane.b32.xlu0 %v10055_v21, %s11896_s11  ;;  %9191 = vmatprep.subr.bf16.mxu0 %v9190_v22  ;;  %v1454_v7 = vpop.permute.xlu1 %1453 }
 0x273   : > { %9193 = vmatpush3.bf16.msra.mxu0 %v9190_v22 }
 0x276   : > { %1468 = vperm.xlu0 %10053, %v1450_v23   ;;  %v1586_v23 = vld [vmem:[#allocation7 + $0x8] sm:$0xff] }
 0x27a   : > { %1458 = vperm.xlu0 %10053, %v1448_v24  }
 0x27e   : > { %1867 = vperm.xlu0 %10053, %v1859_v25  }
 0x282   : > { %2068 = vperm.xlu0 %10053, %v2060_v26  }
 0x286   : > { %2082 = vperm.xlu0 %10053, %v2074_v27  }
 0x28a   : > { %2117 = vperm.xlu0 %10053, %v7666_v28  }
 0x28e   : > { %2107 = vperm.xlu0 %10053, %v7664_v29   ;;  %v1856_v29 = vld [vmem:[#allocation8] sm:$0xff] }
 0x292   : > { %1591 = vperm.xlu0 %10053, %v1587_v30   ;;  %v7647_v30 = vld [vmem:[%s11976_s1 + $0x150] sm:$0xff] }
 0x296   : > { %2620 = vperm.xlu0 %10053, %v7697_v31   ;;  %v7648_v31 = vld [vmem:[%s11976_s1 + $0x158] sm:$0xff] }
 0x29a   : > { %2818 = vperm.xlu0 %10053, %v7716_v32  }
 0x29e   : > { %2833 = vperm.xlu0 %10053, %v7718_v33  }
 0x2e4   : > { %v10057_v34 = vpop.permute.xlu0 %10056 }
 0x2e5   : > { %v10059_v35 = vunpack.i.h.bf16 %v10057_v34  ;;  %v10058_v36 = vunpack.i.l.bf16 %v10057_v34 }
 0x2e7   : > { %v9194_v37 = vpack.c.bf16 %v10059_v35, %v10058_v36  ;;  %v9262_v35 = vpack.c.bf16 %v7648_v31, %v7647_v30  ;;  %v7649_v36 = vld [vmem:[%s11976_s1 + $0x160] sm:$0xff] }
 0x2e9   : > { %9195 = vmatprep.subr.bf16.mxu0 %v9194_v37 }
 0x2ea   : > { %9197 = vmatpush3.bf16.msra.mxu0 %v9194_v37  ;;  %v7650_v37 = vld [vmem:[%s11976_s1 + $0x168] sm:$0xff] }
 0x2eb   : > { %9227 = vmatprep.subr.bf16.mxu0 %v11255_v44 }
 0x2ed   : > { %8396 = vmatmul.mubr.msk.f32.vlgmr.msra.gmra.mrb[0].mxu0 %vm1471_vm0, %v1444_v38  ;;  %v1857_v38 = vld [vmem:[#allocation8 + $0x8] sm:$0xff] }
 0x2ee   : > { %8398 = vmatprep.mubr.msk.f32.mxu0 %vm1471_vm0, %v1445_v39  ;;  %9229 = vmatpush3.bf16.msra.mxu0 %v11255_v44  ;;  %v9266_v39 = vpack.c.bf16 %v7650_v37, %v7649_v36  ;;  %v2239_v36 = vld [vmem:[#allocation7 + $0x10] sm:$0xff] }
 0x2ef   : > { %9231 = vmatprep.subr.bf16.mxu0 %v11260_v47 }
 0x2f1   : > { %8399 = vmatmul.mubr.msk.f32.gmra.mrb[2].mxu0 %vm1471_vm0, %v1446_v40  ;;  %v7651_v40 = vld [vmem:[%s11976_s1 + $0x170] sm:$0xff] }
 0x2f2   : > { %9233 = vmatpush3.bf16.msra.mxu0 %v11260_v47  ;;  %v9270_v42 = vpack.c.bf16 %v7652_v41, %v7651_v40 }
 0x2f3   : > { %9235 = vmatprep.subr.bf16.mxu0 %v11266_v50 }
 0x2f5   : > { %v1469_v62 = vpop.permute.xlu0 %1468 }
 0x2f6   : > { %9237 = vmatpush3.bf16.msra.mxu0 %v11266_v50 }
 0x2f7   : > { %9239 = vmatprep.subr.bf16.mxu0 %v11272_v53 }
 0x2f9   : > { %v1459_v6 = vpop.permute.xlu0 %1458 }
 0x2fa   : > { %9241 = vmatpush3.bf16.msra.mxu0 %v11272_v53 }
 0x2fb   : > { %9243 = vmatprep.subr.bf16.mxu0 %v9218_v56 }
 0x2fd   : > { %v1868_v58 = vpop.permute.xlu0 %1867 }
 0x2fe   : > { %9245 = vmatpush3.bf16.msra.mxu0 %v9218_v56 }
 0x2ff   : > { %9247 = vmatprep.subr.bf16.mxu0 %v9222_v59 }
 0x302   : > { %9249 = vmatpush3.bf16.msra.mxu0 %v9222_v59 }
 0x3c0   : > { %v8397_v60 = vpop.f32.mrb[0].mxu0 }
 0x3c1   : > { %v1550_v61 = vpop.f32.mrb[1].mxu0  ;;  %v1556_v8 = vadd.f32 %v8397_v60, %v1459_v6  ;;  %v2069_v60 = vpop.permute.xlu0 %2068 }
 0x3c2   : > { %v1551_v9 = vadd.f32 %v1550_v61, %v1454_v7 }
 0x3c4   : > { %v8400_v63 = vpop.f32.mrb[2].mxu0 }
 0x3c5   : > { %v1566_v1 = vadd.f32 %v8400_v63, %v1469_v62  ;;  %v1560_v2 = vpop.f32.mrb[3].mxu0  ;;  %v7663_v62 = vld [vmem:[#allocation10 + $0x3] ss:$0 sm:$0xff]  ;;  %v2083_v7 = vpop.permute.xlu0 %2082 }
 0x3c6   : > { %v1561_v3 = vadd.f32 %v1560_v2, %v1464_v0 }
 0x3c7   : > { %v7638_v4 = vmul.f32 -1.442695, %v1566_v1 }
 0x3c8   : > { %v7637_v5 = vmul.f32 -1.442695, %v1561_v3 }
 0x3c9   : > { %10075 = vpow2.f32 %v7638_v4  ;;  %v2118_v41 = vpop.permute.xlu0 %2117 }
 0x3ca   : > { %10077 = vpow2.f32 %v7637_v5  ;;  %v2096_v5 = vld [vmem:[#allocation5 + $0x20] sm:$0xff] }
 0x3cb   : > { %10079 = vtanh.f32 %v1556_v8 }
 0x3cc   : > { %10081 = vtanh.f32 %v1551_v9 }
 0x3d3   : > { %v10076_v10 = vpop.eup %10075 }
 0x3d4   : > { %v10078_v11 = vpop.eup %10077  ;;  %v1578_v12 = vadd.f32 1.0, %v10076_v10 }
 0x3d5   : > { %v1577_v13 = vadd.f32 1.0, %v10078_v11  ;;  %v10080_v14 = vpop.eup %10079 }
 0x3d6   : > { %10083 = vrcp.f32 %v1578_v12  ;;  %v10082_v15 = vpop.eup %10081 }
 0x3d7   : > { %10085 = vrcp.f32 %v1577_v13  ;;  %v7667_v13 = vld [vmem:[%s11969_s16 + $0x38] sm:$0xff] }
 0x3e0   : > { %v10084_v16 = vpop.eup %10083 }
 0x3e1   : > { %v10086_v17 = vpop.eup %10085  ;;  %v1584_v18 = vmul.f32 %v10084_v16, %v10080_v14  ;;  %v7665_v14 = vld [vmem:[%s11969_s16 + $0x28] sm:$0xff]  ;;  %v7698_v16 = vld [vmem:[%s11970_s15 + $0x18] sm:$0xff] }
 0x3e2   : > { %v1583_v21 = vmul.f32 %v10086_v17, %v10082_v15  ;;  %v1588_v15 = vld [vmem:[%s11974_s26 + $0x8] sm:$0xff]  ;;  %v7717_v17 = vld [vmem:[%s11971_s18 + $0x18] sm:$0xff] }
 0x3e4   : > { %v9198_v22 = vpack.c.bf16 %v1584_v18, %v1583_v21 }
 0x3e6   : > { %9199 = vmatprep.subr.bf16.mxu1 %v9198_v22 }
 0x3e7   : > { %9201 = vmatpush3.bf16.msra.mxu1 %v9198_v22 }
 0x3e8   : > { %9203 = vmatprep.subr.bf16.mxu1 %v11255_v44 }
 0x3ea   : > { %8406 = vmatmul.mubr.msk.f32.vlgmr.msra.gmra.mrb[0].mxu1 %vm1599_vm1, %v1586_v23  ;;  %v7674_v23 = vld [vmem:[%s11974_s26 + $0x10] sm:$0xff] }
 0x3eb   : > { %9205 = vmatpush3.bf16.msra.mxu1 %v11255_v44  ;;  %8432 = vmatprep.mubr.msk.f32.mxu1 %vm1693_vm2, %v1583_v21  ;;  %v7722_v21 = vld [vmem:[%s11969_s16 + $0x50] sm:$0xff] }
 0x3ec   : > { %9207 = vmatprep.subr.bf16.mxu1 %v11260_v47 }
 0x3ef   : > { %9209 = vmatpush3.bf16.msra.mxu1 %v11260_v47 }
 0x3f0   : > { %9211 = vmatprep.subr.bf16.mxu1 %v11266_v50 }
 0x3f3   : > { %9213 = vmatpush3.bf16.msra.mxu1 %v11266_v50 }
 0x3f4   : > { %9215 = vmatprep.subr.bf16.mxu1 %v11272_v53 }
 0x3f7   : > { %9217 = vmatpush3.bf16.msra.mxu1 %v11272_v53 }
 0x3f8   : > { %9219 = vmatprep.subr.bf16.mxu1 %v9218_v56 }
 0x3fb   : > { %9221 = vmatpush3.bf16.msra.mxu1 %v9218_v56  ;;  %v7660_v56 = vld [vmem:[%s11976_s1 + $0x1b8] sm:$0xff] }
 0x3fc   : > { %9223 = vmatprep.subr.bf16.mxu1 %v9222_v59 }
 0x3ff   : > { %9225 = vmatpush3.bf16.msra.mxu1 %v9222_v59  ;;  %v1863_v59 = vpop.permute.xlu1 %1862 }
 0x400   : > { %9251 = vmatprep.subr.bf16.mxu1 %v9198_v22 }
 0x402   : > { %8433 = vmatmul.mubr.msk.f32.vlgmr.msra.gmra.mrb[2].mxu1 %vm1693_vm2, %v1584_v18  ;;  %v7719_v18 = vld [vmem:[%s11972_s28 + $0x18] sm:$0xff] }
 0x403   : > { %9253 = vmatpush3.bf16.msra.mxu1 %v9198_v22  ;;  %8474 = vmatprep.mubr.msk.f32.mxu1 %vm1870_vm3, %v1856_v29  ;;  %v2064_v63 = vpop.permute.xlu1 %2063  ;;  %v7720_v22 = vld [vmem:[%s11969_s16 + $0x40] sm:$0xff] }
 0x407   : > { %v2078_v8 = vpop.permute.xlu1 %2077 }
 0x4bd   : > { %v11292_v24 = vpop.f32.mrb[0].mxu1 }
 0x4be   : > { %v11294_v25 = vpop.f32.mrb[1].mxu1 }
 0x4d5   : > { %v8434_v26 = vpop.f32.mrb[2].mxu1 }
 0x4d6   : > { %v1766_v27 = vpop.f32.mrb[3].mxu1 }
 0x4d7   : > { %v9254_v28 = vpack.c.bf16 %v8434_v26, %v1766_v27  ;;  %8459 = vmatprep.mubr.msk.f32.mxu0 %vm1693_vm2, %v1766_v27  ;;  %v7764_v27 = vld [vmem:[%s11971_s18 + $0x20] sm:$0xff] }
 0x4d8   : > { %8460 = vmatmul.mubr.msk.f32.vlgmr.msra.gmra.mrb[4].mxu0 %vm1693_vm2, %v8434_v26  ;;  %v7749_v26 = vld [vmem:[%s11970_s15 + $0x20] sm:$0xff] }
 0x4d9   : > { %9255 = vmatprep.subr.bf16.mxu1 %v9254_v28  ;;  %8526 = vmatprep.mubr.msk.f32.mxu0 %vm1599_vm1, %v2239_v36 }
 0x4da   : > { %9257 = vmatpush3.bf16.msra.mxu1 %v9254_v28  ;;  %v7766_v28 = vld [vmem:[%s11972_s28 + $0x20] sm:$0xff] }
 0x5ab   : > { %v8461_v32 = vpop.f32.mrb[4].mxu0 }
 0x5ac   : > { %v1847_v33 = vpop.f32.mrb[5].mxu0 }
 0x5ad   : > { %v9258_v34 = vpack.c.bf16 %v8461_v32, %v1847_v33  ;;  %v2097_v33 = vld [vmem:[#allocation5 + $0x28] sm:$0xff] }
 0x5af   : > { %9259 = vmatprep.subr.bf16.mxu1 %v9258_v34 }
 0x5b0   : > { %9261 = vmatpush3.bf16.msra.mxu1 %v9258_v34  ;;  %v2098_v34 = vld [vmem:[#allocation5 + $0x30] sm:$0xff] }
 0x5b1   : > { %9263 = vmatprep.subr.bf16.mxu1 %v9262_v35 }
 0x5b3   : > { %8475 = vmatmul.mubr.msk.f32.vlgmr.msra.gmra.mrb[4].mxu1 %vm1870_vm3, %v1857_v38 }
 0x5b4   : > { %9265 = vmatpush3.bf16.msra.mxu1 %v9262_v35  ;;  %8505 = vmatprep.mubr.msk.f32.mxu1 %vm1967_vm4, %v11229_v19  ;;  %v7659_v19 = vld [vmem:[%s11976_s1 + $0x1b0] sm:$0xff] }
 0x5b5   : > { %9267 = vmatprep.subr.bf16.mxu1 %v9266_v39  ;;  %v9286_v57 = vpack.c.bf16 %v7660_v56, %v7659_v19  ;;  %v2099_v35 = vld [vmem:[#allocation5 + $0x38] sm:$0xff] }
 0x5b8   : > { %9269 = vmatpush3.bf16.msra.mxu1 %v9266_v39 }
 0x5b9   : > { %9271 = vmatprep.subr.bf16.mxu1 %v9270_v42 }
 0x5bc   : > { %9273 = vmatpush3.bf16.msra.mxu1 %v9270_v42 }
 0x5bd   : > { %9275 = vmatprep.subr.bf16.mxu1 %v9274_v46 }
 0x5c0   : > { %9277 = vmatpush3.bf16.msra.mxu1 %v9274_v46 }
 0x5c1   : > { %9279 = vmatprep.subr.bf16.mxu1 %v9278_v51 }
 0x5c4   : > { %9281 = vmatpush3.bf16.msra.mxu1 %v9278_v51  ;;  %v2108_v51 = vpop.permute.xlu0 %2107 }
 0x5c5   : > { %9283 = vmatprep.subr.bf16.mxu1 %v9282_v55 }
 0x5c8   : > { %9285 = vmatpush3.bf16.msra.mxu1 %v9282_v55 }
 0x5c9   : > { %9287 = vmatprep.subr.bf16.mxu1 %v9286_v57 }
 0x5cc   : > { %9289 = vmatpush3.bf16.msra.mxu1 %v9286_v57 }
 0x5cf   : > { %8506 = vmatmul.mubr.msk.f32.vlgmr.msra.gmra.mrb[4].mxu1 %vm1967_vm4, %v11231_v20 }
 0x5d0   : > { %8516 = vmatprep.mubr.msk.f32.mxu1 %vm1471_vm0, %v2096_v5  ;;  %v7681_v5 = vld [vmem:[%s11977_s4 + $0xf8] sm:$0xff] }
 0x6a2   : > { %v8507_v61 = vpop.f32.mrb[4].mxu1 }
 0x6a3   : > { %v9785_v0 = vadd.f32 %v8507_v61, %v1868_v58  ;;  %v2038_v1 = vpop.f32.mrb[5].mxu1 }
 0x6a4   : > { %v9786_v2 = vadd.f32 %v2038_v1, %v1863_v59 }
 0x6a5   : > { %v2058_v3 = vadd.f32 %v9785_v0, %v7663_v62  ;;  %v7679_v0 = vld [vmem:[%s11977_s4 + $0xe8] sm:$0xff] }
 0x6a6   : > { %v2057_v4 = vadd.f32 %v9786_v2, %v7663_v62 }
 0x6a7   : > { %v2072_v6 = vmul.f32 %v2069_v60, %v2058_v3 }
 0x6a8   : > { %v2071_v20 = vmul.f32 %v2064_v63, %v2057_v4  ;;  %v7678_v63 = vld [vmem:[%s11977_s4 + $0xe0] sm:$0xff]  ;;  %v7680_v4 = vld [vmem:[%s11977_s4 + $0xf0] sm:$0xff] }
 0x6a9   : > { %v11319_v9 = vadd.f32 %v2083_v7, %v2072_v6  ;;  %v9302_v3 = vpack.c.bf16 %v7679_v0, %v7678_v63  ;;  %v2240_v6 = vld [vmem:[#allocation7 + $0x18] sm:$0xff]  ;;  %v1592_v7 = vpop.permute.xlu0 %1591 }
 0x6aa   : > { %v11321_v10 = vadd.f32 %v2078_v8, %v2071_v20  ;;  %v9306_v20 = vpack.c.bf16 %v7681_v5, %v7680_v4  ;;  %v1673_v8 = vadd.f32 %v11294_v25, %v1592_v7 }
 0x6ac   : > { %v10060_v11 = vpack.i.bf16 %v11319_v9, %v11321_v10  ;;  %v9290_v12 = vpack.c.bf16 %v11319_v9, %v11321_v10 }
 0x6ae   : > { %10061 = vrot.lane.b32.xlu1 %v10060_v11, %s10724_s23  ;;  %9291 = vmatprep.subr.bf16.mxu1 %v9290_v12  ;;  %v7682_v11 = vld [vmem:[%s11977_s4 + $0x100] sm:$0xff] }
 0x6af   : > { %9293 = vmatpush3.bf16.msra.mxu1 %v9290_v12  ;;  %v7683_v12 = vld [vmem:[%s11977_s4 + $0x108] sm:$0xff] }
 0x6b2   : > { %2122 = vperm.xlu1 %10054, %v7667_v13   ;;  %v9310_v13 = vpack.c.bf16 %v7683_v12, %v7682_v11  ;;  %v7723_v12 = vld [vmem:[%s11969_s16 + $0x58] sm:$0xff] }
 0x6b6   : > { %2112 = vperm.xlu1 %10054, %v7665_v14   ;;  %v7684_v14 = vld [vmem:[%s11977_s4 + $0x110] sm:$0xff] }
 0x6ba   : > { %1596 = vperm.xlu1 %10054, %v1588_v15   ;;  %v7685_v15 = vld [vmem:[%s11977_s4 + $0x118] sm:$0xff] }
 0x6be   : > { %2625 = vperm.xlu1 %10054, %v7698_v16   ;;  %v9314_v16 = vpack.c.bf16 %v7685_v15, %v7684_v14  ;;  %v7675_v14 = vld [vmem:[%s11974_s26 + $0x18] sm:$0xff]  ;;  %v7750_v15 = vld [vmem:[%s11970_s15 + $0x28] sm:$0xff] }
 0x6c2   : > { %2823 = vperm.xlu1 %10054, %v7717_v17   ;;  %v7686_v17 = vld [vmem:[%s11977_s4 + $0x120] sm:$0xff] }
 0x6c6   : > { %2838 = vperm.xlu1 %10054, %v7719_v18   ;;  %v7687_v18 = vld [vmem:[%s11977_s4 + $0x128] sm:$0xff] }
 0x6c7   : > { %v9318_v25 = vpack.c.bf16 %v7687_v18, %v7686_v17  ;;  %v7767_v17 = vld [vmem:[%s11972_s28 + $0x28] sm:$0xff]  ;;  %v7770_v18 = vld [vmem:[%s11969_s16 + $0x70] sm:$0xff] }
 0x6ca   : > { %2873 = vperm.xlu1 %10054, %v7722_v21   ;;  %v7688_v21 = vld [vmem:[%s11977_s4 + $0x130] sm:$0xff] }
 0x6ce   : > { %2863 = vperm.xlu1 %10054, %v7720_v22   ;;  %v7689_v22 = vld [vmem:[%s11977_s4 + $0x138] sm:$0xff] }
 0x6d2   : > { %2246 = vperm.xlu1 %10054, %v7674_v23   ;;  %v9322_v23 = vpack.c.bf16 %v7689_v22, %v7688_v21  ;;  %v7730_v21 = vld [vmem:[%s11974_s26 + $0x20] sm:$0xff]  ;;  %v7778_v22 = vld [vmem:[%s11974_s26 + $0x30] sm:$0xff] }
 0x6d6   : > { %3369 = vperm.xlu1 %10054, %v7749_v26  }
 0x6da   : > { %3563 = vperm.xlu1 %10054, %v7764_v27  }
 0x6de   : > { %3578 = vperm.xlu1 %10054, %v7766_v28  }
 0x720   : > { %v10062_v29 = vpop.permute.xlu1 %10061 }
 0x721   : > { %v10064_v30 = vunpack.i.h.bf16 %v10062_v29  ;;  %v10063_v31 = vunpack.i.l.bf16 %v10062_v29 }
 0x723   : > { %v9294_v32 = vpack.c.bf16 %v10064_v30, %v10063_v31 }
 0x725   : > { %9295 = vmatprep.subr.bf16.mxu1 %v9294_v32 }
 0x726   : > { %9297 = vmatpush3.bf16.msra.mxu1 %v9294_v32  ;;  %v2613_v32 = vld [vmem:[#allocation8 + $0x10] sm:$0xff] }
 0x727   : > { %9327 = vmatprep.subr.bf16.mxu1 %v11255_v44 }
 0x729   : > { %8517 = vmatmul.mubr.msk.f32.vlgmr.msra.gmra.mrb[6].mxu1 %vm1471_vm0, %v2097_v33  ;;  %v7702_v33 = vld [vmem:[%s11976_s1 + $0xe8] sm:$0xff] }
 0x72a   : > { %8519 = vmatprep.mubr.msk.f32.mxu1 %vm1471_vm0, %v2098_v34  ;;  %9329 = vmatpush3.bf16.msra.mxu1 %v11255_v44 }
 0x72b   : > { %9331 = vmatprep.subr.bf16.mxu1 %v11260_v47 }
 0x72d   : > { %8520 = vmatmul.mubr.msk.f32.gmra.mrb[8].mxu1 %vm1471_vm0, %v2099_v35 }
 0x72e   : > { %9333 = vmatpush3.bf16.msra.mxu1 %v11260_v47 }
 0x72f   : > { %9335 = vmatprep.subr.bf16.mxu1 %v11266_v50 }
 0x731   : > { %v2123_v39 = vpop.permute.xlu1 %2122 }
 0x732   : > { %9337 = vmatpush3.bf16.msra.mxu1 %v11266_v50 }
 0x733   : > { %9339 = vmatprep.subr.bf16.mxu1 %v11272_v53 }
 0x735   : > { %v2113_v49 = vpop.permute.xlu1 %2112 }
 0x736   : > { %9341 = vmatpush3.bf16.msra.mxu1 %v11272_v53 }
 0x739   : > { %v1597_v26 = vpop.permute.xlu1 %1596 }
 0x73a   : > { %v1678_v27 = vadd.f32 %v11292_v24, %v1597_v26 }
 0x7fc   : > { %v8518_v37 = vpop.f32.mrb[6].mxu1 }
 0x7fd   : > { %v2203_v38 = vpop.f32.mrb[7].mxu1  ;;  %v2209_v52 = vadd.f32 %v8518_v37, %v2113_v49 }
 0x7fe   : > { %v2204_v54 = vadd.f32 %v2203_v38, %v2108_v51  ;;  %v7703_v38 = vld [vmem:[%s11976_s1 + $0xf0] sm:$0xff]  ;;  %v7709_v51 = vld [vmem:[%s11976_s1 + $0x120] sm:$0xff] }
 0x800   : > { %v8521_v40 = vpop.f32.mrb[8].mxu1 }
 0x801   : > { %v2219_v42 = vadd.f32 %v8521_v40, %v2123_v39  ;;  %v2213_v43 = vpop.f32.mrb[9].mxu1  ;;  %v7704_v39 = vld [vmem:[%s11976_s1 + $0xf8] sm:$0xff]  ;;  %v2614_v40 = vld [vmem:[#allocation8 + $0x18] sm:$0xff] }
 0x802   : > { %v2214_v45 = vadd.f32 %v2213_v43, %v2118_v41  ;;  %v9374_v41 = vpack.c.bf16 %v7704_v39, %v7703_v38  ;;  %v7706_v43 = vld [vmem:[%s11976_s1 + $0x108] sm:$0xff] }
 0x803   : > { %v7673_v46 = vmul.f32 -1.442695, %v2219_v42  ;;  %v7705_v42 = vld [vmem:[%s11976_s1 + $0x100] sm:$0xff] }
 0x804   : > { %v7672_v48 = vmul.f32 -1.442695, %v2214_v45  ;;  %v9378_v45 = vpack.c.bf16 %v7706_v43, %v7705_v42 }
 0x805   : > { %10087 = vpow2.f32 %v7673_v46  ;;  %v7707_v46 = vld [vmem:[%s11976_s1 + $0x110] sm:$0xff] }
 0x806   : > { %10089 = vpow2.f32 %v7672_v48  ;;  %v7708_v48 = vld [vmem:[%s11976_s1 + $0x118] sm:$0xff] }
 0x807   : > { %10091 = vtanh.f32 %v2209_v52  ;;  %v9382_v49 = vpack.c.bf16 %v7708_v48, %v7707_v46  ;;  %v7710_v52 = vld [vmem:[%s11976_s1 + $0x128] sm:$0xff] }
 0x808   : > { %10093 = vtanh.f32 %v2204_v54  ;;  %v9386_v54 = vpack.c.bf16 %v7710_v52, %v7709_v51 }
 0x80f   : > { %v10088_v55 = vpop.eup %10087 }
 0x810   : > { %v10090_v19 = vpop.eup %10089  ;;  %v2231_v56 = vadd.f32 1.0, %v10088_v55  ;;  %v7711_v55 = vld [vmem:[%s11976_s1 + $0x130] sm:$0xff] }
 0x811   : > { %v2230_v57 = vadd.f32 1.0, %v10090_v19  ;;  %v10092_v58 = vpop.eup %10091  ;;  %v7712_v19 = vld [vmem:[%s11976_s1 + $0x138] sm:$0xff] }
 0x812   : > { %10095 = vrcp.f32 %v2231_v56  ;;  %v10094_v59 = vpop.eup %10093  ;;  %v9390_v56 = vpack.c.bf16 %v7712_v19, %v7711_v55 }
 0x813   : > { %10097 = vrcp.f32 %v2230_v57  ;;  %v2621_v57 = vpop.permute.xlu0 %2620 }
 0x81c   : > { %v10096_v60 = vpop.eup %10095 }
 0x81d   : > { %v10098_v61 = vpop.eup %10097  ;;  %v2237_v62 = vmul.f32 %v10096_v60, %v10092_v58  ;;  %v7715_v60 = vld [vmem:[#allocation10 + $0x2] ss:$0 sm:$0xff] }
 0x81e   : > { %v2236_v1 = vmul.f32 %v10098_v61, %v10094_v59  ;;  %v2819_v61 = vpop.permute.xlu0 %2818 }
 0x820   : > { %8572 = vmatprep.mubr.msk.f32.mxu1 %vm2449_vm5, %v2236_v1  ;;  %v9298_v2 = vpack.c.bf16 %v2237_v62, %v2236_v1 }
 0x821   : > { %8573 = vmatmul.mubr.msk.f32.vlgmr.msra.gmra.mrb[10].mxu1 %vm2449_vm5, %v2237_v62 }
 0x822   : > { %9299 = vmatprep.subr.bf16.mxu0 %v9298_v2  ;;  %9359 = vmatprep.subr.bf16.mxu1 %v9298_v2 }
 0x823   : > { %9301 = vmatpush3.bf16.msra.mxu0 %v9298_v2  ;;  %9361 = vmatpush3.bf16.msra.mxu1 %v9298_v2  ;;  %v2852_v2 = vld [vmem:[#allocation5 + $0x40] sm:$0xff] }
 0x824   : > { %9303 = vmatprep.subr.bf16.mxu0 %v9302_v3  ;;  %8606 = vmatprep.mubr.msk.f32.mxu1 %vm1870_vm3, %v2613_v32  ;;  %v2854_v32 = vld [vmem:[#allocation5 + $0x50] sm:$0xff] }
 0x826   : > { %8527 = vmatmul.mubr.msk.f32.vlgmr.msra.gmra.mrb[6].mxu0 %vm1599_vm1, %v2240_v6  ;;  %v2834_v6 = vpop.permute.xlu0 %2833 }
 0x827   : > { %9305 = vmatpush3.bf16.msra.mxu0 %v9302_v3  ;;  %8553 = vmatprep.mubr.msk.f32.mxu0 %vm1693_vm2, %v1673_v8 }
 0x828   : > { %9307 = vmatprep.subr.bf16.mxu0 %v9306_v20 }
 0x82b   : > { %9309 = vmatpush3.bf16.msra.mxu0 %v9306_v20 }
 0x82c   : > { %9311 = vmatprep.subr.bf16.mxu0 %v9310_v13 }
 0x82f   : > { %9313 = vmatpush3.bf16.msra.mxu0 %v9310_v13  ;;  %v7721_v13 = vld [vmem:[%s11969_s16 + $0x48] sm:$0xff] }
 0x830   : > { %9315 = vmatprep.subr.bf16.mxu0 %v9314_v16 }
 0x833   : > { %9317 = vmatpush3.bf16.msra.mxu0 %v9314_v16  ;;  %v7765_v16 = vld [vmem:[%s11971_s18 + $0x28] sm:$0xff] }
 0x834   : > { %9319 = vmatprep.subr.bf16.mxu0 %v9318_v25 }
 0x837   : > { %9321 = vmatpush3.bf16.msra.mxu0 %v9318_v25  ;;  %v7768_v25 = vld [vmem:[%s11969_s16 + $0x60] sm:$0xff] }
 0x838   : > { %9323 = vmatprep.subr.bf16.mxu0 %v9322_v23 }
 0x83b   : > { %9325 = vmatpush3.bf16.msra.mxu0 %v9322_v23  ;;  %v3935_v23 = vld [vmem:[%s11978_s7] sm:$0x3]  ;;  %s11981_s7 = sld [smem:[#allocation57_spill]] }
 0x83c   : > { %9343 = vmatprep.subr.bf16.mxu0 %v11255_v44 }
 0x83e   : > { %8554 = vmatmul.mubr.msk.f32.vlgmr.msra.gmra.mrb[6].mxu0 %vm1693_vm2, %v1678_v27 }
 0x83f   : > { %9345 = vmatpush3.bf16.msra.mxu0 %v11255_v44 }
 0x840   : > { %9347 = vmatprep.subr.bf16.mxu0 %v11260_v47 }
 0x843   : > { %9349 = vmatpush3.bf16.msra.mxu0 %v11260_v47 }
 0x844   : > { %9351 = vmatprep.subr.bf16.mxu0 %v11266_v50 }
 0x847   : > { %9353 = vmatpush3.bf16.msra.mxu0 %v11266_v50 }
 0x848   : > { %9355 = vmatprep.subr.bf16.mxu0 %v11272_v53 }
 0x84b   : > { %9357 = vmatpush3.bf16.msra.mxu0 %v11272_v53  ;;  %v7701_v53 = vld [vmem:[%s11976_s1 + $0xe0] sm:$0xff] }
 0x84c   : > { %v9370_v37 = vpack.c.bf16 %v7702_v33, %v7701_v53  ;;  %v2855_v53 = vld [vmem:[#allocation5 + $0x58] sm:$0xff]  ;;  %v2995_v33 = vld [vmem:[#allocation7 + $0x20] sm:$0xff] }
 0x8f4   : > { %v8574_v24 = vpop.f32.mrb[10].mxu1 }
 0x8f5   : > { %v2522_v28 = vpop.f32.mrb[11].mxu1 }
 0x8f6   : > { %v9362_v29 = vpack.c.bf16 %v8574_v24, %v2522_v28  ;;  %8591 = vmatprep.mubr.msk.f32.mxu0 %vm2449_vm5, %v2522_v28 }
 0x8f7   : > { %8592 = vmatmul.mubr.msk.f32.vlgmr.msra.gmra.mrb[8].mxu0 %vm2449_vm5, %v8574_v24 }
 0x8f8   : > { %9363 = vmatprep.subr.bf16.mxu1 %v9362_v29  ;;  %8644 = vmatprep.mubr.msk.f32.mxu0 %vm1471_vm0, %v2852_v2  ;;  %v7737_v2 = vld [vmem:[%s11977_s4 + $0x88] sm:$0xff] }
 0x8f9   : > { %9365 = vmatpush3.bf16.msra.mxu1 %v9362_v29  ;;  %v2853_v29 = vld [vmem:[#allocation5 + $0x48] sm:$0xff] }
 0x911   : > { %v11381_v30 = vpop.f32.mrb[6].mxu0 }
 0x912   : > { %v11383_v31 = vpop.f32.mrb[7].mxu0 }
 0x9ca   : > { %v8593_v34 = vpop.f32.mrb[8].mxu0 }
 0x9cb   : > { %v2603_v35 = vpop.f32.mrb[9].mxu0 }
 0x9cc   : > { %v9366_v36 = vpack.c.bf16 %v8593_v34, %v2603_v35 }
 0x9ce   : > { %9367 = vmatprep.subr.bf16.mxu1 %v9366_v36 }
 0x9cf   : > { %9369 = vmatpush3.bf16.msra.mxu1 %v9366_v36 }
 0x9d0   : > { %9371 = vmatprep.subr.bf16.mxu1 %v9370_v37 }
 0x9d2   : > { %8607 = vmatmul.mubr.msk.f32.vlgmr.msra.gmra.mrb[12].mxu1 %vm1870_vm3, %v2614_v40 }
 0x9d3   : > { %9373 = vmatpush3.bf16.msra.mxu1 %v9370_v37  ;;  %8633 = vmatprep.mubr.msk.f32.mxu1 %vm1693_vm2, %v11321_v10  ;;  %v2626_v10 = vpop.permute.xlu1 %2625 }
 0x9d4   : > { %9375 = vmatprep.subr.bf16.mxu1 %v9374_v41 }
 0x9d7   : > { %9377 = vmatpush3.bf16.msra.mxu1 %v9374_v41  ;;  %v2824_v58 = vpop.permute.xlu1 %2823 }
 0x9d8   : > { %9379 = vmatprep.subr.bf16.mxu1 %v9378_v45 }
 0x9db   : > { %9381 = vmatpush3.bf16.msra.mxu1 %v9378_v45  ;;  %v2839_v4 = vpop.permute.xlu1 %2838 }
 0x9dc   : > { %9383 = vmatprep.subr.bf16.mxu1 %v9382_v49 }
 0x9df   : > { %9385 = vmatpush3.bf16.msra.mxu1 %v9382_v49  ;;  %v2874_v38 = vpop.permute.xlu1 %2873 }
 0x9e0   : > { %9387 = vmatprep.subr.bf16.mxu1 %v9386_v54 }
 0x9e3   : > { %9389 = vmatpush3.bf16.msra.mxu1 %v9386_v54  ;;  %v2864_v46 = vpop.permute.xlu1 %2863 }
 0x9e4   : > { %9391 = vmatprep.subr.bf16.mxu1 %v9390_v56 }
 0x9e7   : > { %9393 = vmatpush3.bf16.msra.mxu1 %v9390_v56 }
 0x9e8   : > { %9435 = vmatprep.subr.bf16.mxu1 %v11255_v44 }
 0x9ea   : > { %8634 = vmatmul.mubr.msk.f32.vlgmr.msra.gmra.mrb[12].mxu1 %vm1693_vm2, %v11319_v9 }
 0x9eb   : > { %9437 = vmatpush3.bf16.msra.mxu1 %v11255_v44 }
 0x9ec   : > { %9439 = vmatprep.subr.bf16.mxu1 %v11260_v47 }
 0x9ef   : > { %9441 = vmatpush3.bf16.msra.mxu1 %v11260_v47 }
 0x9f0   : > { %9443 = vmatprep.subr.bf16.mxu1 %v11266_v50 }
 0x9f3   : > { %9445 = vmatpush3.bf16.msra.mxu1 %v11266_v50 }
 0xabd   : > { %v8635_v59 = vpop.f32.mrb[12].mxu1 }
 0xabe   : > { %v9789_v62 = vadd.f32 %v8635_v59, %v2626_v10  ;;  %v2792_v63 = vpop.f32.mrb[13].mxu1  ;;  %v7734_v59 = vld [vmem:[%s11977_s4 + $0x70] sm:$0xff] }
 0xabf   : > { %v9790_v0 = vadd.f32 %v2792_v63, %v2621_v57 }
 0xac0   : > { %v2812_v9 = vadd.f32 %v9789_v62, %v7715_v60  ;;  %v2247_v62 = vpop.permute.xlu1 %2246 }
 0xac1   : > { %v2811_v1 = vadd.f32 %v9790_v0, %v7715_v60  ;;  %v7735_v60 = vld [vmem:[%s11977_s4 + $0x78] sm:$0xff] }
 0xac2   : > { %v2827_v3 = vmul.f32 %v2824_v58, %v2812_v9  ;;  %v9406_v0 = vpack.c.bf16 %v7735_v60, %v7734_v59  ;;  %v9788_v9 = vadd.f32 %v11383_v31, %v2247_v62  ;;  %v7771_v59 = vld [vmem:[%s11969_s16 + $0x78] sm:$0xff]  ;;  %v7769_v60 = vld [vmem:[%s11969_s16 + $0x68] sm:$0xff] }
 0xac3   : > { %v2826_v5 = vmul.f32 %v2819_v61, %v2811_v1  ;;  %v7736_v1 = vld [vmem:[%s11977_s4 + $0x80] sm:$0xff]  ;;  %v7779_v62 = vld [vmem:[%s11974_s26 + $0x38] sm:$0xff] }
 0xac4   : > { %v11410_v7 = vadd.f32 %v2839_v4, %v2827_v3  ;;  %v7692_v3 = vld [vmem:[#allocation11 + $0x2] ss:$0 sm:$0xff]  ;;  %v2996_v4 = vld [vmem:[#allocation7 + $0x28] sm:$0xff] }
 0xac5   : > { %v11412_v20 = vadd.f32 %v2834_v6, %v2826_v5  ;;  %v9410_v5 = vpack.c.bf16 %v7737_v2, %v7736_v1  ;;  %v2439_v6 = vadd.f32 %v9788_v9, %v7692_v3  ;;  %v3598_v2 = vld [vmem:[#allocation5 + $0x68] sm:$0xff] }
 0xac7   : > { %v10065_v8 = vpack.i.bf16 %v11410_v7, %v11412_v20  ;;  %v9394_v11 = vpack.c.bf16 %v11410_v7, %v11412_v20 }
 0xac9   : > { %10066 = vrot.lane.b32.xlu0 %v10065_v8, %s11896_s11  ;;  %9395 = vmatprep.subr.bf16.mxu0 %v9394_v11  ;;  %v7738_v8 = vld [vmem:[%s11977_s4 + $0x90] sm:$0xff]  ;;  %s11898_s11 = smov 16  }
 0xaca   : > { %9397 = vmatpush3.bf16.msra.mxu0 %v9394_v11  ;;  %v7739_v11 = vld [vmem:[%s11977_s4 + $0x98] sm:$0xff] }
 0xacb   : > { %v9414_v31 = vpack.c.bf16 %v7739_v11, %v7738_v8 }
 0xacd   : > { %2878 = vperm.xlu0 %10053, %v7723_v12   ;;  %v7740_v12 = vld [vmem:[%s11977_s4 + $0xa0] sm:$0xff] }
 0xad1   : > { %2868 = vperm.xlu0 %10053, %v7721_v13   ;;  %v7741_v13 = vld [vmem:[%s11977_s4 + $0xa8] sm:$0xff] }
 0xad5   : > { %2251 = vperm.xlu0 %10053, %v7675_v14   ;;  %v9418_v14 = vpack.c.bf16 %v7741_v13, %v7740_v12 }
 0xad9   : > { %3374 = vperm.xlu0 %10053, %v7750_v15  }
 0xadd   : > { %3568 = vperm.xlu0 %10053, %v7765_v16  }
 0xae1   : > { %3583 = vperm.xlu0 %10053, %v7767_v17  }
 0xae5   : > { %3618 = vperm.xlu0 %10053, %v7770_v18  }
 0xae9   : > { %3608 = vperm.xlu0 %10053, %v7768_v25  }
 0xaed   : > { %3002 = vperm.xlu0 %10053, %v7730_v21  }
 0xaf1   : > { %3747 = vperm.xlu0 %10053, %v7778_v22   ;;  %v7754_v22 = vld [vmem:[%s11976_s1 + $0x78] sm:$0xff] }
 0xaf5   : > { %3938 = vperm.xlu0 %10053, %v3935_v23  }
 0xb3b   : > { %v10067_v26 = vpop.permute.xlu0 %10066 }
 0xb3c   : > { %v10069_v27 = vunpack.i.h.bf16 %v10067_v26  ;;  %v10068_v24 = vunpack.i.l.bf16 %v10067_v26 }
 0xb3e   : > { %v9398_v28 = vpack.c.bf16 %v10069_v27, %v10068_v24 }
 0xb40   : > { %9399 = vmatprep.subr.bf16.mxu0 %v9398_v28 }
 0xb41   : > { %9401 = vmatpush3.bf16.msra.mxu0 %v9398_v28  ;;  %v7755_v28 = vld [vmem:[%s11976_s1 + $0x80] sm:$0xff] }
 0xb44   : > { %8645 = vmatmul.mubr.msk.f32.vlgmr.msra.gmra.mrb[10].mxu0 %vm1471_vm0, %v2853_v29  ;;  %v7756_v29 = vld [vmem:[%s11976_s1 + $0x88] sm:$0xff] }
 0xb45   : > { %8647 = vmatprep.mubr.msk.f32.mxu0 %vm1471_vm0, %v2854_v32  ;;  %v3363_v32 = vld [vmem:[#allocation8 + $0x28] sm:$0xff] }
 0xb48   : > { %8648 = vmatmul.mubr.msk.f32.gmra.mrb[12].mxu0 %vm1471_vm0, %v2855_v53  ;;  %v9462_v53 = vpack.c.bf16 %v7756_v29, %v7755_v28 }
 0xb49   : > { %8654 = vmatprep.mubr.msk.f32.mxu0 %vm1599_vm1, %v2995_v33  ;;  %v7757_v33 = vld [vmem:[%s11976_s1 + $0x90] sm:$0xff] }
 0xb4c   : > { %v2879_v36 = vpop.permute.xlu0 %2878 }
 0xb50   : > { %v2869_v45 = vpop.permute.xlu0 %2868 }
 0xb54   : > { %v2252_v15 = vpop.permute.xlu0 %2251 }
 0xb55   : > { %v9787_v16 = vadd.f32 %v11381_v30, %v2252_v15 }
 0xb57   : > { %v2440_v17 = vadd.f32 %v9787_v16, %v7692_v3  ;;  %v3599_v3 = vld [vmem:[#allocation5 + $0x70] sm:$0xff] }
 0xc17   : > { %v8646_v34 = vpop.f32.mrb[10].mxu0 }
 0xc18   : > { %v2959_v35 = vpop.f32.mrb[11].mxu0  ;;  %v2965_v48 = vadd.f32 %v8646_v34, %v2869_v45  ;;  %v7758_v34 = vld [vmem:[%s11976_s1 + $0x98] sm:$0xff] }
 0xc19   : > { %v2960_v49 = vadd.f32 %v2959_v35, %v2864_v46  ;;  %v9466_v35 = vpack.c.bf16 %v7758_v34, %v7757_v33  ;;  %v3837_v33 = vld [vmem:[%s11977_s4 + $0x8] sm:$0xff] }
 0xc1b   : > { %v8649_v37 = vpop.f32.mrb[12].mxu0 }
 0xc1c   : > { %v2975_v39 = vadd.f32 %v8649_v37, %v2879_v36  ;;  %v2969_v40 = vpop.f32.mrb[13].mxu0  ;;  %v7759_v36 = vld [vmem:[%s11976_s1 + $0xa0] sm:$0xff]  ;;  %v7760_v37 = vld [vmem:[%s11976_s1 + $0xa8] sm:$0xff] }
 0xc1d   : > { %v2970_v41 = vadd.f32 %v2969_v40, %v2874_v38  ;;  %v9470_v38 = vpack.c.bf16 %v7760_v37, %v7759_v36  ;;  %v3370_v40 = vpop.permute.xlu1 %3369 }
 0xc1e   : > { %v7729_v42 = vmul.f32 -1.442695, %v2975_v39  ;;  %v3375_v39 = vpop.permute.xlu0 %3374 }
 0xc1f   : > { %v7728_v43 = vmul.f32 -1.442695, %v2970_v41 }
 0xc20   : > { %10099 = vpow2.f32 %v7729_v42 }
 0xc21   : > { %10101 = vpow2.f32 %v7728_v43  ;;  %v7763_v43 = vld [vmem:[#allocation10 + $0x1] ss:$0 sm:$0xff]  ;;  %v3564_v45 = vpop.permute.xlu1 %3563 }
 0xc22   : > { %10103 = vtanh.f32 %v2965_v48  ;;  %v3569_v41 = vpop.permute.xlu0 %3568 }
 0xc23   : > { %10105 = vtanh.f32 %v2960_v49 }
 0xc2a   : > { %v10100_v51 = vpop.eup %10099 }
 0xc2b   : > { %v10102_v52 = vpop.eup %10101  ;;  %v2987_v54 = vadd.f32 1.0, %v10100_v51 }
 0xc2c   : > { %v2986_v55 = vadd.f32 1.0, %v10102_v52  ;;  %v10104_v19 = vpop.eup %10103  ;;  %v3597_v52 = vld [vmem:[#allocation5 + $0x60] sm:$0xff] }
 0xc2d   : > { %10107 = vrcp.f32 %v2987_v54  ;;  %v10106_v56 = vpop.eup %10105 }
 0xc2e   : > { %10109 = vrcp.f32 %v2986_v55  ;;  %v3584_v55 = vpop.permute.xlu0 %3583 }
 0xc32   : > { %v3619_v12 = vpop.permute.xlu0 %3618 }
 0xc37   : > { %v10108_v10 = vpop.eup %10107 }
 0xc38   : > { %v10110_v57 = vpop.eup %10109  ;;  %v2993_v58 = vmul.f32 %v10108_v10, %v10104_v19  ;;  %v3579_v19 = vpop.permute.xlu1 %3578 }
 0xc39   : > { %v2992_v61 = vmul.f32 %v10110_v57, %v10106_v56 }
 0xc3b   : > { %v9402_v63 = vpack.c.bf16 %v2993_v58, %v2992_v61 }
 0xc3d   : > { %9403 = vmatprep.subr.bf16.mxu0 %v9402_v63 }
 0xc3e   : > { %9405 = vmatpush3.bf16.msra.mxu0 %v9402_v63 }
 0xc3f   : > { %9407 = vmatprep.subr.bf16.mxu0 %v9406_v0 }
 0xc41   : > { %8655 = vmatmul.mubr.msk.f32.vlgmr.msra.gmra.mrb[14].mxu0 %vm1599_vm1, %v2996_v4  ;;  %v3600_v4 = vld [vmem:[#allocation5 + $0x78] sm:$0xff] }
 0xc42   : > { %9409 = vmatpush3.bf16.msra.mxu0 %v9406_v0  ;;  %8673 = vmatprep.mubr.msk.f32.mxu0 %vm2449_vm5, %v2439_v6 }
 0xc43   : > { %9411 = vmatprep.subr.bf16.mxu0 %v9410_v5 }
 0xc46   : > { %9413 = vmatpush3.bf16.msra.mxu0 %v9410_v5  ;;  %v3740_v5 = vld [vmem:[#allocation7 + $0x30] sm:$0xff] }
 0xc47   : > { %9415 = vmatprep.subr.bf16.mxu0 %v9414_v31 }
 0xc4a   : > { %9417 = vmatpush3.bf16.msra.mxu0 %v9414_v31 }
 0xc4b   : > { %9419 = vmatprep.subr.bf16.mxu0 %v9418_v14 }
 0xc4e   : > { %9421 = vmatpush3.bf16.msra.mxu0 %v9418_v14 }
 0xc4f   : > { %9423 = vmatprep.subr.bf16.mxu0 %v11255_v44 }
 0xc51   : > { %8674 = vmatmul.mubr.msk.f32.vlgmr.msra.gmra.mrb[14].mxu0 %vm2449_vm5, %v2440_v17 }
 0xc52   : > { %9425 = vmatpush3.bf16.msra.mxu0 %v11255_v44  ;;  %8688 = vmatprep.mubr.msk.f32.mxu0 %vm1870_vm3, %v2992_v61  ;;  %v7731_v61 = vld [vmem:[%s11974_s26 + $0x28] sm:$0xff] }
 0xc53   : > { %9427 = vmatprep.subr.bf16.mxu0 %v11260_v47 }
 0xc56   : > { %9429 = vmatpush3.bf16.msra.mxu0 %v11260_v47  ;;  %v3362_v47 = vld [vmem:[#allocation8 + $0x20] sm:$0xff] }
 0xc57   : > { %9431 = vmatprep.subr.bf16.mxu0 %v11266_v50 }
 0xc5a   : > { %9433 = vmatpush3.bf16.msra.mxu0 %v11266_v50  ;;  %v7753_v50 = vld [vmem:[%s11976_s1 + $0x70] sm:$0xff]  ;;  %s11982_s1 = sld [smem:[#allocation54_spill]] }
 0xc5b   : > { %9447 = vmatprep.subr.bf16.mxu0 %v9402_v63  ;;  %v9458_v24 = vpack.c.bf16 %v7754_v22, %v7753_v50 }
 0xc5d   : > { %8689 = vmatmul.mubr.msk.f32.vlgmr.msra.gmra.mrb[16].mxu0 %vm1870_vm3, %v2993_v58 }
 0xc5e   : > { %9449 = vmatpush3.bf16.msra.mxu0 %v9402_v63  ;;  %8718 = vmatprep.mubr.msk.f32.mxu0 %vm1870_vm3, %v3362_v47 }
 0xd24   : > { %v11455_v30 = vpop.f32.mrb[14].mxu0 }
 0xd25   : > { %v11457_v18 = vpop.f32.mrb[15].mxu0 }
 0xd30   : > { %v8690_v44 = vpop.f32.mrb[16].mxu0 }
 0xd31   : > { %v3271_v25 = vpop.f32.mrb[17].mxu0 }
 0xd32   : > { %v9450_v21 = vpack.c.bf16 %v8690_v44, %v3271_v25  ;;  %8703 = vmatprep.mubr.msk.f32.mxu1 %vm1870_vm3, %v3271_v25  ;;  %v3609_v25 = vpop.permute.xlu0 %3608 }
 0xd33   : > { %8704 = vmatmul.mubr.msk.f32.vlgmr.msra.gmra.mrb[14].mxu1 %vm1870_vm3, %v8690_v44 }
 0xd34   : > { %9451 = vmatprep.subr.bf16.mxu0 %v9450_v21  ;;  %8748 = vmatprep.mubr.msk.f32.mxu1 %vm1471_vm0, %v3597_v52  ;;  %v10725_v52 = vmov 0.0|0.0  }
 0xd35   : > { %9453 = vmatpush3.bf16.msra.mxu0 %v9450_v21 }
 0xe06   : > { %v8705_v23 = vpop.f32.mrb[14].mxu1 }
 0xe07   : > { %v3352_v26 = vpop.f32.mrb[15].mxu1 }
 0xe08   : > { %v9454_v27 = vpack.c.bf16 %v8705_v23, %v3352_v26 }
 0xe0a   : > { %9455 = vmatprep.subr.bf16.mxu0 %v9454_v27 }
 0xe0b   : > { %9457 = vmatpush3.bf16.msra.mxu0 %v9454_v27 }
 0xe0c   : > { %9459 = vmatprep.subr.bf16.mxu0 %v9458_v24 }
 0xe0e   : > { %8719 = vmatmul.mubr.msk.f32.vlgmr.msra.gmra.mrb[18].mxu0 %vm1870_vm3, %v3363_v32 }
 0xe0f   : > { %9461 = vmatpush3.bf16.msra.mxu0 %v9458_v24  ;;  %8737 = vmatprep.mubr.msk.f32.mxu0 %vm2449_vm5, %v11412_v20 }
 0xe10   : > { %9463 = vmatprep.subr.bf16.mxu0 %v9462_v53 }
 0xe13   : > { %9465 = vmatpush3.bf16.msra.mxu0 %v9462_v53  ;;  %v3836_v53 = vld [vmem:[%s11977_s4] sm:$0xff] }
 0xe14   : > { %9467 = vmatprep.subr.bf16.mxu0 %v9466_v35  ;;  %v9486_v37 = vpack.c.bf16 %v3837_v33, %v3836_v53  ;;  %v4183_v33 = vld [vmem:[%s11982_s1 + $0x8] sm:$0xff] }
 0xe17   : > { %9469 = vmatpush3.bf16.msra.mxu0 %v9466_v35  ;;  %v3003_v35 = vpop.permute.xlu0 %3002 }
 0xe18   : > { %9471 = vmatprep.subr.bf16.mxu0 %v9470_v38 }
 0xe1b   : > { %9473 = vmatpush3.bf16.msra.mxu0 %v9470_v38  ;;  %v9792_v38 = vadd.f32 %v11457_v18, %v3003_v35 }
 0xe1c   : > { %9498 = vmatprep.subr.bf16.mxu0 %v10725_v52 }
 0xe1e   : > { %8738 = vmatmul.mubr.msk.f32.vlgmr.msra.gmra.mrb[18].mxu0 %vm2449_vm5, %v11410_v7 }
 0xef1   : > { %v8739_v42 = vpop.f32.mrb[18].mxu0 }
 0xef2   : > { %v9793_v20 = vadd.f32 %v8739_v42, %v3375_v39  ;;  %v3537_v46 = vpop.f32.mrb[19].mxu0  ;;  %v3838_v39 = vld [vmem:[%s11977_s4 + $0x10] sm:$0xff] }
 0xef3   : > { %v9794_v48 = vadd.f32 %v3537_v46, %v3370_v40  ;;  %v3839_v40 = vld [vmem:[%s11977_s4 + $0x18] sm:$0xff]  ;;  %v3741_v42 = vld [vmem:[#allocation7 + $0x38] sm:$0xff] }
 0xef4   : > { %v3557_v49 = vadd.f32 %v9793_v20, %v7763_v43  ;;  %v3840_v20 = vld [vmem:[%s11977_s4 + $0x20] sm:$0xff]  ;;  %v3841_v46 = vld [vmem:[%s11977_s4 + $0x28] sm:$0xff]  ;;  %s11987_s4 = sld [smem:[#allocation61_spill]] }
 0xef5   : > { %v3556_v51 = vadd.f32 %v9794_v48, %v7763_v43  ;;  %v9490_v43 = vpack.c.bf16 %v3839_v40, %v3838_v39  ;;  %v9494_v48 = vpack.c.bf16 %v3841_v46, %v3840_v20 }
 0xef6   : > { %v3572_v54 = vmul.f32 %v3569_v41, %v3557_v49  ;;  %v7744_v41 = vld [vmem:[#allocation11 + $0x1] ss:$0 sm:$0xff] }
 0xef7   : > { %v3571_v7 = vmul.f32 %v3564_v45, %v3556_v51  ;;  %v3191_v45 = vadd.f32 %v9792_v38, %v7744_v41 }
 0xef8   : > { %v3587_v56 = vadd.f32 %v3584_v55, %v3572_v54  ;;  %v10727_v54 = vmov 0.0  }
 0xef9   : > { %v3586_v10 = vadd.f32 %v3579_v19, %v3571_v7  ;;  %8780 = vmatprep.mubr.msk.f32.mxu0 %vm10726_vm6, %v10727_v54  ;;  %v7784_v7 = vld [vmem:[#allocation11] ss:$0 sm:$0xff]  ;;  %v3748_v19 = vpop.permute.xlu0 %3747 }
 0xefb   : > { %v10070_v57 = vpack.i.bf16 %v3587_v56, %v3586_v10  ;;  %v9474_v58 = vpack.c.bf16 %v3587_v56, %v3586_v10 }
 0xefd   : > { %10071 = vrot.lane.b32.xlu1 %v10070_v57, %s10724_s23  ;;  %9475 = vmatprep.subr.bf16.mxu1 %v9474_v58  ;;  %s11980_s23 = sld [smem:[#allocation55_spill]] }
 0xefe   : > { %9477 = vmatpush3.bf16.msra.mxu1 %v9474_v58 }
 0xf01   : > { %3623 = vperm.xlu1 %10054, %v7771_v59  }
 0xf05   : > { %3613 = vperm.xlu1 %10054, %v7769_v60  }
 0xf09   : > { %3007 = vperm.xlu1 %10054, %v7731_v61   ;;  %v3934_v61 = vld [vmem:[#allocation13] sm:$0x3] }
 0xf0d   : > { %3752 = vperm.xlu1 %10054, %v7779_v62   ;;  %v4020_v62 = vld [vmem:[%s11979_s10] sm:$0xff] }
 0xf6f   : > { %v10072_v63 = vpop.permute.xlu1 %10071 }
 0xf70   : > { %v10074_v0 = vunpack.i.h.bf16 %v10072_v63  ;;  %v10073_v9 = vunpack.i.l.bf16 %v10072_v63  ;;  %v4021_v63 = vld [vmem:[%s11979_s10 + $0x8] sm:$0xff] }
 0xf72   : > { %v9478_v1 = vpack.c.bf16 %v10074_v0, %v10073_v9  ;;  %v4022_v0 = vld [vmem:[%s11979_s10 + $0x10] sm:$0xff]  ;;  %v9502_v9 = vpack.c.bf16 %v4021_v63, %v4020_v62  ;;  %v4656_v62 = vld [vmem:[#allocation3] sm:$0xff] }
 0xf73   : > { %v4657_v63 = vld [vmem:[#allocation3 + $0x8] sm:$0xff] }
 0xf74   : > { %9479 = vmatprep.subr.bf16.mxu1 %v9478_v1 }
 0xf75   : > { %9481 = vmatpush3.bf16.msra.mxu1 %v9478_v1  ;;  %v4023_v1 = vld [vmem:[%s11979_s10 + $0x18] sm:$0xff] }
 0xf78   : > { %8749 = vmatmul.mubr.msk.f32.vlgmr.msra.gmra.mrb[16].mxu1 %vm1471_vm0, %v3598_v2  ;;  %v9505_v2 = vpack.c.bf16 %v4023_v1, %v4022_v0  ;;  %v7831_v1 = vld [vmem:[%s11987_s4 + $0x38] sm:$0xff] }
 0xf79   : > { %8751 = vmatprep.mubr.msk.f32.mxu1 %vm1471_vm0, %v3599_v3  ;;  %v3939_v3 = vpop.permute.xlu0 %3938 }
 0xf7c   : > { %8752 = vmatmul.mubr.msk.f32.gmra.mrb[18].mxu1 %vm1471_vm0, %v3600_v4 }
 0xf7d   : > { %8758 = vmatprep.mubr.msk.f32.mxu1 %vm1599_vm1, %v3740_v5 }
 0xf80   : > { %v3624_v11 = vpop.permute.xlu1 %3623 }
 0xf84   : > { %v3614_v44 = vpop.permute.xlu1 %3613 }
 0xf88   : > { %v3008_v49 = vpop.permute.xlu1 %3007 }
 0xf89   : > { %v9791_v18 = vadd.f32 %v11455_v30, %v3008_v49 }
 0xf8b   : > { %v3192_v51 = vadd.f32 %v9791_v18, %v7744_v41 }
 0xf8c   : > { %v3753_v30 = vpop.permute.xlu1 %3752 }
0x104b   : > { %v8750_v6 = vpop.f32.mrb[16].mxu1 }
0x104c   : > { %v3704_v8 = vpop.f32.mrb[17].mxu1  ;;  %v3710_v21 = vadd.f32 %v8750_v6, %v3614_v44 }
0x104d   : > { %v3705_v47 = vadd.f32 %v3704_v8, %v3609_v25 }
0x104f   : > { %v8753_v31 = vpop.f32.mrb[18].mxu1 }
0x1050   : > { %v3720_v13 = vadd.f32 %v8753_v31, %v3624_v11  ;;  %v3714_v14 = vpop.f32.mrb[19].mxu1  ;;  %v4184_v11 = vld [vmem:[%s11980_s23] sm:$0xff]  ;;  %v7809_v31 = vld [vmem:[%s11981_s7 + $0x70] sm:$0xff] }
0x1051   : > { %v3715_v15 = vadd.f32 %v3714_v14, %v3619_v12  ;;  %v4098_v14 = vld [vmem:[#allocation16] sm:$0xff] }
0x1052   : > { %v7777_v16 = vmul.f32 -1.442695, %v3720_v13 }
0x1053   : > { %v7776_v17 = vmul.f32 -1.442695, %v3715_v15  ;;  %v4099_v15 = vld [vmem:[#allocation16 + $0x8] sm:$0xff] }
0x1054   : > { %10111 = vpow2.f32 %v7777_v16  ;;  %v9508_v16 = vpack.c.bf16 %v4099_v15, %v4098_v14 }
0x1055   : > { %10113 = vpow2.f32 %v7776_v17  ;;  %v4024_v17 = vld [vmem:[#allocation14] sm:$0x1] }
0x1056   : > { %10115 = vtanh.f32 %v3710_v21 }
0x1057   : > { %10117 = vtanh.f32 %v3705_v47  ;;  %v4182_v47 = vld [vmem:[%s11982_s1] sm:$0xff]  ;;  %s11986_s1 = sld [smem:[#allocation60_spill]] }
0x105d   : > { %v7828_v0 = vld [vmem:[%s11986_s1 + $0x30] sm:$0xff] }
0x105e   : > { %v10112_v50 = vpop.eup %10111 }
0x105f   : > { %v10114_v22 = vpop.eup %10113  ;;  %v3732_v23 = vadd.f32 1.0, %v10112_v50  ;;  %v4100_v50 = vld [vmem:[#allocation17] sm:$0x1] }
0x1060   : > { %v3731_v26 = vadd.f32 1.0, %v10114_v22  ;;  %v10116_v27 = vpop.eup %10115 }
0x1061   : > { %10119 = vrcp.f32 %v3732_v23  ;;  %v10118_v24 = vpop.eup %10117 }
0x1062   : > { %10121 = vrcp.f32 %v3731_v26 }
0x106b   : > { %v10120_v28 = vpop.eup %10119 }
0x106c   : > { %v10122_v29 = vpop.eup %10121  ;;  %v3738_v32 = vmul.f32 %v10120_v28, %v10116_v27  ;;  %v4185_v28 = vld [vmem:[%s11980_s23 + $0x8] sm:$0xff] }
0x106d   : > { %v3737_v34 = vmul.f32 %v10122_v29, %v10118_v24  ;;  %v7810_v29 = vld [vmem:[%s11981_s7 + $0x78] sm:$0xff] }
0x106f   : > { %v9482_v36 = vpack.c.bf16 %v3738_v32, %v3737_v34 }
0x1071   : > { %9483 = vmatprep.subr.bf16.mxu1 %v9482_v36 }
0x1072   : > { %9485 = vmatpush3.bf16.msra.mxu1 %v9482_v36 }
0x1073   : > { %9487 = vmatprep.subr.bf16.mxu1 %v9486_v37 }
0x1075   : > { %8759 = vmatmul.mubr.msk.f32.vlgmr.msra.gmra.mrb[20].mxu1 %vm1599_vm1, %v3741_v42 }
0x1076   : > { %9489 = vmatpush3.bf16.msra.mxu1 %v9486_v37  ;;  %8773 = vmatprep.mubr.msk.f32.mxu1 %vm1870_vm3, %v3191_v45 }
0x1077   : > { %9491 = vmatprep.subr.bf16.mxu1 %v9490_v43 }
0x107a   : > { %9493 = vmatpush3.bf16.msra.mxu1 %v9490_v43 }
0x107b   : > { %9495 = vmatprep.subr.bf16.mxu1 %v9494_v48 }
0x107e   : > { %9497 = vmatpush3.bf16.msra.mxu1 %v9494_v48 }
0x107f   : > { %9501 = vmatprep.subr.bf16.mxu1 %v10725_v52 }
0x1081   : > { %8774 = vmatmul.mubr.msk.f32.vlgmr.msra.gmra.mrb[20].mxu1 %vm1870_vm3, %v3192_v51 }
0x1082   : > { %8791 = vmatprep.mubr.msk.f32.mxu1 %vm10726_vm6, %v10727_v54  ;;  %9503 = vmatpush3.bf16.msra.mxu1 %v9502_v9  ;;  %v11560_v9 = vpack.c.bf16 %v4657_v63, %v4656_v62 }
0x1083   : > { %9504 = vmatprep.subr.bf16.mxu1 %v10725_v52 }
0x1086   : > { %9506 = vmatpush3.bf16.msra.mxu1 %v9505_v2  ;;  %v4658_v2 = vld [vmem:[#allocation3 + $0x10] sm:$0xff] }
0x1154   : > { %v8775_v55 = vpop.f32.mrb[20].mxu1 }
0x1155   : > { %v9795_v56 = vadd.f32 %v8775_v55, %v3753_v30  ;;  %v3914_v10 = vpop.f32.mrb[21].mxu1 }
0x1156   : > { %v9796_v57 = vadd.f32 %v3914_v10, %v3748_v19 }
0x1157   : > { %v3933_v58 = vadd.f32 %v9795_v56, %v7784_v7 }
0x1158   : > { %v3932_v59 = vadd.f32 %v9796_v57, %v7784_v7  ;;  %v7808_v57 = vld [vmem:[%s11981_s7 + $0x68] sm:$0xff] }
0x115a   : > { %v9499_v60 = vpack.c.bf16 %v3933_v58, %v3932_v59  ;;  %v7807_v58 = vld [vmem:[%s11981_s7 + $0x60] sm:$0xff] }
0x115c   : > { %9500 = vmatpush3.bf16.msra.mxu0 %v9499_v60 }
0x115d   : > { %9507 = vmatprep.subr.bf16.mxu0 %v10725_v52 }
0x115f   : > { %8781 = vmatmul.mubr.msk.f32.vlgmr.msra.gmra.mrb[20].mxu0 %vm1599_vm1, %v3934_v61  ;;  %v7829_v61 = vld [vmem:[%s11986_s1 + $0x38] sm:$0xff] }
0x1160   : > { %8798 = vmatprep.mubr.msk.f32.mxu0 %vm10726_vm6, %v10727_v54  ;;  %9509 = vmatpush3.bf16.msra.mxu0 %v9508_v16 }
0x1232   : > { %v4010_v4 = vpop.f32.mrb[20].mxu0 }
0x1233   : > { %v4011_v5 = vadd.f32 %v4010_v4, %v3939_v3  ;;  %v8782_v6 = vpop.f32.mrb[21].mxu0  ;;  %v4659_v3 = vld [vmem:[#allocation3 + $0x18] sm:$0xff]  ;;  %v7830_v4 = vld [vmem:[%s11987_s4 + $0x30] sm:$0xff] }
0x1234   : > { %v7851_v6 = vld [vmem:[%s11981_s7 + $0x58] sm:$0xff] }
0x1235   : > { %v4015_v8 = vrot.slane %v4011_v5, 1 }
0x1237   : > { %4016 = vrot.lane.b32.xlu1 %v4015_v8, %s11898_s11  ;;  %s11983_s11 = sld [smem:[#allocation56_spill]]  ;;  %v4660_v8 = vld [vmem:[#allocation3 + $0x20] sm:$0xff] }
0x123b   : > { %4188 = vperm.xlu1 %10054, %v4184_v11   ;;  %v4661_v11 = vld [vmem:[#allocation3 + $0x28] sm:$0xff] }
0x123d   : > { %v7799_v34 = vld [vmem:[%s11983_s11 + $0xe0] sm:$0xff]  ;;  %v7800_v43 = vld [vmem:[%s11983_s11 + $0xe8] sm:$0xff]  ;;  %v7801_v20 = vld [vmem:[%s11983_s11 + $0xf0] sm:$0xff] }
0x123e   : > { %v7791_v35 = vld [vmem:[%s11983_s11 + $0xc0] sm:$0xff]  ;;  %v7792_v45 = vld [vmem:[%s11983_s11 + $0xc8] sm:$0xff]  ;;  %v7793_v46 = vld [vmem:[%s11983_s11 + $0xd0] sm:$0xff] }
0x123f   : > { %4531 = vperm.xlu1 %10054, %v7809_v31   ;;  %v7802_v48 = vld [vmem:[%s11983_s11 + $0xf8] sm:$0xff]  ;;  %v7850_v31 = vld [vmem:[%s11981_s7 + $0x50] sm:$0xff] }
0x1240   : > { %v7794_v49 = vld [vmem:[%s11983_s11 + $0xd8] sm:$0xff] }
0x12a9   : > { %v4017_v12 = vpop.permute.xlu1 %4016 }
0x12aa   : > { %v4019_v13 = vsel %vm1599_vm1, %v4011_v5, %v4017_v12  ;;  %v11566_v5 = vpack.c.bf16 %v4659_v3, %v4658_v2  ;;  %v11572_v12 = vpack.c.bf16 %v4661_v11, %v4660_v8  ;;  %v4826_v3 = vld [vmem:[#allocation20 + $0x38] sm:$0xff] }
0x12ab   : > { %8792 = vmatmul.mubr.msk.f32.vlgmr.msra.gmra.mrb[22].mxu1 %vm1471_vm0, %v4019_v13 }
0x12ac   : > { %8810 = vmatprep.mubr.msk.f32.mxu1 %vm1599_vm1, %v7791_v35 }
0x12ba   : > { %v4189_v38 = vpop.permute.xlu1 %4188 }
0x12be   : > { %v4532_v15 = vpop.permute.xlu1 %4531 }
0x137e   : > { %v4094_v44 = vpop.f32.mrb[22].mxu1 }
0x137f   : > { %v4095_v25 = vadd.f32 %v4094_v44, %v4024_v17  ;;  %v8793_v21 = vpop.f32.mrb[23].mxu1 }
0x1381   : > { %8799 = vmatmul.mubr.msk.f32.vlgmr.msra.gmra.mrb[22].mxu0 %vm1599_vm1, %v4095_v25 }
0x1382   : > { %8803 = vmatprep.mubr.msk.f32.mxu0 %vm4196_vm7, %v4182_v47 }
0x1454   : > { %v4170_v22 = vpop.f32.mrb[22].mxu0 }
0x1455   : > { %v4171_v23 = vadd.f32 %v4170_v22, %v4100_v50  ;;  %v8800_v26 = vpop.f32.mrb[23].mxu0 }
0x1457   : > { %v4174_v27 = vadd.f32 %v4171_v23, %v4019_v13  ;;  %v4560_v13 = vld [vmem:[#allocation19 + $0x30] sm:$0xff] }
0x1459   : > { %v4176_v24 = vrot.slane %v4174_v27, 7 }
0x145b   : > { %4177 = vrot.lane.b32.xlu0 %v4176_v24, %s11984_s2  ;;  %s11985_s2 = sld [smem:[#allocation59_spill]] }
0x145f   : > { %4193 = vperm.xlu0 %10053, %v4185_v28  }
0x1461   : > { %v7822_v59 = vld [vmem:[%s11985_s2 + $0x38] sm:$0xff]  ;;  %v7821_v60 = vld [vmem:[%s11985_s2 + $0x30] sm:$0xff] }
0x1463   : > { %4536 = vperm.xlu0 %10053, %v7810_v29  }
0x14cd   : > { %v4178_v32 = vpop.permute.xlu0 %4177 }
0x14ce   : > { %v4181_v53 = vsel %vm4180_vm8, %v4174_v27, %v4178_v32 }
0x14cf   : > { %8801 = vmatprep.subr.msk.mxu0 %vm4203_vm9, %v4181_v53 }
0x14d0   : > { %8802 = vmatpush3.msk.msra.mxu0 %vm4203_vm9, %v4181_v53 }
0x14d1   : > { %8804 = vmatmul.mubr.msk.f32.vlgmr.msra.gmra.mrb[24].mxu0 %vm4196_vm7, %v4183_v33 }
0x14d2   : > { %8820 = vmatprep.mubr.msk.f32.mxu0 %vm1599_vm1, %v7799_v34 }
0x14de   : > { %v4194_v36 = vpop.permute.xlu0 %4193 }
0x14e2   : > { %v4537_v14 = vpop.permute.xlu0 %4536 }
0x15a4   : > { %v8805_v37 = vpop.f32.mrb[24].mxu0 }
0x15a5   : > { %v11528_v39 = vadd.f32 %v8805_v37, %v4194_v36  ;;  %v4273_v40 = vpop.f32.mrb[25].mxu0 }
0x15a6   : > { %v11530_v41 = vadd.f32 %v4273_v40, %v4189_v38 }
0x15a8   : > { %v9510_v42 = vpack.c.bf16 %v11528_v39, %v11530_v41 }
0x15aa   : > { %9511 = vmatprep.subr.bf16.mxu1 %v9510_v42  ;;  %9515 = vmatprep.subr.bf16.mxu0 %v9510_v42 }
0x15ab   : > { %9513 = vmatpush3.bf16.msra.mxu1 %v9510_v42  ;;  %9517 = vmatpush3.bf16.msra.mxu0 %v9510_v42 }
0x15ac   : > { %9523 = vmatprep.subr.bf16.mxu0 %v11560_v9 }
0x15ae   : > { %8821 = vmatmul.mubr.msk.f32.vlgmr.msra.gmra.mrb[26].mxu0 %vm1599_vm1, %v7800_v43  ;;  %8811 = vmatmul.mubr.msk.f32.vlgmr.msra.gmra.mrb[24].mxu1 %vm1599_vm1, %v7792_v45 }
0x15af   : > { %8823 = vmatprep.mubr.msk.f32.mxu0 %vm1599_vm1, %v7801_v20  ;;  %8813 = vmatprep.mubr.msk.f32.mxu1 %vm1599_vm1, %v7793_v46 }
0x15b0   : > { %9525 = vmatpush3.bf16.msra.mxu0 %v11560_v9 }
0x15b1   : > { %9527 = vmatprep.subr.bf16.mxu0 %v11566_v5 }
0x15b2   : > { %8824 = vmatmul.mubr.msk.f32.gmra.mrb[28].mxu0 %vm1599_vm1, %v7802_v48  ;;  %8814 = vmatmul.mubr.msk.f32.gmra.mrb[26].mxu1 %vm1599_vm1, %v7794_v49 }
0x15b3   : > { %8830 = vmatprep.mubr.msk.f32.mxu1 %vm1599_vm1, %v4560_v13  ;;  %v7827_v13 = vld [vmem:[#allocation22] ss:$0 sm:$0xff] }
0x15b4   : > { %9529 = vmatpush3.bf16.msra.mxu0 %v11566_v5 }
0x15b5   : > { %9531 = vmatprep.subr.bf16.mxu0 %v11572_v12 }
0x15b8   : > { %9533 = vmatpush3.bf16.msra.mxu0 %v11572_v12 }
0x1681   : > { %v8822_v18 = vpop.f32.mrb[26].mxu0  ;;  %v11546_v51 = vpop.f32.mrb[24].mxu1 }
0x1682   : > { %v4467_v30 = vpop.f32.mrb[27].mxu0  ;;  %v11548_v55 = vpop.f32.mrb[25].mxu1  ;;  %v4487_v35 = vsel %vm1599_vm1, %v11546_v51, 0.0 }
0x1683   : > { %v4486_v40 = vsel %vm1599_vm1, %v11548_v55, 0.0  ;;  %v4561_v55 = vld [vmem:[#allocation19 + $0x38] sm:$0xff] }
0x1685   : > { %v8825_v7 = vpop.f32.mrb[28].mxu0  ;;  %v8815_v19 = vpop.f32.mrb[26].mxu1 }
0x1686   : > { %4500 = vrot.lane.b32.xlu0 %v8825_v7, %s11904_s3  ;;  %v4477_v56 = vpop.f32.mrb[29].mxu0  ;;  %v4375_v10 = vpop.f32.mrb[27].mxu1  ;;  %v4489_v16 = vsel %vm1599_vm1, %v8815_v19, 0.0 }
0x1687   : > { %4498 = vrot.lane.b32.xlu1 %v4477_v56, %s11904_s3  ;;  %v4488_v44 = vsel %vm1599_vm1, %v4375_v10, 0.0 }
0x168a   : > { %4526 = vperm.xlu0 %10053, %v7808_v57  }
0x168b   : > { %4521 = vperm.xlu1 %10054, %v7807_v58  }
0x168e   : > { %4496 = vrot.lane.b32.xlu0 %v8822_v18, %s11904_s3 }
0x168f   : > { %4494 = vrot.lane.b32.xlu1 %v4467_v30, %s11904_s3  ;;  %s11988_s3 = sld [smem:[#allocation62_spill]] }
0x1692   : > { %4837 = vperm.xlu0 %10053, %v7822_v59  }
0x1693   : > { %4832 = vperm.xlu1 %10054, %v7821_v60   ;;  %v4825_v60 = vld [vmem:[#allocation20 + $0x30] sm:$0xff] }
0x1695   : > { %v4922_v62 = vld [vmem:[%s11988_s3 + $0x8] sm:$0xff] }
0x1696   : > { %5025 = vperm.xlu0 %10053, %v7829_v61   ;;  %v4921_v61 = vld [vmem:[%s11988_s3] sm:$0xff] }
0x1697   : > { %5020 = vperm.xlu1 %10054, %v7828_v0   ;;  %v9558_v2 = vpack.c.bf16 %v4922_v62, %v4921_v61 }
0x169a   : > { %5040 = vperm.xlu0 %10053, %v7831_v1  }
0x169b   : > { %5035 = vperm.xlu1 %10054, %v7830_v4   ;;  %v7832_v4 = vld [vmem:[%s11983_s11 + $0x80] sm:$0xff] }
0x169e   : > { %5299 = vperm.xlu0 %10053, %v7851_v6  }
0x169f   : > { %5294 = vperm.xlu1 %10054, %v7850_v31  }
0x16f8   : > { %v4501_v17 = vpop.permute.xlu0 %4500 }
0x16f9   : > { %v4509_v25 = vsel %vm1471_vm0, 0.0, %v4501_v17  ;;  %v4499_v21 = vpop.permute.xlu1 %4498 }
0x16fa   : > { %v4513_v47 = vadd.f32 %v4509_v25, %v4489_v16  ;;  %v4508_v50 = vsel %vm1471_vm0, 0.0, %v4499_v21 }
0x16fb   : > { %v4512_v22 = vadd.f32 %v4508_v50, %v4488_v44 }
0x16fc   : > { %v4542_v23 = vadd.f32 %v4537_v14, %v4513_v47 }
0x16fd   : > { %v4541_v26 = vadd.f32 %v4532_v15, %v4512_v22 }
0x16fe   : > { %v7812_v27 = vmul.f32 -1.442695, %v4542_v23 }
0x16ff   : > { %v7811_v24 = vmul.f32 -1.442695, %v4541_v26  ;;  %v7833_v26 = vld [vmem:[%s11983_s11 + $0x88] sm:$0xff] }
0x1700   : > { %10123 = vpow2.f32 %v7812_v27  ;;  %v7834_v27 = vld [vmem:[%s11983_s11 + $0x90] sm:$0xff] }
0x1701   : > { %10125 = vpow2.f32 %v7811_v24  ;;  %v7835_v24 = vld [vmem:[%s11983_s11 + $0x98] sm:$0xff] }
0x1709   : > { %v4527_v28 = vpop.permute.xlu0 %4526 }
0x170a   : > { %v10124_v29 = vpop.eup %10123  ;;  %v4522_v32 = vpop.permute.xlu1 %4521 }
0x170b   : > { %v10126_v53 = vpop.eup %10125  ;;  %v4552_v33 = vadd.f32 1.0, %v10124_v29  ;;  %v7841_v29 = vld [vmem:[%s11983_s11 + $0xa8] sm:$0xff] }
0x170c   : > { %v4551_v36 = vadd.f32 1.0, %v10126_v53  ;;  %v7843_v53 = vld [vmem:[%s11983_s11 + $0xb8] sm:$0xff] }
0x170d   : > { %v4497_v34 = vpop.permute.xlu0 %4496  ;;  %10127 = vrcp.f32 %v4552_v33 }
0x170e   : > { %v4507_v37 = vsel %vm1471_vm0, 0.0, %v4497_v34  ;;  %v4495_v38 = vpop.permute.xlu1 %4494  ;;  %10129 = vrcp.f32 %v4551_v36 }
0x170f   : > { %v4511_v42 = vadd.f32 %v4507_v37, %v4487_v35  ;;  %v4506_v43 = vsel %vm1471_vm0, 0.0, %v4495_v38 }
0x1710   : > { %v4510_v45 = vadd.f32 %v4506_v43, %v4486_v40  ;;  %v7849_v43 = vld [vmem:[%s11981_s7 + $0x48] sm:$0xff] }
0x1711   : > { %v4540_v20 = vadd.f32 %v4527_v28, %v4511_v42  ;;  %v4838_v6 = vpop.permute.xlu0 %4837  ;;  %v7840_v28 = vld [vmem:[%s11983_s11 + $0xa0] sm:$0xff] }
0x1712   : > { %v4539_v46 = vadd.f32 %v4522_v32, %v4510_v45  ;;  %v4833_v8 = vpop.permute.xlu1 %4832  ;;  %v7842_v32 = vld [vmem:[%s11983_s11 + $0xb0] sm:$0xff]  ;;  %v7848_v45 = vld [vmem:[%s11981_s7 + $0x40] sm:$0xff] }
0x1713   : > { %10131 = vtanh.f32 %v4540_v20  ;;  %v7814_v20 = vld [vmem:[%s11989_s5 + $0x38] sm:$0xff] }
0x1714   : > { %10133 = vtanh.f32 %v4539_v46  ;;  %v7813_v46 = vld [vmem:[%s11989_s5 + $0x30] sm:$0xff] }
0x1715   : > { %v5026_v11 = vpop.permute.xlu0 %5025 }
0x1716   : > { %v5021_v14 = vpop.permute.xlu1 %5020 }
0x1717   : > { %v10128_v48 = vpop.eup %10127 }
0x1718   : > { %v10130_v49 = vpop.eup %10129 }
0x171a   : > { %v5036_v47 = vpop.permute.xlu1 %5035 }
0x171d   : > { %v10132_v18 = vpop.eup %10131 }
0x171e   : > { %v10134_v51 = vpop.eup %10133  ;;  %v4558_v30 = vmul.f32 %v10132_v18, %v10128_v48  ;;  %v7866_v48 = vld [vmem:[%s11985_s2 + $0x28] sm:$0xff]  ;;  %v5295_v62 = vpop.permute.xlu1 %5294 }
0x171f   : > { %v4557_v7 = vmul.f32 %v10134_v51, %v10130_v49  ;;  %v7865_v49 = vld [vmem:[%s11985_s2 + $0x20] sm:$0xff]  ;;  %v7879_v18 = vld [vmem:[%s11986_s1 + $0x28] sm:$0xff] }
0x1720   : > { %v7878_v51 = vld [vmem:[%s11986_s1 + $0x20] sm:$0xff] }
0x1721   : > { %8845 = vmatprep.mubr.msk.f32.mxu0 %vm1870_vm3, %v4557_v7  ;;  %v9518_v19 = vpack.c.bf16 %v4558_v30, %v4557_v7  ;;  %v5525_v7 = vld [vmem:[#allocation3 + $0x30] sm:$0xff] }
0x1722   : > { %8846 = vmatmul.mubr.msk.f32.vlgmr.msra.gmra.mrb[30].mxu0 %vm1870_vm3, %v4558_v30  ;;  %v7881_v30 = vld [vmem:[%s11987_s4 + $0x28] sm:$0xff] }
0x1723   : > { %9519 = vmatprep.subr.bf16.mxu1 %v9518_v19  ;;  %9547 = vmatprep.subr.bf16.mxu0 %v9518_v19 }
0x1724   : > { %9521 = vmatpush3.bf16.msra.mxu1 %v9518_v19  ;;  %9549 = vmatpush3.bf16.msra.mxu0 %v9518_v19  ;;  %v5526_v19 = vld [vmem:[#allocation3 + $0x38] sm:$0xff] }
0x1725   : > { %9535 = vmatprep.subr.bf16.mxu1 %v11560_v9  ;;  %8875 = vmatprep.mubr.msk.f32.mxu0 %vm1870_vm3, %v4825_v60  ;;  %v5323_v60 = vld [vmem:[#allocation19 + $0x20] sm:$0xff] }
0x1727   : > { %8831 = vmatmul.mubr.msk.f32.vlgmr.msra.gmra.mrb[28].mxu1 %vm1599_vm1, %v4561_v55  ;;  %v7880_v55 = vld [vmem:[%s11987_s4 + $0x20] sm:$0xff] }
0x1728   : > { %9537 = vmatpush3.bf16.msra.mxu1 %v11560_v9 }
0x1729   : > { %9539 = vmatprep.subr.bf16.mxu1 %v11566_v5 }
0x172c   : > { %9541 = vmatpush3.bf16.msra.mxu1 %v11566_v5 }
0x172d   : > { %9543 = vmatprep.subr.bf16.mxu1 %v11572_v12 }
0x1730   : > { %9545 = vmatpush3.bf16.msra.mxu1 %v11572_v12 }
0x17f5   : > { %v8847_v56 = vpop.f32.mrb[30].mxu0 }
0x17f6   : > { %v4734_v10 = vpop.f32.mrb[31].mxu0 }
0x17f7   : > { %v9550_v57 = vpack.c.bf16 %v8847_v56, %v4734_v10  ;;  %8860 = vmatprep.mubr.msk.f32.mxu1 %vm1870_vm3, %v4734_v10  ;;  %v7901_v10 = vld [vmem:[%s11981_s7 + $0x38] sm:$0xff] }
0x17f8   : > { %8861 = vmatmul.mubr.msk.f32.vlgmr.msra.gmra.mrb[30].mxu1 %vm1870_vm3, %v8847_v56  ;;  %v11656_v56 = vpack.c.bf16 %v5526_v19, %v5525_v7 }
0x17f9   : > { %9551 = vmatprep.subr.bf16.mxu0 %v9550_v57  ;;  %8889 = vmatprep.mubr.msk.f32.mxu1 %vm1599_vm1, %v7832_v4 }
0x17fa   : > { %9553 = vmatpush3.bf16.msra.mxu0 %v9550_v57  ;;  %v11598_v58 = vpop.f32.mrb[28].mxu1  ;;  %v7900_v57 = vld [vmem:[%s11981_s7 + $0x30] sm:$0xff] }
0x17fb   : > { %v11600_v59 = vpop.f32.mrb[29].mxu1 }
0x18cb   : > { %v8862_v63 = vpop.f32.mrb[30].mxu1 }
0x18cc   : > { %v4815_v0 = vpop.f32.mrb[31].mxu1 }
0x18cd   : > { %v9554_v1 = vpack.c.bf16 %v8862_v63, %v4815_v0 }
0x18cf   : > { %9555 = vmatprep.subr.bf16.mxu0 %v9554_v1 }
0x18d0   : > { %9557 = vmatpush3.bf16.msra.mxu0 %v9554_v1 }
0x18d1   : > { %9559 = vmatprep.subr.bf16.mxu0 %v9558_v2 }
0x18d3   : > { %8876 = vmatmul.mubr.msk.f32.vlgmr.msra.gmra.mrb[32].mxu0 %vm1870_vm3, %v4826_v3 }
0x18d4   : > { %8882 = vmatprep.mubr.msk.f32.mxu0 %vm1599_vm1, %v11530_v41  ;;  %9561 = vmatpush3.bf16.msra.mxu0 %v9558_v2 }
0x18db   : > { %8883 = vmatmul.mubr.msk.f32.vlgmr.msra.gmra.mrb[32].mxu0 %vm1599_vm1, %v11528_v39  ;;  %v5041_v39 = vpop.permute.xlu0 %5040 }
0x18dc   : > { %8909 = vmatprep.mubr.msk.f32.mxu0 %vm1599_vm1, %v5323_v60 }
0x18df   : > { %v5300_v61 = vpop.permute.xlu0 %5299 }
0x19ae   : > { %v8884_v31 = vpop.f32.mrb[32].mxu0 }
0x19af   : > { %v9797_v15 = vadd.f32 %v8884_v31, %v4838_v6  ;;  %v4995_v16 = vpop.f32.mrb[33].mxu0 }
0x19b0   : > { %v9798_v17 = vadd.f32 %v4995_v16, %v4833_v8 }
0x19b1   : > { %v5014_v44 = vadd.f32 %v9797_v15, %v7827_v13 }
0x19b2   : > { %v5013_v41 = vadd.f32 %v9798_v17, %v7827_v13 }
0x19b3   : > { %v5029_v25 = vmul.f32 %v5026_v11, %v5014_v44 }
0x19b4   : > { %v5028_v21 = vmul.f32 %v5021_v14, %v5013_v41 }
0x19b5   : > { %v11612_v50 = vadd.f32 %v5041_v39, %v5029_v25 }
0x19b6   : > { %v11614_v22 = vadd.f32 %v5036_v47, %v5028_v21 }
0x19b8   : > { %v9562_v23 = vpack.c.bf16 %v11612_v50, %v11614_v22 }
0x19ba   : > { %9563 = vmatprep.subr.bf16.mxu1 %v9562_v23 }
0x19bb   : > { %9565 = vmatpush3.bf16.msra.mxu1 %v9562_v23 }
0x19bc   : > { %9567 = vmatprep.subr.bf16.mxu1 %v9562_v23 }
0x19be   : > { %8890 = vmatmul.mubr.msk.f32.vlgmr.msra.gmra.mrb[32].mxu1 %vm1599_vm1, %v7833_v26 }
0x19bf   : > { %9569 = vmatpush3.bf16.msra.mxu1 %v9562_v23  ;;  %8892 = vmatprep.mubr.msk.f32.mxu1 %vm1599_vm1, %v7834_v27 }
0x19c0   : > { %9587 = vmatprep.subr.bf16.mxu1 %v11560_v9 }
0x19c2   : > { %8893 = vmatmul.mubr.msk.f32.gmra.mrb[34].mxu1 %vm1599_vm1, %v7835_v24 }
0x19c3   : > { %8899 = vmatprep.mubr.msk.f32.mxu1 %vm1599_vm1, %v7840_v28 }
0x19c6   : > { %8900 = vmatmul.mubr.msk.f32.vlgmr.msra.gmra.mrb[36].mxu1 %vm1599_vm1, %v7841_v29 }
0x19c7   : > { %8902 = vmatprep.mubr.msk.f32.mxu1 %vm1599_vm1, %v7842_v32  ;;  %9589 = vmatpush3.bf16.msra.mxu1 %v11560_v9 }
0x19c8   : > { %9591 = vmatprep.subr.bf16.mxu1 %v11566_v5 }
0x19ca   : > { %8903 = vmatmul.mubr.msk.f32.gmra.mrb[38].mxu1 %vm1599_vm1, %v7843_v53 }
0x19cb   : > { %9593 = vmatpush3.bf16.msra.mxu1 %v11566_v5 }
0x19cc   : > { %9595 = vmatprep.subr.bf16.mxu1 %v11572_v12 }
0x19cf   : > { %9597 = vmatpush3.bf16.msra.mxu1 %v11572_v12 }
0x19d0   : > { %9599 = vmatprep.subr.bf16.mxu1 %v11656_v56 }
0x19d3   : > { %9601 = vmatpush3.bf16.msra.mxu1 %v11656_v56 }
0x1a91   : > { %v11638_v33 = vpop.f32.mrb[32].mxu1 }
0x1a92   : > { %v11640_v34 = vpop.f32.mrb[33].mxu1  ;;  %v5250_v39 = vsel %vm1870_vm3, %v11638_v33, 0.0 }
0x1a93   : > { %v5249_v26 = vsel %vm1870_vm3, %v11640_v34, 0.0 }
0x1a95   : > { %v8894_v35 = vpop.f32.mrb[34].mxu1 }
0x1a96   : > { %v5138_v36 = vpop.f32.mrb[35].mxu1  ;;  %v5252_v0 = vsel %vm1870_vm3, %v8894_v35, 0.0 }
0x1a97   : > { %v5251_v3 = vsel %vm1870_vm3, %v5138_v36, 0.0 }
0x1a99   : > { %v8901_v37 = vpop.f32.mrb[36].mxu1 }
0x1a9a   : > { %v5230_v38 = vpop.f32.mrb[37].mxu1 }
0x1a9d   : > { %v8904_v40 = vpop.f32.mrb[38].mxu1 }
0x1a9e   : > { %5263 = vrot.lane.b32.xlu0 %v8904_v40, %s11990_s6  ;;  %v5240_v42 = vpop.f32.mrb[39].mxu1  ;;  %v5421_v40 = vld [vmem:[#allocation23 + $0x78] sm:$0xff] }
0x1a9f   : > { %5261 = vrot.lane.b32.xlu1 %v5240_v42, %s11990_s6 }
0x1aa2   : > { %5289 = vperm.xlu0 %10053, %v7849_v43  }
0x1aa3   : > { %5284 = vperm.xlu1 %10054, %v7848_v45   ;;  %v5422_v45 = vld [vmem:[#allocation23 + $0x80] sm:$0xff] }
0x1aa6   : > { %5259 = vrot.lane.b32.xlu0 %v8901_v37, %s11990_s6 }
0x1aa7   : > { %5257 = vrot.lane.b32.xlu1 %v5230_v38, %s11990_s6  ;;  %v5420_v38 = vld [vmem:[#allocation23 + $0x70] sm:$0xff] }
0x1aa8   : > { %v9574_v43 = vpack.c.bf16 %v5421_v40, %v5420_v38  ;;  %v7891_v38 = vld [vmem:[%s11983_s11 + $0x68] sm:$0xff]  ;;  %v7892_v40 = vld [vmem:[%s11983_s11 + $0x70] sm:$0xff] }
0x1aaa   : > { %4572 = vperm.xlu0 %10053, %v7814_v20   ;;  %v5423_v20 = vld [vmem:[#allocation23 + $0x88] sm:$0xff] }
0x1aab   : > { %4567 = vperm.xlu1 %10054, %v7813_v46  }
0x1aae   : > { %5702 = vperm.xlu0 %10053, %v7866_v48   ;;  %v5324_v48 = vld [vmem:[#allocation19 + $0x28] sm:$0xff] }
0x1aaf   : > { %5697 = vperm.xlu1 %10054, %v7865_v49   ;;  %v9578_v49 = vpack.c.bf16 %v5423_v20, %v5422_v45 }
0x1ab2   : > { %5896 = vperm.xlu0 %10053, %v7879_v18  }
0x1ab3   : > { %5891 = vperm.xlu1 %10054, %v7878_v51   ;;  %v5424_v51 = vld [vmem:[#allocation23 + $0x90] sm:$0xff] }
0x1ab6   : > { %5911 = vperm.xlu0 %10053, %v7881_v30   ;;  %v5425_v30 = vld [vmem:[#allocation23 + $0x98] sm:$0xff] }
0x1ab7   : > { %5906 = vperm.xlu1 %10054, %v7880_v55   ;;  %v9582_v7 = vpack.c.bf16 %v5425_v30, %v5424_v51  ;;  %v7899_v51 = vld [vmem:[%s11981_s7 + $0x28] sm:$0xff]  ;;  %v7898_v30 = vld [vmem:[%s11981_s7 + $0x20] sm:$0xff] }
0x1aba   : > { %6170 = vperm.xlu0 %10053, %v7901_v10  }
0x1abb   : > { %6165 = vperm.xlu1 %10054, %v7900_v57  }
0x1b10   : > { %v5264_v63 = vpop.permute.xlu0 %5263 }
0x1b11   : > { %v5272_v1 = vsel %vm1599_vm1, 0.0, %v5264_v63  ;;  %v5262_v2 = vpop.permute.xlu1 %5261  ;;  %v7870_v63 = vld [vmem:[%s11988_s3 + $0x78] sm:$0xff] }
0x1b12   : > { %v5276_v4 = vadd.f32 %v5272_v1, %v5252_v0  ;;  %v5271_v6 = vsel %vm1599_vm1, 0.0, %v5262_v2 }
0x1b13   : > { %v5275_v8 = vadd.f32 %v5271_v6, %v5251_v3  ;;  %v7872_v6 = vld [vmem:[%s11988_s3 + $0x88] sm:$0xff] }
0x1b14   : > { %v5305_v11 = vadd.f32 %v5300_v61, %v5276_v4  ;;  %v5690_v61 = vld [vmem:[#allocation20 + $0x20] sm:$0xff]  ;;  %v7871_v4 = vld [vmem:[%s11988_s3 + $0x80] sm:$0xff] }
0x1b15   : > { %v5304_v31 = vadd.f32 %v5295_v62, %v5275_v8  ;;  %v7869_v62 = vld [vmem:[%s11988_s3 + $0x70] sm:$0xff] }
0x1b16   : > { %v7853_v13 = vmul.f32 -1.442695, %v5305_v11  ;;  %v9630_v3 = vpack.c.bf16 %v7870_v63, %v7869_v62  ;;  %v5691_v8 = vld [vmem:[#allocation20 + $0x28] sm:$0xff]  ;;  %v9634_v11 = vpack.c.bf16 %v7872_v6, %v7871_v4 }
0x1b17   : > { %v7852_v14 = vmul.f32 -1.442695, %v5304_v31  ;;  %v7873_v31 = vld [vmem:[%s11988_s3 + $0x90] sm:$0xff]  ;;  %v7029_v6 = vld [vmem:[%s11981_s7 + $0x18] sm:$0xff] }
0x1b18   : > { %10135 = vpow2.f32 %v7853_v13  ;;  %v7874_v13 = vld [vmem:[%s11988_s3 + $0x98] sm:$0xff]  ;;  %v7930_v62 = vld [vmem:[%s11986_s1 + $0x10] sm:$0xff] }
0x1b19   : > { %10137 = vpow2.f32 %v7852_v14  ;;  %v9638_v14 = vpack.c.bf16 %v7874_v13, %v7873_v31 }
0x1b21   : > { %v5290_v15 = vpop.permute.xlu0 %5289 }
0x1b22   : > { %v10136_v16 = vpop.eup %10135  ;;  %v5285_v17 = vpop.permute.xlu1 %5284 }
0x1b23   : > { %v10138_v44 = vpop.eup %10137  ;;  %v5315_v41 = vadd.f32 1.0, %v10136_v16 }
0x1b24   : > { %v5314_v21 = vadd.f32 1.0, %v10138_v44 }
0x1b25   : > { %v5260_v25 = vpop.permute.xlu0 %5259  ;;  %10139 = vrcp.f32 %v5315_v41 }
0x1b26   : > { %v5270_v47 = vsel %vm1599_vm1, 0.0, %v5260_v25  ;;  %v5258_v23 = vpop.permute.xlu1 %5257  ;;  %10141 = vrcp.f32 %v5314_v21  ;;  %v7877_v25 = vld [vmem:[#allocation22 + $0x1] ss:$0 sm:$0xff] }
0x1b27   : > { %v5274_v27 = vadd.f32 %v5270_v47, %v5250_v39  ;;  %v5269_v24 = vsel %vm1599_vm1, 0.0, %v5258_v23 }
0x1b28   : > { %v5273_v28 = vadd.f32 %v5269_v24, %v5249_v26 }
0x1b29   : > { %v5303_v29 = vadd.f32 %v5290_v15, %v5274_v27  ;;  %v4573_v19 = vpop.permute.xlu0 %4572  ;;  %v7882_v15 = vld [vmem:[%s11983_s11 + $0x40] sm:$0xff] }
0x1b2a   : > { %v5302_v32 = vadd.f32 %v5285_v17, %v5273_v28  ;;  %v4568_v46 = vpop.permute.xlu1 %4567  ;;  %v4653_v55 = vadd.f32 %v11598_v58, %v4573_v19  ;;  %v7854_v19 = vld [vmem:[%s11989_s5 + $0x20] sm:$0xff] }
0x1b2b   : > { %10143 = vtanh.f32 %v5303_v29  ;;  %v4648_v18 = vadd.f32 %v11600_v59, %v4568_v46 }
0x1b2c   : > { %10145 = vtanh.f32 %v5302_v32 }
0x1b2d   : > { %v5703_v16 = vpop.permute.xlu0 %5702 }
0x1b2e   : > { %v5698_v17 = vpop.permute.xlu1 %5697 }
0x1b2f   : > { %v10140_v53 = vpop.eup %10139 }
0x1b30   : > { %v10142_v35 = vpop.eup %10141 }
0x1b31   : > { %v5897_v44 = vpop.permute.xlu0 %5896 }
0x1b32   : > { %v5892_v39 = vpop.permute.xlu1 %5891 }
0x1b35   : > { %v10144_v33 = vpop.eup %10143 }
0x1b36   : > { %v10146_v36 = vpop.eup %10145  ;;  %v5321_v37 = vmul.f32 %v10144_v33, %v10140_v53  ;;  %v5907_v28 = vpop.permute.xlu1 %5906  ;;  %v7884_v33 = vld [vmem:[%s11983_s11 + $0x50] sm:$0xff] }
0x1b37   : > { %v5320_v42 = vmul.f32 %v10146_v36, %v10142_v35  ;;  %v7883_v35 = vld [vmem:[%s11983_s11 + $0x48] sm:$0xff]  ;;  %v7885_v36 = vld [vmem:[%s11983_s11 + $0x58] sm:$0xff] }
0x1b39   : > { %8943 = vmatprep.mubr.msk.f32.mxu1 %vm2449_vm5, %v5320_v42  ;;  %v9570_v34 = vpack.c.bf16 %v5321_v37, %v5320_v42  ;;  %v7893_v42 = vld [vmem:[%s11983_s11 + $0x78] sm:$0xff] }
0x1b3a   : > { %8944 = vmatmul.mubr.msk.f32.vlgmr.msra.gmra.mrb[40].mxu1 %vm2449_vm5, %v5321_v37  ;;  %v7890_v37 = vld [vmem:[%s11983_s11 + $0x60] sm:$0xff]  ;;  %v6166_v13 = vpop.permute.xlu1 %6165 }
0x1b3b   : > { %9571 = vmatprep.subr.bf16.mxu0 %v9570_v34  ;;  %9619 = vmatprep.subr.bf16.mxu1 %v9570_v34 }
0x1b3c   : > { %9573 = vmatpush3.bf16.msra.mxu0 %v9570_v34  ;;  %9621 = vmatpush3.bf16.msra.mxu1 %v9570_v34 }
0x1b3d   : > { %9575 = vmatprep.subr.bf16.mxu0 %v9574_v43  ;;  %8977 = vmatprep.mubr.msk.f32.mxu1 %vm1870_vm3, %v5690_v61  ;;  %v6401_v61 = vld [vmem:[#allocation3 + $0x48] sm:$0xff] }
0x1b3f   : > { %8910 = vmatmul.mubr.msk.f32.vlgmr.msra.gmra.mrb[34].mxu0 %vm1599_vm1, %v5324_v48 }
0x1b40   : > { %9577 = vmatpush3.bf16.msra.mxu0 %v9574_v43  ;;  %8924 = vmatprep.mubr.msk.f32.mxu0 %vm1870_vm3, %v4648_v18 }
0x1b41   : > { %9579 = vmatprep.subr.bf16.mxu0 %v9578_v49 }
0x1b44   : > { %9581 = vmatpush3.bf16.msra.mxu0 %v9578_v49 }
0x1b45   : > { %9583 = vmatprep.subr.bf16.mxu0 %v9582_v7 }
0x1b48   : > { %9585 = vmatpush3.bf16.msra.mxu0 %v9582_v7  ;;  %v7855_v7 = vld [vmem:[%s11989_s5 + $0x28] sm:$0xff] }
0x1b49   : > { %9603 = vmatprep.subr.bf16.mxu0 %v11560_v9 }
0x1b4b   : > { %8925 = vmatmul.mubr.msk.f32.vlgmr.msra.gmra.mrb[34].mxu0 %vm1870_vm3, %v4653_v55  ;;  %v7916_v55 = vld [vmem:[%s11985_s2 + $0x18] sm:$0xff] }
0x1b4c   : > { %9605 = vmatpush3.bf16.msra.mxu0 %v11560_v9 }
0x1b4d   : > { %9607 = vmatprep.subr.bf16.mxu0 %v11566_v5 }
0x1b50   : > { %9609 = vmatpush3.bf16.msra.mxu0 %v11566_v5 }
0x1b51   : > { %9611 = vmatprep.subr.bf16.mxu0 %v11572_v12 }
0x1b54   : > { %9613 = vmatpush3.bf16.msra.mxu0 %v11572_v12 }
0x1b55   : > { %9615 = vmatprep.subr.bf16.mxu0 %v11656_v56 }
0x1b58   : > { %9617 = vmatpush3.bf16.msra.mxu0 %v11656_v56 }
0x1c0d   : > { %v8945_v58 = vpop.f32.mrb[40].mxu1 }
0x1c0e   : > { %v5599_v59 = vpop.f32.mrb[41].mxu1 }
0x1c0f   : > { %v9622_v10 = vpack.c.bf16 %v8945_v58, %v5599_v59  ;;  %8962 = vmatprep.mubr.msk.f32.mxu0 %vm2449_vm5, %v5599_v59  ;;  %v7931_v59 = vld [vmem:[%s11986_s1 + $0x18] sm:$0xff] }
0x1c10   : > { %8963 = vmatmul.mubr.msk.f32.vlgmr.msra.gmra.mrb[36].mxu0 %vm2449_vm5, %v8945_v58  ;;  %v7915_v58 = vld [vmem:[%s11985_s2 + $0x10] sm:$0xff] }
0x1c11   : > { %9623 = vmatprep.subr.bf16.mxu1 %v9622_v10  ;;  %8999 = vmatprep.mubr.msk.f32.mxu0 %vm1599_vm1, %v7882_v15 }
0x1c12   : > { %9625 = vmatpush3.bf16.msra.mxu1 %v9622_v10  ;;  %v6400_v10 = vld [vmem:[#allocation3 + $0x40] sm:$0xff] }
0x1c13   : > { %v11752_v63 = vpack.c.bf16 %v6401_v61, %v6400_v10  ;;  %v6293_v10 = vld [vmem:[#allocation23 + $0xf0] sm:$0xff]  ;;  %v6294_v61 = vld [vmem:[#allocation23 + $0xf8] sm:$0xff] }
0x1c1e   : > { %v11690_v57 = vpop.f32.mrb[34].mxu0 }
0x1c1f   : > { %v11692_v60 = vpop.f32.mrb[35].mxu0 }
0x1ce3   : > { %v8964_v0 = vpop.f32.mrb[36].mxu0 }
0x1ce4   : > { %v5680_v1 = vpop.f32.mrb[37].mxu0 }
0x1ce5   : > { %v9626_v2 = vpack.c.bf16 %v8964_v0, %v5680_v1  ;;  %v7933_v0 = vld [vmem:[%s11987_s4 + $0x18] sm:$0xff] }
0x1ce6   : > { %v6402_v1 = vld [vmem:[#allocation3 + $0x50] sm:$0xff] }
0x1ce7   : > { %9627 = vmatprep.subr.bf16.mxu1 %v9626_v2 }
0x1ce8   : > { %9629 = vmatpush3.bf16.msra.mxu1 %v9626_v2  ;;  %v6403_v2 = vld [vmem:[#allocation3 + $0x58] sm:$0xff] }
0x1ce9   : > { %9631 = vmatprep.subr.bf16.mxu1 %v9630_v3  ;;  %v11758_v4 = vpack.c.bf16 %v6403_v2, %v6402_v1  ;;  %v9658_v1 = vpack.c.bf16 %v6294_v61, %v6293_v10  ;;  %v7941_v10 = vld [vmem:[%s11983_s11 + $0x38] sm:$0xff] }
0x1ceb   : > { %8978 = vmatmul.mubr.msk.f32.vlgmr.msra.gmra.mrb[42].mxu1 %vm1870_vm3, %v5691_v8  ;;  %v7028_v8 = vld [vmem:[%s11981_s7 + $0x10] sm:$0xff] }
0x1cec   : > { %9633 = vmatpush3.bf16.msra.mxu1 %v9630_v3  ;;  %8992 = vmatprep.mubr.msk.f32.mxu1 %vm1870_vm3, %v11614_v22  ;;  %v7932_v3 = vld [vmem:[%s11987_s4 + $0x10] sm:$0xff] }
0x1ced   : > { %9635 = vmatprep.subr.bf16.mxu1 %v9634_v11 }
0x1cf0   : > { %9637 = vmatpush3.bf16.msra.mxu1 %v9634_v11  ;;  %v6194_v11 = vld [vmem:[#allocation19 + $0x10] sm:$0xff] }
0x1cf1   : > { %9639 = vmatprep.subr.bf16.mxu1 %v9638_v14 }
0x1cf4   : > { %9641 = vmatpush3.bf16.msra.mxu1 %v9638_v14 }
0x1cf7   : > { %8993 = vmatmul.mubr.msk.f32.vlgmr.msra.gmra.mrb[42].mxu1 %vm1870_vm3, %v11612_v50  ;;  %v5912_v50 = vpop.permute.xlu0 %5911 }
0x1cf8   : > { %9019 = vmatprep.mubr.msk.f32.mxu1 %vm1599_vm1, %v6194_v11  ;;  %v6298_v11 = vld [vmem:[#allocation23 + $0x118] sm:$0xff] }
0x1cfb   : > { %v6171_v31 = vpop.permute.xlu0 %6170 }
0x1dca   : > { %v8994_v41 = vpop.f32.mrb[42].mxu1 }
0x1dcb   : > { %v9801_v21 = vadd.f32 %v8994_v41, %v5703_v16  ;;  %v5865_v22 = vpop.f32.mrb[43].mxu1 }
0x1dcc   : > { %v9802_v47 = vadd.f32 %v5865_v22, %v5698_v17 }
0x1dcd   : > { %v5885_v23 = vadd.f32 %v9801_v21, %v7877_v25 }
0x1dce   : > { %v5884_v26 = vadd.f32 %v9802_v47, %v7877_v25 }
0x1dcf   : > { %v5900_v27 = vmul.f32 %v5897_v44, %v5885_v23 }
0x1dd0   : > { %v5899_v24 = vmul.f32 %v5892_v39, %v5884_v26 }
0x1dd1   : > { %v11708_v29 = vadd.f32 %v5912_v50, %v5900_v27 }
0x1dd2   : > { %v11710_v32 = vadd.f32 %v5907_v28, %v5899_v24 }
0x1dd4   : > { %v9642_v53 = vpack.c.bf16 %v11708_v29, %v11710_v32 }
0x1dd6   : > { %9643 = vmatprep.subr.bf16.mxu0 %v9642_v53 }
0x1dd7   : > { %9645 = vmatpush3.bf16.msra.mxu0 %v9642_v53 }
0x1dd8   : > { %9647 = vmatprep.subr.bf16.mxu0 %v9642_v53 }
0x1dda   : > { %9000 = vmatmul.mubr.msk.f32.vlgmr.msra.gmra.mrb[38].mxu0 %vm1599_vm1, %v7883_v35 }
0x1ddb   : > { %9649 = vmatpush3.bf16.msra.mxu0 %v9642_v53  ;;  %9002 = vmatprep.mubr.msk.f32.mxu0 %vm1599_vm1, %v7884_v33 }
0x1ddc   : > { %9671 = vmatprep.subr.bf16.mxu0 %v11560_v9 }
0x1dde   : > { %9003 = vmatmul.mubr.msk.f32.gmra.mrb[40].mxu0 %vm1599_vm1, %v7885_v36 }
0x1ddf   : > { %9009 = vmatprep.mubr.msk.f32.mxu0 %vm1599_vm1, %v7890_v37 }
0x1de2   : > { %9010 = vmatmul.mubr.msk.f32.vlgmr.msra.gmra.mrb[42].mxu0 %vm1599_vm1, %v7891_v38 }
0x1de3   : > { %9012 = vmatprep.mubr.msk.f32.mxu0 %vm1599_vm1, %v7892_v40  ;;  %9673 = vmatpush3.bf16.msra.mxu0 %v11560_v9 }
0x1de4   : > { %9675 = vmatprep.subr.bf16.mxu0 %v11566_v5 }
0x1de6   : > { %9013 = vmatmul.mubr.msk.f32.gmra.mrb[44].mxu0 %vm1599_vm1, %v7893_v42 }
0x1de7   : > { %9677 = vmatpush3.bf16.msra.mxu0 %v11566_v5 }
0x1de8   : > { %9679 = vmatprep.subr.bf16.mxu0 %v11572_v12 }
0x1deb   : > { %9681 = vmatpush3.bf16.msra.mxu0 %v11572_v12 }
0x1dec   : > { %9683 = vmatprep.subr.bf16.mxu0 %v11656_v56 }
0x1def   : > { %9685 = vmatpush3.bf16.msra.mxu0 %v11656_v56 }
0x1df0   : > { %9687 = vmatprep.subr.bf16.mxu0 %v11752_v63 }
0x1df3   : > { %9689 = vmatpush3.bf16.msra.mxu0 %v11752_v63 }
0x1df4   : > { %9691 = vmatprep.subr.bf16.mxu0 %v11758_v4 }
0x1df7   : > { %9693 = vmatpush3.bf16.msra.mxu0 %v11758_v4 }
0x1ead   : > { %v11736_v34 = vpop.f32.mrb[38].mxu0 }
0x1eae   : > { %v11738_v43 = vpop.f32.mrb[39].mxu0  ;;  %v6121_v35 = vsel %vm2449_vm5, %v11736_v34, 0.0 }
0x1eaf   : > { %v6120_v38 = vsel %vm2449_vm5, %v11738_v43, 0.0 }
0x1eb1   : > { %v9004_v45 = vpop.f32.mrb[40].mxu0 }
0x1eb2   : > { %v6009_v20 = vpop.f32.mrb[41].mxu0  ;;  %v6123_v15 = vsel %vm2449_vm5, %v9004_v45, 0.0 }
0x1eb3   : > { %v6122_v44 = vsel %vm2449_vm5, %v6009_v20, 0.0 }
0x1eb5   : > { %v9011_v46 = vpop.f32.mrb[42].mxu0 }
0x1eb6   : > { %v6101_v48 = vpop.f32.mrb[43].mxu0 }
0x1eb9   : > { %v9014_v49 = vpop.f32.mrb[44].mxu0 }
0x1eba   : > { %6134 = vrot.lane.b32.xlu0 %v9014_v49, %s11991_s8  ;;  %v6111_v18 = vpop.f32.mrb[45].mxu0 }
0x1ebb   : > { %6132 = vrot.lane.b32.xlu1 %v6111_v18, %s11991_s8 }
0x1ebe   : > { %6160 = vperm.xlu0 %10053, %v7899_v51  }
0x1ebf   : > { %6155 = vperm.xlu1 %10054, %v7898_v30   ;;  %v6291_v30 = vld [vmem:[#allocation23 + $0xe0] sm:$0xff] }
0x1ec2   : > { %6130 = vrot.lane.b32.xlu0 %v9011_v46, %s11991_s8 }
0x1ec3   : > { %6128 = vrot.lane.b32.xlu1 %v6101_v48, %s11991_s8  ;;  %s1399_s8 = scalar_lea.vmem %s10931_s21, %s11993_s0 }
0x1ec6   : > { %5335 = vperm.xlu0 %10053, %v7855_v7   ;;  %v6292_v7 = vld [vmem:[#allocation23 + $0xe8] sm:$0xff] }
0x1ec7   : > { %5330 = vperm.xlu1 %10054, %v7854_v19  }
0x1eca   : > { %6579 = vperm.xlu0 %10053, %v7916_v55  }
0x1ecb   : > { %6574 = vperm.xlu1 %10054, %v7915_v58   ;;  %v9654_v58 = vpack.c.bf16 %v6292_v7, %v6291_v30  ;;  %v6796_v7 = vld [vmem:[%s11983_s11 + $0x8] sm:$0xff] }
0x1ece   : > { %6775 = vperm.xlu0 %10053, %v7931_v59  }
0x1ecf   : > { %6770 = vperm.xlu1 %10054, %v7930_v62   ;;  %v7860_v62 = vld [vmem:[#allocation25 + $0x1] ss:$0 sm:$0xff] }
0x1ed2   : > { %6790 = vperm.xlu0 %10053, %v7933_v0   ;;  %v6195_v0 = vld [vmem:[#allocation19 + $0x18] sm:$0xff] }
0x1ed3   : > { %6785 = vperm.xlu1 %10054, %v7932_v3   ;;  %v6295_v3 = vld [vmem:[#allocation23 + $0x100] sm:$0xff] }
0x1ed6   : > { %7047 = vperm.xlu0 %10053, %v7029_v6   ;;  %v6296_v6 = vld [vmem:[#allocation23 + $0x108] sm:$0xff] }
0x1ed7   : > { %7042 = vperm.xlu1 %10054, %v7028_v8   ;;  %v6297_v8 = vld [vmem:[#allocation23 + $0x110] sm:$0xff] }
0x1f2c   : > { %v6135_v14 = vpop.permute.xlu0 %6134 }
0x1f2d   : > { %v6143_v16 = vsel %vm1471_vm0, 0.0, %v6135_v14  ;;  %v6133_v17 = vpop.permute.xlu1 %6132 }
0x1f2e   : > { %v6147_v41 = vadd.f32 %v6143_v16, %v6123_v15  ;;  %v6142_v25 = vsel %vm1471_vm0, 0.0, %v6133_v17  ;;  %v7920_v16 = vld [vmem:[%s11988_s3 + $0xe8] sm:$0xff] }
0x1f2f   : > { %v6146_v39 = vadd.f32 %v6142_v25, %v6122_v44 }
0x1f30   : > { %v6176_v21 = vadd.f32 %v6171_v31, %v6147_v41  ;;  %v9666_v31 = vpack.c.bf16 %v6298_v11, %v6297_v8  ;;  %v7026_v8 = vld [vmem:[%s11981_s7] sm:$0xff]  ;;  %v7904_v11 = vld [vmem:[%s11989_s5 + $0x10] sm:$0xff] }
0x1f31   : > { %v6175_v22 = vadd.f32 %v6166_v13, %v6146_v39  ;;  %v7921_v39 = vld [vmem:[%s11988_s3 + $0xf0] sm:$0xff] }
0x1f32   : > { %v7903_v47 = vmul.f32 -1.442695, %v6176_v21  ;;  %v7922_v21 = vld [vmem:[%s11988_s3 + $0xf8] sm:$0xff] }
0x1f33   : > { %v7902_v23 = vmul.f32 -1.442695, %v6175_v22  ;;  %v6568_v22 = vld [vmem:[#allocation20 + $0x18] sm:$0xff] }
0x1f34   : > { %10147 = vpow2.f32 %v7903_v47  ;;  %v9734_v47 = vpack.c.bf16 %v7922_v21, %v7921_v39 }
0x1f35   : > { %10149 = vpow2.f32 %v7902_v23  ;;  %v7923_v23 = vld [vmem:[%s11988_s3 + $0x100] sm:$0xff] }
0x1f3d   : > { %v6161_v26 = vpop.permute.xlu0 %6160 }
0x1f3e   : > { %v10148_v27 = vpop.eup %10147  ;;  %v6156_v50 = vpop.permute.xlu1 %6155 }
0x1f3f   : > { %v10150_v24 = vpop.eup %10149  ;;  %v6186_v28 = vadd.f32 1.0, %v10148_v27 }
0x1f40   : > { %v6185_v33 = vadd.f32 1.0, %v10150_v24  ;;  %v7926_v24 = vld [vmem:[%s11988_s3 + $0x118] sm:$0xff] }
0x1f41   : > { %v6131_v53 = vpop.permute.xlu0 %6130  ;;  %10151 = vrcp.f32 %v6186_v28 }
0x1f42   : > { %v6141_v36 = vsel %vm1471_vm0, 0.0, %v6131_v53  ;;  %v6129_v37 = vpop.permute.xlu1 %6128  ;;  %10153 = vrcp.f32 %v6185_v33  ;;  %v6795_v53 = vld [vmem:[%s11983_s11] sm:$0xff] }
0x1f43   : > { %v6145_v40 = vadd.f32 %v6141_v36, %v6121_v35  ;;  %v6140_v42 = vsel %vm1471_vm0, 0.0, %v6129_v37  ;;  %v7929_v37 = vld [vmem:[#allocation22 + $0x2] ss:$0 sm:$0xff] }
0x1f44   : > { %v6144_v45 = vadd.f32 %v6140_v42, %v6120_v38 }
0x1f45   : > { %v6174_v20 = vadd.f32 %v6161_v26, %v6145_v40  ;;  %v5336_v13 = vpop.permute.xlu0 %5335  ;;  %v7924_v26 = vld [vmem:[%s11988_s3 + $0x108] sm:$0xff] }
0x1f46   : > { %v6173_v46 = vadd.f32 %v6156_v50, %v6144_v45  ;;  %v5331_v19 = vpop.permute.xlu1 %5330  ;;  %v9799_v14 = vadd.f32 %v11690_v57, %v5336_v13  ;;  %v9738_v27 = vpack.c.bf16 %v7924_v26, %v7923_v23  ;;  %v7925_v50 = vld [vmem:[%s11988_s3 + $0x110] sm:$0xff]  ;;  %v7072_v13 = vld [vmem:[%s11989_s5] sm:$0xff] }
0x1f47   : > { %10155 = vtanh.f32 %v6174_v20  ;;  %v9800_v59 = vadd.f32 %v11692_v60, %v5331_v19  ;;  %v9662_v60 = vpack.c.bf16 %v6296_v6, %v6295_v3  ;;  %v9742_v28 = vpack.c.bf16 %v7926_v24, %v7925_v50  ;;  %v6797_v19 = vld [vmem:[%s11983_s11 + $0x10] sm:$0xff] }
0x1f48   : > { %10157 = vtanh.f32 %v6173_v46  ;;  %v5518_v15 = vadd.f32 %v9799_v14, %v7860_v62  ;;  %v7272_v14 = vld [vmem:[#allocation2] sm:$0x1] }
0x1f49   : > { %v5517_v2 = vadd.f32 %v9800_v59, %v7860_v62  ;;  %v6580_v35 = vpop.permute.xlu0 %6579  ;;  %v7940_v59 = vld [vmem:[%s11983_s11 + $0x30] sm:$0xff] }
0x1f4a   : > { %v6575_v33 = vpop.permute.xlu1 %6574 }
0x1f4b   : > { %v10152_v48 = vpop.eup %10151 }
0x1f4c   : > { %v10154_v49 = vpop.eup %10153 }
0x1f4d   : > { %v6776_v36 = vpop.permute.xlu0 %6775 }
0x1f4e   : > { %v6771_v38 = vpop.permute.xlu1 %6770 }
0x1f51   : > { %v10156_v34 = vpop.eup %10155 }
0x1f52   : > { %v10158_v18 = vpop.eup %10157  ;;  %v6192_v51 = vmul.f32 %v10156_v34, %v10152_v48  ;;  %v6786_v34 = vpop.permute.xlu1 %6785 }
0x1f53   : > { %v6191_v55 = vmul.f32 %v10158_v18, %v10154_v49 }
0x1f55   : > { %9065 = vmatprep.mubr.msk.f32.mxu0 %vm1693_vm2, %v6191_v55  ;;  %v9650_v43 = vpack.c.bf16 %v6192_v51, %v6191_v55  ;;  %v6798_v55 = vld [vmem:[%s11983_s11 + $0x18] sm:$0xff] }
0x1f56   : > { %9066 = vmatmul.mubr.msk.f32.vlgmr.msra.gmra.mrb[46].mxu0 %vm1693_vm2, %v6192_v51 }
0x1f57   : > { %9651 = vmatprep.subr.bf16.mxu1 %v9650_v43  ;;  %9719 = vmatprep.subr.bf16.mxu0 %v9650_v43 }
0x1f58   : > { %9653 = vmatpush3.bf16.msra.mxu1 %v9650_v43  ;;  %9721 = vmatpush3.bf16.msra.mxu0 %v9650_v43  ;;  %v7938_v43 = vld [vmem:[%s11983_s11 + $0x20] sm:$0xff] }
0x1f59   : > { %9655 = vmatprep.subr.bf16.mxu1 %v9654_v58 }
0x1f5b   : > { %9020 = vmatmul.mubr.msk.f32.vlgmr.msra.gmra.mrb[44].mxu1 %vm1599_vm1, %v6195_v0 }
0x1f5c   : > { %9657 = vmatpush3.bf16.msra.mxu1 %v9654_v58  ;;  %9038 = vmatprep.mubr.msk.f32.mxu1 %vm2449_vm5, %v5517_v2  ;;  %v7939_v58 = vld [vmem:[%s11983_s11 + $0x28] sm:$0xff] }
0x1f5d   : > { %9659 = vmatprep.subr.bf16.mxu1 %v9658_v1 }
0x1f60   : > { %9661 = vmatpush3.bf16.msra.mxu1 %v9658_v1 }
0x1f61   : > { %9663 = vmatprep.subr.bf16.mxu1 %v9662_v60 }
0x1f64   : > { %9665 = vmatpush3.bf16.msra.mxu1 %v9662_v60  ;;  %v7027_v60 = vld [vmem:[%s11981_s7 + $0x8] sm:$0xff] }
0x1f65   : > { %9667 = vmatprep.subr.bf16.mxu1 %v9666_v31 }
0x1f68   : > { %9669 = vmatpush3.bf16.msra.mxu1 %v9666_v31  ;;  %v7073_v31 = vld [vmem:[%s11989_s5 + $0x8] sm:$0xff] }
0x1f69   : > { %9695 = vmatprep.subr.bf16.mxu1 %v11560_v9 }
0x1f6b   : > { %9039 = vmatmul.mubr.msk.f32.vlgmr.msra.gmra.mrb[44].mxu1 %vm2449_vm5, %v5518_v15  ;;  %v7070_v15 = vld [vmem:[#allocation19] sm:$0xff] }
0x1f6c   : > { %9697 = vmatpush3.bf16.msra.mxu1 %v11560_v9 }
0x1f6d   : > { %9699 = vmatprep.subr.bf16.mxu1 %v11566_v5 }
0x1f70   : > { %9701 = vmatpush3.bf16.msra.mxu1 %v11566_v5 }
0x1f71   : > { %9703 = vmatprep.subr.bf16.mxu1 %v11572_v12 }
0x1f74   : > { %9705 = vmatpush3.bf16.msra.mxu1 %v11572_v12 }
0x1f75   : > { %9707 = vmatprep.subr.bf16.mxu1 %v11656_v56 }
0x1f78   : > { %9709 = vmatpush3.bf16.msra.mxu1 %v11656_v56 }
0x1f79   : > { %9711 = vmatprep.subr.bf16.mxu1 %v11752_v63 }
0x1f7c   : > { %9713 = vmatpush3.bf16.msra.mxu1 %v11752_v63  ;;  %v6567_v63 = vld [vmem:[#allocation20 + $0x10] sm:$0xff] }
0x1f7d   : > { %9715 = vmatprep.subr.bf16.mxu1 %v11758_v4  ;;  %9107 = vmatprep.mubr.msk.f32.mxu0 %vm1870_vm3, %v6567_v63 }
0x1f80   : > { %9717 = vmatpush3.bf16.msra.mxu1 %v11758_v4  ;;  %v7919_v4 = vld [vmem:[%s11988_s3 + $0xe0] sm:$0xff] }
0x1f81   : > { %v9730_v25 = vpack.c.bf16 %v7920_v16, %v7919_v4 }
0x2029   : > { %v9067_v9 = vpop.f32.mrb[46].mxu0 }
0x202a   : > { %v6476_v5 = vpop.f32.mrb[47].mxu0 }
0x202b   : > { %v9722_v57 = vpack.c.bf16 %v9067_v9, %v6476_v5  ;;  %9092 = vmatprep.mubr.msk.f32.mxu1 %vm1693_vm2, %v6476_v5  ;;  %v7043_v5 = vpop.permute.xlu1 %7042 }
0x202c   : > { %9093 = vmatmul.mubr.msk.f32.vlgmr.msra.gmra.mrb[46].mxu1 %vm1693_vm2, %v9067_v9 }
0x202d   : > { %9723 = vmatprep.subr.bf16.mxu0 %v9722_v57  ;;  %9133 = vmatprep.mubr.msk.f32.mxu1 %vm1599_vm1, %v6795_v53 }
0x202e   : > { %9725 = vmatpush3.bf16.msra.mxu0 %v9722_v57 }
0x203e   : > { %v11796_v12 = vpop.f32.mrb[44].mxu1 }
0x203f   : > { %v11798_v56 = vpop.f32.mrb[45].mxu1 }
0x20ff   : > { %v9094_v17 = vpop.f32.mrb[46].mxu1 }
0x2100   : > { %v6557_v44 = vpop.f32.mrb[47].mxu1 }
0x2101   : > { %v9726_v41 = vpack.c.bf16 %v9094_v17, %v6557_v44 }
0x2103   : > { %9727 = vmatprep.subr.bf16.mxu0 %v9726_v41 }
0x2104   : > { %9729 = vmatpush3.bf16.msra.mxu0 %v9726_v41 }
0x2105   : > { %9731 = vmatprep.subr.bf16.mxu0 %v9730_v25 }
0x2107   : > { %9108 = vmatmul.mubr.msk.f32.vlgmr.msra.gmra.mrb[48].mxu0 %vm1870_vm3, %v6568_v22 }
0x2108   : > { %9733 = vmatpush3.bf16.msra.mxu0 %v9730_v25  ;;  %9126 = vmatprep.mubr.msk.f32.mxu0 %vm2449_vm5, %v11710_v32 }
0x2109   : > { %9735 = vmatprep.subr.bf16.mxu0 %v9734_v47 }
0x210c   : > { %9737 = vmatpush3.bf16.msra.mxu0 %v9734_v47 }
0x210d   : > { %9739 = vmatprep.subr.bf16.mxu0 %v9738_v27 }
0x2110   : > { %9741 = vmatpush3.bf16.msra.mxu0 %v9738_v27 }
0x2111   : > { %9743 = vmatprep.subr.bf16.mxu0 %v9742_v28 }
0x2114   : > { %9745 = vmatpush3.bf16.msra.mxu0 %v9742_v28 }
0x2117   : > { %9127 = vmatmul.mubr.msk.f32.vlgmr.msra.gmra.mrb[48].mxu0 %vm2449_vm5, %v11708_v29  ;;  %v6791_v29 = vpop.permute.xlu0 %6790 }
0x2118   : > { %9153 = vmatprep.mubr.msk.f32.mxu0 %vm1599_vm1, %v7070_v15 }
0x211b   : > { %v7048_v9 = vpop.permute.xlu0 %7047 }
0x21ea   : > { %v9128_v32 = vpop.f32.mrb[48].mxu0 }
0x21eb   : > { %v9805_v40 = vadd.f32 %v9128_v32, %v6580_v35  ;;  %v6744_v42 = vpop.f32.mrb[49].mxu0 }
0x21ec   : > { %v9806_v45 = vadd.f32 %v6744_v42, %v6575_v33 }
0x21ed   : > { %v6764_v20 = vadd.f32 %v9805_v40, %v7929_v37 }
0x21ee   : > { %v6763_v46 = vadd.f32 %v9806_v45, %v7929_v37 }
0x21ef   : > { %v6779_v48 = vmul.f32 %v6776_v36, %v6764_v20 }
0x21f0   : > { %v6778_v49 = vmul.f32 %v6771_v38, %v6763_v46 }
0x21f1   : > { %v6794_v18 = vadd.f32 %v6791_v29, %v6779_v48 }
0x21f2   : > { %v6793_v51 = vadd.f32 %v6786_v34, %v6778_v49  ;;  %v7166_v34 = vld [vmem:[#allocation23 + $0x150] sm:$0xff] }
0x21f4   : > { %v9746_v30 = vpack.c.bf16 %v6794_v18, %v6793_v51  ;;  %v7167_v18 = vld [vmem:[#allocation23 + $0x158] sm:$0xff] }
0x21f6   : > { %9747 = vmatprep.subr.bf16.mxu1 %v9746_v30 }
0x21f7   : > { %9749 = vmatpush3.bf16.msra.mxu1 %v9746_v30 }
0x21f8   : > { %9751 = vmatprep.subr.bf16.mxu1 %v9746_v30 }
0x21fa   : > { %9134 = vmatmul.mubr.msk.f32.vlgmr.msra.gmra.mrb[48].mxu1 %vm1599_vm1, %v6796_v7 }
0x21fb   : > { %9753 = vmatpush3.bf16.msra.mxu1 %v9746_v30  ;;  %9136 = vmatprep.mubr.msk.f32.mxu1 %vm1599_vm1, %v6797_v19  ;;  %v9758_v19 = vpack.c.bf16 %v7167_v18, %v7166_v34 }
0x21fc   : > { %9782 = vmatprep.subr.bf16.mxu1 %v10725_v52 }
0x21fe   : > { %9137 = vmatmul.mubr.msk.f32.gmra.mrb[50].mxu1 %vm1599_vm1, %v6798_v55 }
0x21ff   : > { %9143 = vmatprep.mubr.msk.f32.mxu1 %vm1599_vm1, %v7938_v43  ;;  %v7168_v43 = vld [vmem:[#allocation23 + $0x160] sm:$0xff] }
0x2202   : > { %9144 = vmatmul.mubr.msk.f32.vlgmr.msra.gmra.mrb[52].mxu1 %vm1599_vm1, %v7939_v58  ;;  %v7169_v58 = vld [vmem:[#allocation23 + $0x168] sm:$0xff] }
0x2203   : > { %9146 = vmatprep.mubr.msk.f32.mxu1 %vm1599_vm1, %v7940_v59  ;;  %v7910_v59 = vld [vmem:[#allocation25 + $0x2] ss:$0 sm:$0xff] }
0x2206   : > { %9147 = vmatmul.mubr.msk.f32.gmra.mrb[54].mxu1 %vm1599_vm1, %v7941_v10  ;;  %v7071_v10 = vld [vmem:[#allocation19 + $0x8] sm:$0xff] }
0x2207   : > { %9187 = vmatprep.mubr.msk.f32.mxu1 %vm10726_vm6, %v10727_v54  ;;  %v7905_v54 = vld [vmem:[%s11989_s5 + $0x18] sm:$0xff] }
0x22cd   : > { %v9135_v61 = vpop.f32.mrb[48].mxu1 }
0x22ce   : > { %v6877_v52 = vpop.f32.mrb[49].mxu1  ;;  %v6999_v53 = vsel %vm1693_vm2, %v9135_v61, 0.0  ;;  %v9762_v61 = vpack.c.bf16 %v7169_v58, %v7168_v43 }
0x22cf   : > { %v6998_v32 = vsel %vm1693_vm2, %v6877_v52, 0.0 }
0x22d1   : > { %v9138_v62 = vpop.f32.mrb[50].mxu1 }
0x22d2   : > { %v6887_v0 = vpop.f32.mrb[51].mxu1  ;;  %v7001_v63 = vsel %vm1693_vm2, %v9138_v62, 0.0  ;;  %v7170_v62 = vld [vmem:[#allocation23 + $0x170] sm:$0xff] }
0x22d3   : > { %v7000_v17 = vsel %vm1693_vm2, %v6887_v0, 0.0  ;;  %v7171_v0 = vld [vmem:[#allocation23 + $0x178] sm:$0xff] }
0x22d5   : > { %v9145_v1 = vpop.f32.mrb[52].mxu1 }
0x22d6   : > { %v6979_v2 = vpop.f32.mrb[53].mxu1 }
0x22d9   : > { %v9148_v3 = vpop.f32.mrb[54].mxu1 }
0x22da   : > { %7012 = vrot.lane.b32.xlu0 %v9148_v3, %s11990_s6  ;;  %v6989_v6 = vpop.f32.mrb[55].mxu1 }
0x22db   : > { %7010 = vrot.lane.b32.xlu1 %v6989_v6, %s11990_s6  ;;  %v7174_v6 = vld [vmem:[#allocation23 + $0x190] sm:$0xff] }
0x22de   : > { %7037 = vperm.xlu0 %10053, %v7027_v60   ;;  %v7175_v60 = vld [vmem:[#allocation23 + $0x198] sm:$0xff] }
0x22df   : > { %7032 = vperm.xlu1 %10054, %v7026_v8   ;;  %v9774_v8 = vpack.c.bf16 %v7175_v60, %v7174_v6 }
0x22e2   : > { %7008 = vrot.lane.b32.xlu0 %v9145_v1, %s11990_s6  ;;  %v9766_v1 = vpack.c.bf16 %v7171_v0, %v7170_v62 }
0x22e3   : > { %7006 = vrot.lane.b32.xlu1 %v6979_v2, %s11990_s6  ;;  %v7172_v2 = vld [vmem:[#allocation23 + $0x180] sm:$0xff] }
0x22e6   : > { %6206 = vperm.xlu0 %10053, %v7905_v54   ;;  %v7176_v54 = vld [vmem:[#allocation23 + $0x1a0] sm:$0xff] }
0x22e7   : > { %6201 = vperm.xlu1 %10054, %v7904_v11   ;;  %v7177_v11 = vld [vmem:[#allocation23 + $0x1a8] sm:$0xff] }
0x22ea   : > { %7081 = vperm.xlu0 %10053, %v7073_v31   ;;  %v9778_v31 = vpack.c.bf16 %v7177_v11, %v7176_v54 }
0x22eb   : > { %7076 = vperm.xlu1 %10054, %v7072_v13  }
0x22ef   : > { %7275 = vperm.xlu1 %10054, %v7272_v14  }
0x234c   : > { %v7013_v57 = vpop.permute.xlu0 %7012 }
0x234d   : > { %v7021_v4 = vsel %vm1599_vm1, 0.0, %v7013_v57  ;;  %v7011_v16 = vpop.permute.xlu1 %7010  ;;  %v7952_v57 = vld [vmem:[#allocation25 + $0x3] ss:$0 sm:$0xff] }
0x234e   : > { %v7025_v44 = vadd.f32 %v7021_v4, %v7001_v63  ;;  %v7020_v41 = vsel %vm1599_vm1, 0.0, %v7011_v16 }
0x234f   : > { %v7024_v25 = vadd.f32 %v7020_v41, %v7000_v17 }
0x2350   : > { %v7053_v39 = vadd.f32 %v7048_v9, %v7025_v44 }
0x2351   : > { %v7052_v21 = vadd.f32 %v7043_v5, %v7024_v25 }
0x2352   : > { %v7947_v22 = vmul.f32 -1.442695, %v7053_v39  ;;  %v7271_v39 = vld [vmem:[#allocation26] sm:$0x1] }
0x2353   : > { %v7946_v47 = vmul.f32 -1.442695, %v7052_v21 }
0x2354   : > { %10159 = vpow2.f32 %v7947_v22 }
0x2355   : > { %10161 = vpow2.f32 %v7946_v47 }
0x235d   : > { %v7038_v23 = vpop.permute.xlu0 %7037 }
0x235e   : > { %v10160_v26 = vpop.eup %10159  ;;  %v7033_v27 = vpop.permute.xlu1 %7032 }
0x235f   : > { %v10162_v50 = vpop.eup %10161  ;;  %v7063_v24 = vadd.f32 1.0, %v10160_v26 }
0x2360   : > { %v7062_v35 = vadd.f32 1.0, %v10162_v50 }
0x2361   : > { %v7009_v28 = vpop.permute.xlu0 %7008  ;;  %10163 = vrcp.f32 %v7063_v24 }
0x2362   : > { %v7019_v33 = vsel %vm1599_vm1, 0.0, %v7009_v28  ;;  %v7007_v36 = vpop.permute.xlu1 %7006  ;;  %10165 = vrcp.f32 %v7062_v35 }
0x2363   : > { %v7023_v37 = vadd.f32 %v7019_v33, %v6999_v53  ;;  %v7018_v38 = vsel %vm1599_vm1, 0.0, %v7007_v36 }
0x2364   : > { %v7022_v40 = vadd.f32 %v7018_v38, %v6998_v32 }
0x2365   : > { %v7051_v42 = vadd.f32 %v7038_v23, %v7023_v37  ;;  %v6207_v13 = vpop.permute.xlu0 %6206 }
0x2366   : > { %v7050_v45 = vadd.f32 %v7033_v27, %v7022_v40  ;;  %v6202_v51 = vpop.permute.xlu1 %6201  ;;  %v9803_v14 = vadd.f32 %v11796_v12, %v6207_v13  ;;  %v7278_v12 = vlaneseq }
0x2367   : > { %10167 = vtanh.f32 %v7051_v42  ;;  %v9804_v55 = vadd.f32 %v11798_v56, %v6202_v51  ;;  %v7173_v56 = vld [vmem:[#allocation23 + $0x188] sm:$0xff] }
0x2368   : > { %10169 = vtanh.f32 %v7050_v45  ;;  %v9770_v3 = vpack.c.bf16 %v7173_v56, %v7172_v2  ;;  %v6391_v15 = vadd.f32 %v9803_v14, %v7910_v59  ;;  %v7279_v21 = vshrl.u32 %v7278_v12, 7 }
0x2369   : > { %v6390_v52 = vadd.f32 %v9804_v55, %v7910_v59  ;;  %v7082_v9 = vpop.permute.xlu0 %7081 }
0x236a   : > { %v7077_v63 = vpop.permute.xlu1 %7076  ;;  %v7280_v22 = vsub.s32 0, %v7279_v21 }
0x236b   : > { %v10164_v20 = vpop.eup %10163 }
0x236c   : > { %v10166_v46 = vpop.eup %10165 }
0x236e   : > { %v7276_v47 = vpop.permute.xlu1 %7275 }
0x236f   : > { %v7281_v23 = vrot.slane %v7276_v47, %v7280_v22 }
0x2371   : > { %v10168_v48 = vpop.eup %10167 }
0x2372   : > { %v10170_v29 = vpop.eup %10169  ;;  %v7069_v49 = vmul.f32 %v10168_v48, %v10164_v20 }
0x2373   : > { %v7068_v30 = vmul.f32 %v10170_v29, %v10166_v46 }
0x2375   : > { %v9754_v7 = vpack.c.bf16 %v7069_v49, %v7068_v30 }
0x2377   : > { %9755 = vmatprep.subr.bf16.mxu0 %v9754_v7 }
0x2378   : > { %9757 = vmatpush3.bf16.msra.mxu0 %v9754_v7 }
0x2379   : > { %9759 = vmatprep.subr.bf16.mxu0 %v9758_v19 }
0x237b   : > { %9154 = vmatmul.mubr.msk.f32.vlgmr.msra.gmra.mrb[50].mxu0 %vm1599_vm1, %v7071_v10 }
0x237c   : > { %9761 = vmatpush3.bf16.msra.mxu0 %v9758_v19  ;;  %9180 = vmatprep.mubr.msk.f32.mxu0 %vm1693_vm2, %v6390_v52 }
0x237d   : > { %9763 = vmatprep.subr.bf16.mxu0 %v9762_v61 }
0x2380   : > { %9765 = vmatpush3.bf16.msra.mxu0 %v9762_v61 }
0x2381   : > { %9767 = vmatprep.subr.bf16.mxu0 %v9766_v1 }
0x2384   : > { %9769 = vmatpush3.bf16.msra.mxu0 %v9766_v1 }
0x2385   : > { %9771 = vmatprep.subr.bf16.mxu0 %v9770_v3 }
0x2388   : > { %9773 = vmatpush3.bf16.msra.mxu0 %v9770_v3 }
0x2389   : > { %9775 = vmatprep.subr.bf16.mxu0 %v9774_v8 }
0x238c   : > { %9777 = vmatpush3.bf16.msra.mxu0 %v9774_v8 }
0x238d   : > { %9779 = vmatprep.subr.bf16.mxu0 %v9778_v31 }
0x2390   : > { %9781 = vmatpush3.bf16.msra.mxu0 %v9778_v31 }
0x2393   : > { %9181 = vmatmul.mubr.msk.f32.vlgmr.msra.gmra.mrb[50].mxu0 %vm1693_vm2, %v6391_v15 }
0x2466   : > { %v9182_v5 = vpop.f32.mrb[50].mxu0 }
0x2467   : > { %v9807_v4 = vadd.f32 %v9182_v5, %v7082_v9  ;;  %v7250_v16 = vpop.f32.mrb[51].mxu0 }
0x2468   : > { %v9808_v17 = vadd.f32 %v7250_v16, %v7077_v63 }
0x2469   : > { %v7270_v44 = vadd.f32 %v9807_v4, %v7952_v57 }
0x246a   : > { %v7269_v41 = vadd.f32 %v9808_v17, %v7952_v57 }
0x246c   : > { %v9783_v25 = vpack.c.bf16 %v7270_v44, %v7269_v41 }
0x246e   : > { %9784 = vmatpush3.bf16.msra.mxu1 %v9783_v25 }
0x2471   : > { %9188 = vmatmul.mubr.msk.f32.vlgmr.msra.gmra.mrb[56].mxu1 %vm1599_vm1, %v7271_v39 }
0x2544   : > { %v7351_v26 = vpop.f32.mrb[56].mxu1 }
0x2545   : > { %v7352_v27 = vadd.f32 %v7351_v26, %v7281_v23  ;;  %v9189_v50 = vpop.f32.mrb[57].mxu1 }
0x2547   : > { %7356 = vst.msk [vmem:[%s1399_s8] sm:$0x1] %vm7355_vm10, %v7352_v27 }
0x2548 PF: > { %s100_s22 = sadd.s32 1, %s10661_s22  }
0x2549   : > { %p97_p5 = scmp.ge.s32.totalorder %s100_s22, 4  }
0x254b   :  { %99 = sbr.rel (!%p97_p5) target bundleno = 83 (0x53), region = 378 }
0x2552   :  { %7374 = vsyncpa [#allocation4], 1 }
0x2553   :  { %7376 = vsyncpa [#allocation4 + $0x1], 1 }
0x2554   :  { %7377 = vsyncpa [#allocation6], 1 }
0x2555   :  { %7378 = vsyncpa [#allocation9], 1 }
0x2556   :  { %7379 = vsyncpa [#allocation12], 1 }
0x2557   :  { %7380 = vsyncpa [#allocation15], 1 }
0x2558   :  { %7381 = vsyncpa [#allocation18], 1 }
0x2559   :  { %7382 = vsyncpa [#allocation21], 1 }
0x255a   :  { %7383 = vsyncpa [#allocation24], 1 }
0x255b   :  { %7384 = vsyncpa [#allocation27], 1 }

</bundles_post_ra>
